<compile_context>
chip_gen: v7x
topology: tpu7x:2x2x1
jax: 0.10.0
libtpu: 0.0.40
codegen_flags: <defaults>
</compile_context>

<pallas_src>
import functools

import jax
import jax.numpy as jnp
import numpy as np
from jax import lax
from jax.experimental import pallas as pl
from jax.experimental.pallas import tpu as pltpu


# ----------------------------------------------------------------------------
# Fused kernel: per-chunk input projection + bidirectional recurrence + head.
# ----------------------------------------------------------------------------
def lstm_fused_kernel(x_f_ref, x_b_ref,
                      w_ih_f_ref, b_f_ref, w_ih_b_ref, b_b_ref,
                      w_hh_f_ref, w_hh_b_ref,
                      w_fc_bwd_ref, w_fc_fwd_ref, b_fc_ref,
                      out_ref,
                      h_f, c_f, h_b, c_b, xg_f, xg_b,
                      *, hidden_size, chunk, batch, seq_len, pad, full_unroll):
    H = hidden_size
    B = batch
    step = pl.program_id(0)

    @pl.when(step == 0)
    def _init():
        h_f[...] = jnp.zeros_like(h_f)
        c_f[...] = jnp.zeros_like(c_f)
        h_b[...] = jnp.zeros_like(h_b)
        c_b[...] = jnp.zeros_like(c_b)

    cdt = w_hh_f_ref.dtype  # MXU input dtype (f32 or bf16); accumulation is f32.

    # ---- Fused chunk input projection (off the h-dependency chain). --------
    # x_f_ref: (chunk*B, I) rows of this chunk (forward time order);
    # x_b_ref: the mirrored chunk.  Bias folded in here, never re-added below.
    xg_f[...] = (jnp.dot(x_f_ref[...], w_ih_f_ref[...],
                         preferred_element_type=jnp.float32) + b_f_ref[...])
    xg_b[...] = (jnp.dot(x_b_ref[...], w_ih_b_ref[...],
                         preferred_element_type=jnp.float32) + b_b_ref[...])

    def cell(xg, h_ref, c_ref, w_hh_ref):
        # Only the small h @ W_hh matmul remains on the serial path.
        gates = xg + jnp.dot(h_ref[...].astype(cdt), w_hh_ref[...],
                             preferred_element_type=jnp.float32)
        # PyTorch LSTM gate order: i, f, g, o.  Gate/state math stays f32.
        i_g = jax.nn.sigmoid(gates[:, 0 * H:1 * H])
        f_g = jax.nn.sigmoid(gates[:, 1 * H:2 * H])
        g_g = jnp.tanh(gates[:, 2 * H:3 * H])
        o_g = jax.nn.sigmoid(gates[:, 3 * H:4 * H])
        c_new = f_g * c_ref[...] + i_g * g_g
        c_ref[...] = c_new
        h_ref[...] = o_g * jnp.tanh(c_new)

    def one_step(s):
        # s: local step within the chunk (static int when unrolled, traced in
        # the fori_loop path).
        def fwd():  # forward dir: local time s of this chunk
            cell(xg_f[pl.ds(s * B, B), :], h_f, c_f, w_hh_f_ref)

        def bwd():  # backward dir: local time (chunk-1-s) of the mirrored chunk
            j = chunk - 1 - s
            cell(xg_b[pl.ds(j * B, B), :], h_b, c_b, w_hh_b_ref)

        if pad == 0:
            fwd()
            bwd()
        else:
            pos = step * chunk + s           # position along the padded time axis
            pl.when(pos < seq_len)(fwd)      # forward: skip trailing padded steps
            pl.when(pos >= pad)(bwd)         # backward: skip leading padded steps

    if full_unroll:
        # Short fixed trip count: full static unroll for LLO visibility.
        for s in range(chunk):
            one_step(s)
    else:
        # Production shapes: bound live ranges, keep some unroll for ILP.
        def body(s, carry):
            one_step(s)
            return carry
        lax.fori_loop(0, chunk, body, 0, unroll=2)

    @pl.when(step == pl.num_programs(0) - 1)
    def _finalize():
        # hidden_cat = cat([hidden[-1], hidden[-2]]) = [backward, forward];
        # fc computed as two dots (no lane-dim concatenate).
        out = (jnp.dot(h_b[...].astype(w_fc_bwd_ref.dtype), w_fc_bwd_ref[...],
                       preferred_element_type=jnp.float32)
               + jnp.dot(h_f[...].astype(w_fc_fwd_ref.dtype), w_fc_fwd_ref[...],
                         preferred_element_type=jnp.float32)
               + b_fc_ref[...])
        out_ref[...] = out.astype(out_ref.dtype)


def _pick_chunk(T, B, I, H, in_itemsize, max_chunk=32, vmem_budget_bytes=8 << 20):
    """Time steps per grid step, capped by the per-chunk VMEM working set."""
    # Per extra time step: x blocks (2 dirs, double-buffered, cdt) + xg scratch
    # (2 dirs, f32).  Weights/state are chunk-independent.
    per_step = B * (2 * 2 * I * in_itemsize + 2 * 4 * H * 4)
    cap = max(1, vmem_budget_bytes // max(per_step, 1))
    return int(max(1, min(max_chunk, T, cap)))


def rnn_classifier_forward(x, params, *, chunk=None, use_bf16_matmul=False):
    """Bidirectional 1-layer LSTM + Linear head (forward pass only).

    x: (B, T, I) batch-first like the PyTorch caller; internally made
    time-major, matching `input.permute(1, 0, 2)`.
    """
    B, T, I = x.shape
    H = params["hidden_size"]
    O = params["w_fc"].shape[1]
    cdt = jnp.bfloat16 if use_bf16_matmul else jnp.float32
    in_itemsize = jnp.dtype(cdt).itemsize

    if chunk is None:
        chunk = _pick_chunk(T, B, I, H, in_itemsize)
    chunk = int(max(1, min(chunk, T)))
    num_chunks = -(-T // chunk)          # ceil-div; ragged last chunk supported
    T_pad = num_chunks * chunk
    pad = T_pad - T
    rows = chunk * B

    # Time-major (input.permute(1,0,2)); pad a ragged tail with zeros (padded
    # steps are masked off inside the kernel and never touch the state).
    x_tm = jnp.transpose(x, (1, 0, 2))
    if pad:
        x_tm = jnp.pad(x_tm, ((0, pad), (0, 0), (0, 0)))
    x_flat = x_tm.reshape(T_pad * B, I).astype(cdt)

    w_ih_f = params["w_ih_f"].astype(cdt)
    w_ih_b = params["w_ih_b"].astype(cdt)
    w_hh_f = params["w_hh_f"].astype(cdt)
    w_hh_b = params["w_hh_b"].astype(cdt)
    # fc head split so the kernel never concatenates [h_b | h_f] on lanes.
    w_fc_bwd = params["w_fc"][:H].astype(cdt)   # multiplies h_bwd
    w_fc_fwd = params["w_fc"][H:].astype(cdt)   # multiplies h_fwd
    b_f, b_b, b_fc = params["b_f"], params["b_b"], params["b_fc"]   # f32

    full_unroll = (B * 4 * H <= 4 * 1024) and (chunk <= 32)

    kernel = functools.partial(
        lstm_fused_kernel, hidden_size=H, chunk=chunk, batch=B,
        seq_len=T, pad=pad, full_unroll=full_unroll)

    def const_spec(shape):
        return pl.BlockSpec(shape, lambda c: (0,) * len(shape))

    # Rough VMEM working set (double-buffered streams + scratch) with headroom.
    est_vmem = (2 * 2 * rows * I * in_itemsize            # x blocks, 2 dirs
                + 2 * rows * 4 * H * 4                    # xg scratch, f32
                + 4 * B * H * 4                           # h/c state
                + 2 * in_itemsize * (2 * I * 4 * H + 2 * H * 4 * H + 2 * H * O)
                + 2 * 4 * (4 * H + O) + 2 * B * O * 4)
    vmem_limit = int(min(max(3 * est_vmem, 32 << 20), 64 << 20))

    out = pl.pallas_call(
        kernel,
        out_shape=jax.ShapeDtypeStruct((B, O), jnp.float32),
        grid_spec=pltpu.PrefetchScalarGridSpec(
            num_scalar_prefetch=0,
            grid=(num_chunks,),
            in_specs=[
                # forward direction reads chunk c ...
                pl.BlockSpec((rows, I), lambda c: (c, 0)),
                # ... backward direction reads the mirrored chunk (same array).
                pl.BlockSpec((rows, I), lambda c: (num_chunks - 1 - c, 0)),
                const_spec((I, 4 * H)), const_spec((1, 4 * H)),
                const_spec((I, 4 * H)), const_spec((1, 4 * H)),
                const_spec((H, 4 * H)), const_spec((H, 4 * H)),
                const_spec((H, O)), const_spec((H, O)), const_spec((1, O)),
            ],
            out_specs=pl.BlockSpec((B, O), lambda c: (0, 0)),
            scratch_shapes=[pltpu.VMEM((B, H), jnp.float32)] * 4
                         + [pltpu.VMEM((rows, 4 * H), jnp.float32)] * 2,
        ),
        compiler_params=pltpu.CompilerParams(
            # Time axis carries (h, c) state -> MUST stay sequential.
            dimension_semantics=("arbitrary",),
            vmem_limit_bytes=vmem_limit),
    )(x_flat, x_flat, w_ih_f, b_f, w_ih_b, b_b, w_hh_f, w_hh_b,
      w_fc_bwd, w_fc_fwd, b_fc)
    return out


def init_params(key, input_size, hidden_size, output_size):
    """Deterministic init mimicking PyTorch's U(-1/sqrt(H), 1/sqrt(H))."""
    H = hidden_size
    bound = 1.0 / np.sqrt(H)
    keys = jax.random.split(key, 8)

    def u(kk, shape):
        return jax.random.uniform(kk, shape, jnp.float32, -bound, bound)

    # bias_ih + bias_hh are always summed -> stored pre-summed as one bias.
    return dict(
        hidden_size=H,
        w_ih_f=u(keys[0], (input_size, 4 * H)),
        w_hh_f=u(keys[1], (H, 4 * H)),
        b_f=u(keys[2], (1, 4 * H)),
        w_ih_b=u(keys[3], (input_size, 4 * H)),
        w_hh_b=u(keys[4], (H, 4 * H)),
        b_b=u(keys[5], (1, 4 * H)),
        w_fc=u(keys[6], (2 * H, output_size)),
        b_fc=u(keys[7], (1, output_size)),
    )


def reference_forward(x, params, compute_dtype=jnp.float32):
    """Pure-JAX reference of the same bidirectional LSTM + fc head."""
    B, T, I = x.shape
    H = params["hidden_size"]
    cdt = compute_dtype

    def mm(a, b):
        return jnp.dot(a.astype(cdt), b.astype(cdt),
                       preferred_element_type=jnp.float32)

    def cell(x_t, h, c, w_ih, w_hh, b):
        gates = mm(x_t, w_ih) + mm(h, w_hh) + b
        i_g = jax.nn.sigmoid(gates[:, :H])
        f_g = jax.nn.sigmoid(gates[:, H:2 * H])
        g_g = jnp.tanh(gates[:, 2 * H:3 * H])
        o_g = jax.nn.sigmoid(gates[:, 3 * H:])
        c = f_g * c + i_g * g_g
        h = o_g * jnp.tanh(c)
        return h, c

    h_f = c_f = jnp.zeros((B, H), jnp.float32)
    h_b = c_b = jnp.zeros((B, H), jnp.float32)
    for t in range(T):
        h_f, c_f = cell(x[:, t], h_f, c_f,
                        params["w_ih_f"], params["w_hh_f"], params["b_f"])
        h_b, c_b = cell(x[:, T - 1 - t], h_b, c_b,
                        params["w_ih_b"], params["w_hh_b"], params["b_b"])
    hcat = jnp.concatenate([h_b, h_f], axis=1)
    return mm(hcat, params["w_fc"]) + params["b_fc"]


if __name__ == "__main__":
    B, T, I, H, O = 8, 16, 16, 32, 4

    key = jax.random.PRNGKey(0)
    k_x, k_p, k_x2 = jax.random.split(key, 3)
    x = jax.random.normal(k_x, (B, T, I), jnp.float32)
    params = init_params(k_p, I, H, O)
    ref = reference_forward(x, params)

    # 1) f32, auto chunk (whole sequence in one grid step).
    out = jax.block_until_ready(rnn_classifier_forward(x, params))
    np.testing.assert_allclose(np.asarray(out), np.asarray(ref),
                               rtol=1e-4, atol=1e-4)

    # 2) f32, multi-chunk sequential grid (state carried in VMEM scratch,
    #    mirrored backward blocks).
    out4 = jax.block_until_ready(rnn_classifier_forward(x, params, chunk=4))
    np.testing.assert_allclose(np.asarray(out4), np.asarray(ref),
                               rtol=1e-4, atol=1e-4)

    # 3) bf16 MXU inputs / f32 accumulation, vs a reference with identical
    #    bf16 casts on all matmul operands.
    out_bf16 = jax.block_until_ready(
        rnn_classifier_forward(x, params, chunk=4, use_bf16_matmul=True))
    ref_bf16 = reference_forward(x, params, compute_dtype=jnp.bfloat16)
    np.testing.assert_allclose(np.asarray(out_bf16), np.asarray(ref_bf16),
                               rtol=1e-2, atol=5e-3)

    # 4) ragged sequence length (T not a multiple of the chunk).
    Tr = 13
    xr = jax.random.normal(k_x2, (B, Tr, I), jnp.float32)
    out_r = jax.block_until_ready(rnn_classifier_forward(xr, params, chunk=4))
    ref_r = reference_forward(xr, params)
    np.testing.assert_allclose(np.asarray(out_r), np.asarray(ref_r),
                               rtol=1e-4, atol=1e-4)

    print("KERNEL_OK")
</pallas_src>

<mosaic_0001>
module attributes {stable_mosaic.version = 11 : i64} {
  func.func @lstm_fused_kernel(%arg0: i32, %arg1: memref<128x16xf32, #tpu.memory_space<vmem>>, %arg2: memref<128x16xf32, #tpu.memory_space<vmem>>, %arg3: memref<16x128xf32, #tpu.memory_space<vmem>>, %arg4: memref<1x128xf32, #tpu.memory_space<vmem>>, %arg5: memref<16x128xf32, #tpu.memory_space<vmem>>, %arg6: memref<1x128xf32, #tpu.memory_space<vmem>>, %arg7: memref<32x128xf32, #tpu.memory_space<vmem>>, %arg8: memref<32x128xf32, #tpu.memory_space<vmem>>, %arg9: memref<32x4xf32, #tpu.memory_space<vmem>>, %arg10: memref<32x4xf32, #tpu.memory_space<vmem>>, %arg11: memref<1x4xf32, #tpu.memory_space<vmem>>, %arg12: memref<8x4xf32, #tpu.memory_space<vmem>>, %arg13: memref<8x32xf32, #tpu.memory_space<vmem>>, %arg14: memref<8x32xf32, #tpu.memory_space<vmem>>, %arg15: memref<8x32xf32, #tpu.memory_space<vmem>>, %arg16: memref<8x32xf32, #tpu.memory_space<vmem>>, %arg17: memref<128x128xf32, #tpu.memory_space<vmem>>, %arg18: memref<128x128xf32, #tpu.memory_space<vmem>>) attributes {dimension_semantics = [#tpu.dimension_semantics<arbitrary>], iteration_bounds = array<i64: 1>, scalar_prefetch = 0 : i64, scratch_operands = 6 : i64, tpu.core_type = #tpu.core_type<tc>, window_params = [{transform_indices = @transform_0, window_bounds = array<i64: 128, 16>}, {transform_indices = @transform_1, window_bounds = array<i64: 128, 16>}, {pipeline_mode = #tpu.pipeline_mode<synchronous>, transform_indices = @transform_2, window_bounds = array<i64: 16, 128>}, {pipeline_mode = #tpu.pipeline_mode<synchronous>, transform_indices = @transform_3, window_bounds = array<i64: 1, 128>}, {pipeline_mode = #tpu.pipeline_mode<synchronous>, transform_indices = @transform_4, window_bounds = array<i64: 16, 128>}, {pipeline_mode = #tpu.pipeline_mode<synchronous>, transform_indices = @transform_5, window_bounds = array<i64: 1, 128>}, {pipeline_mode = #tpu.pipeline_mode<synchronous>, transform_indices = @transform_6, window_bounds = array<i64: 32, 128>}, {pipeline_mode = #tpu.pipeline_mode<synchronous>, transform_indices = @transform_7, window_bounds = array<i64: 32, 128>}, {pipeline_mode = #tpu.pipeline_mode<synchronous>, transform_indices = @transform_8, window_bounds = array<i64: 32, 4>}, {pipeline_mode = #tpu.pipeline_mode<synchronous>, transform_indices = @transform_9, window_bounds = array<i64: 32, 4>}, {pipeline_mode = #tpu.pipeline_mode<synchronous>, transform_indices = @transform_10, window_bounds = array<i64: 1, 4>}, {pipeline_mode = #tpu.pipeline_mode<synchronous>, transform_indices = @transform_11, window_bounds = array<i64: 8, 4>}]} {
    %c0_i32 = arith.constant 0 : i32
    %0 = arith.cmpi eq, %arg0, %c0_i32 : i32
    %1 = arith.extui %0 : i1 to i32
    %c0_i32_0 = arith.constant 0 : i32
    %2 = arith.cmpi ne, %1, %c0_i32_0 : i32
    scf.if %2 {
      %cst_516 = arith.constant 0.000000e+00 : f32
      %1076 = vector.broadcast %cst_516 : f32 to vector<8x32xf32>
      %c0_517 = arith.constant 0 : index
      %c0_518 = arith.constant 0 : index
      %1077 = vector.load %arg13[%c0_517, %c0_518] : memref<8x32xf32, #tpu.memory_space<vmem>>, vector<8x32xf32>
      tpu.vector_store %arg13[%c0_517, %c0_518], %1076 {strides = array<i32>} : memref<8x32xf32, #tpu.memory_space<vmem>>, vector<8x32xf32>,
      %cst_519 = arith.constant 0.000000e+00 : f32
      %1078 = vector.broadcast %cst_519 : f32 to vector<8x32xf32>
      %c0_520 = arith.constant 0 : index
      %c0_521 = arith.constant 0 : index
      %1079 = vector.load %arg14[%c0_520, %c0_521] : memref<8x32xf32, #tpu.memory_space<vmem>>, vector<8x32xf32>
      tpu.vector_store %arg14[%c0_520, %c0_521], %1078 {strides = array<i32>} : memref<8x32xf32, #tpu.memory_space<vmem>>, vector<8x32xf32>,
      %cst_522 = arith.constant 0.000000e+00 : f32
      %1080 = vector.broadcast %cst_522 : f32 to vector<8x32xf32>
      %c0_523 = arith.constant 0 : index
      %c0_524 = arith.constant 0 : index
      %1081 = vector.load %arg15[%c0_523, %c0_524] : memref<8x32xf32, #tpu.memory_space<vmem>>, vector<8x32xf32>
      tpu.vector_store %arg15[%c0_523, %c0_524], %1080 {strides = array<i32>} : memref<8x32xf32, #tpu.memory_space<vmem>>, vector<8x32xf32>,
      %cst_525 = arith.constant 0.000000e+00 : f32
      %1082 = vector.broadcast %cst_525 : f32 to vector<8x32xf32>
      %c0_526 = arith.constant 0 : index
      %c0_527 = arith.constant 0 : index
      %1083 = vector.load %arg16[%c0_526, %c0_527] : memref<8x32xf32, #tpu.memory_space<vmem>>, vector<8x32xf32>
      tpu.vector_store %arg16[%c0_526, %c0_527], %1082 {strides = array<i32>} : memref<8x32xf32, #tpu.memory_space<vmem>>, vector<8x32xf32>,
    } else {
    }
    %c0 = arith.constant 0 : index
    %c0_1 = arith.constant 0 : index
    %3 = vector.load %arg1[%c0, %c0_1] : memref<128x16xf32, #tpu.memory_space<vmem>>, vector<128x16xf32>
    %c0_2 = arith.constant 0 : index
    %c0_3 = arith.constant 0 : index
    %4 = vector.load %arg3[%c0_2, %c0_3] : memref<16x128xf32, #tpu.memory_space<vmem>>, vector<16x128xf32>
    %cst = arith.constant dense<0.000000e+00> : vector<128x128xf32>
    %5 = tpu.matmul %3, %4, %cst {dimension_numbers = #tpu.dot_dimension_numbers<[1], [0], [0], [1], [0, 0, 1, 1], [], []>} : vector<128x16xf32>, vector<16x128xf32>, vector<128x128xf32> -> vector<128x128xf32>
    %c0_4 = arith.constant 0 : index
    %c0_5 = arith.constant 0 : index
    %6 = vector.load %arg4[%c0_4, %c0_5] : memref<1x128xf32, #tpu.memory_space<vmem>>, vector<1x128xf32>
    %7 = vector.broadcast %6 : vector<1x128xf32> to vector<128x128xf32>
    %8 = arith.addf %5, %7 : vector<128x128xf32>
    %c0_6 = arith.constant 0 : index
    %c0_7 = arith.constant 0 : index
    %9 = vector.load %arg17[%c0_6, %c0_7] : memref<128x128xf32, #tpu.memory_space<vmem>>, vector<128x128xf32>
    tpu.vector_store %arg17[%c0_6, %c0_7], %8 {strides = array<i32>} : memref<128x128xf32, #tpu.memory_space<vmem>>, vector<128x128xf32>,
    %c0_8 = arith.constant 0 : index
    %c0_9 = arith.constant 0 : index
    %10 = vector.load %arg2[%c0_8, %c0_9] : memref<128x16xf32, #tpu.memory_space<vmem>>, vector<128x16xf32>
    %c0_10 = arith.constant 0 : index
    %c0_11 = arith.constant 0 : index
    %11 = vector.load %arg5[%c0_10, %c0_11] : memref<16x128xf32, #tpu.memory_space<vmem>>, vector<16x128xf32>
    %cst_12 = arith.constant dense<0.000000e+00> : vector<128x128xf32>
    %12 = tpu.matmul %10, %11, %cst_12 {dimension_numbers = #tpu.dot_dimension_numbers<[1], [0], [0], [1], [0, 0, 1, 1], [], []>} : vector<128x16xf32>, vector<16x128xf32>, vector<128x128xf32> -> vector<128x128xf32>
    %c0_13 = arith.constant 0 : index
    %c0_14 = arith.constant 0 : index
    %13 = vector.load %arg6[%c0_13, %c0_14] : memref<1x128xf32, #tpu.memory_space<vmem>>, vector<1x128xf32>
    %14 = vector.broadcast %13 : vector<1x128xf32> to vector<128x128xf32>
    %15 = arith.addf %12, %14 : vector<128x128xf32>
    %c0_15 = arith.constant 0 : index
    %c0_16 = arith.constant 0 : index
    %16 = vector.load %arg18[%c0_15, %c0_16] : memref<128x128xf32, #tpu.memory_space<vmem>>, vector<128x128xf32>
    tpu.vector_store %arg18[%c0_15, %c0_16], %15 {strides = array<i32>} : memref<128x128xf32, #tpu.memory_space<vmem>>, vector<128x128xf32>,
    %c0_17 = arith.constant 0 : index
    %c0_18 = arith.constant 0 : index
    %17 = vector.load %arg17[%c0_17, %c0_18] : memref<128x128xf32, #tpu.memory_space<vmem>>, vector<8x128xf32>
    %c0_19 = arith.constant 0 : index
    %c0_20 = arith.constant 0 : index
    %18 = vector.load %arg13[%c0_19, %c0_20] : memref<8x32xf32, #tpu.memory_space<vmem>>, vector<8x32xf32>
    %c0_21 = arith.constant 0 : index
    %c0_22 = arith.constant 0 : index
    %19 = vector.load %arg7[%c0_21, %c0_22] : memref<32x128xf32, #tpu.memory_space<vmem>>, vector<32x128xf32>
    %cst_23 = arith.constant dense<0.000000e+00> : vector<8x128xf32>
    %20 = tpu.matmul %18, %19, %cst_23 {dimension_numbers = #tpu.dot_dimension_numbers<[1], [0], [0], [1], [0, 0, 1, 1], [], []>} : vector<8x32xf32>, vector<32x128xf32>, vector<8x128xf32> -> vector<8x128xf32>
    %21 = arith.addf %17, %20 : vector<8x128xf32>
    %22 = vector.extract_strided_slice %21 {offsets = [0, 0], sizes = [8, 32], strides = [1, 1]} : vector<8x128xf32> to vector<8x32xf32>
    %23 = arith.negf %22 : vector<8x32xf32>
    %24 = math.exp %23 : vector<8x32xf32>
    %cst_24 = arith.constant 1.000000e+00 : f32
    %25 = vector.broadcast %cst_24 : f32 to vector<8x32xf32>
    %26 = arith.addf %25, %24 : vector<8x32xf32>
    %27 = arith.divf %25, %26 : vector<8x32xf32>
    %28 = vector.extract_strided_slice %21 {offsets = [0, 32], sizes = [8, 32], strides = [1, 1]} : vector<8x128xf32> to vector<8x32xf32>
    %29 = arith.negf %28 : vector<8x32xf32>
    %30 = math.exp %29 : vector<8x32xf32>
    %cst_25 = arith.constant 1.000000e+00 : f32
    %31 = vector.broadcast %cst_25 : f32 to vector<8x32xf32>
    %32 = arith.addf %31, %30 : vector<8x32xf32>
    %33 = arith.divf %31, %32 : vector<8x32xf32>
    %34 = vector.extract_strided_slice %21 {offsets = [0, 64], sizes = [8, 32], strides = [1, 1]} : vector<8x128xf32> to vector<8x32xf32>
    %35 = math.tanh %34 : vector<8x32xf32>
    %36 = vector.extract_strided_slice %21 {offsets = [0, 96], sizes = [8, 32], strides = [1, 1]} : vector<8x128xf32> to vector<8x32xf32>
    %37 = arith.negf %36 : vector<8x32xf32>
    %38 = math.exp %37 : vector<8x32xf32>
    %cst_26 = arith.constant 1.000000e+00 : f32
    %39 = vector.broadcast %cst_26 : f32 to vector<8x32xf32>
    %40 = arith.addf %39, %38 : vector<8x32xf32>
    %41 = arith.divf %39, %40 : vector<8x32xf32>
    %c0_27 = arith.constant 0 : index
    %c0_28 = arith.constant 0 : index
    %42 = vector.load %arg14[%c0_27, %c0_28] : memref<8x32xf32, #tpu.memory_space<vmem>>, vector<8x32xf32>
    %43 = arith.mulf %33, %42 : vector<8x32xf32>
    %44 = arith.mulf %27, %35 : vector<8x32xf32>
    %45 = arith.addf %43, %44 : vector<8x32xf32>
    %c0_29 = arith.constant 0 : index
    %c0_30 = arith.constant 0 : index
    %46 = vector.load %arg14[%c0_29, %c0_30] : memref<8x32xf32, #tpu.memory_space<vmem>>, vector<8x32xf32>
    tpu.vector_store %arg14[%c0_29, %c0_30], %45 {strides = array<i32>} : memref<8x32xf32, #tpu.memory_space<vmem>>, vector<8x32xf32>,
    %47 = math.tanh %45 : vector<8x32xf32>
    %48 = arith.mulf %41, %47 : vector<8x32xf32>
    %c0_31 = arith.constant 0 : index
    %c0_32 = arith.constant 0 : index
    %49 = vector.load %arg13[%c0_31, %c0_32] : memref<8x32xf32, #tpu.memory_space<vmem>>, vector<8x32xf32>
    tpu.vector_store %arg13[%c0_31, %c0_32], %48 {strides = array<i32>} : memref<8x32xf32, #tpu.memory_space<vmem>>, vector<8x32xf32>,
    %c120 = arith.constant 120 : index
    %c0_33 = arith.constant 0 : index
    %50 = vector.load %arg18[%c120, %c0_33] : memref<128x128xf32, #tpu.memory_space<vmem>>, vector<8x128xf32>
    %c0_34 = arith.constant 0 : index
    %c0_35 = arith.constant 0 : index
    %51 = vector.load %arg15[%c0_34, %c0_35] : memref<8x32xf32, #tpu.memory_space<vmem>>, vector<8x32xf32>
    %c0_36 = arith.constant 0 : index
    %c0_37 = arith.constant 0 : index
    %52 = vector.load %arg8[%c0_36, %c0_37] : memref<32x128xf32, #tpu.memory_space<vmem>>, vector<32x128xf32>
    %cst_38 = arith.constant dense<0.000000e+00> : vector<8x128xf32>
    %53 = tpu.matmul %51, %52, %cst_38 {dimension_numbers = #tpu.dot_dimension_numbers<[1], [0], [0], [1], [0, 0, 1, 1], [], []>} : vector<8x32xf32>, vector<32x128xf32>, vector<8x128xf32> -> vector<8x128xf32>
    %54 = arith.addf %50, %53 : vector<8x128xf32>
    %55 = vector.extract_strided_slice %54 {offsets = [0, 0], sizes = [8, 32], strides = [1, 1]} : vector<8x128xf32> to vector<8x32xf32>
    %56 = arith.negf %55 : vector<8x32xf32>
    %57 = math.exp %56 : vector<8x32xf32>
    %cst_39 = arith.constant 1.000000e+00 : f32
    %58 = vector.broadcast %cst_39 : f32 to vector<8x32xf32>
    %59 = arith.addf %58, %57 : vector<8x32xf32>
    %60 = arith.divf %58, %59 : vector<8x32xf32>
    %61 = vector.extract_strided_slice %54 {offsets = [0, 32], sizes = [8, 32], strides = [1, 1]} : vector<8x128xf32> to vector<8x32xf32>
    %62 = arith.negf %61 : vector<8x32xf32>
    %63 = math.exp %62 : vector<8x32xf32>
    %cst_40 = arith.constant 1.000000e+00 : f32
    %64 = vector.broadcast %cst_40 : f32 to vector<8x32xf32>
    %65 = arith.addf %64, %63 : vector<8x32xf32>
    %66 = arith.divf %64, %65 : vector<8x32xf32>
    %67 = vector.extract_strided_slice %54 {offsets = [0, 64], sizes = [8, 32], strides = [1, 1]} : vector<8x128xf32> to vector<8x32xf32>
    %68 = math.tanh %67 : vector<8x32xf32>
    %69 = vector.extract_strided_slice %54 {offsets = [0, 96], sizes = [8, 32], strides = [1, 1]} : vector<8x128xf32> to vector<8x32xf32>
    %70 = arith.negf %69 : vector<8x32xf32>
    %71 = math.exp %70 : vector<8x32xf32>
    %cst_41 = arith.constant 1.000000e+00 : f32
    %72 = vector.broadcast %cst_41 : f32 to vector<8x32xf32>
    %73 = arith.addf %72, %71 : vector<8x32xf32>
    %74 = arith.divf %72, %73 : vector<8x32xf32>
    %c0_42 = arith.constant 0 : index
    %c0_43 = arith.constant 0 : index
    %75 = vector.load %arg16[%c0_42, %c0_43] : memref<8x32xf32, #tpu.memory_space<vmem>>, vector<8x32xf32>
    %76 = arith.mulf %66, %75 : vector<8x32xf32>
    %77 = arith.mulf %60, %68 : vector<8x32xf32>
    %78 = arith.addf %76, %77 : vector<8x32xf32>
    %c0_44 = arith.constant 0 : index
    %c0_45 = arith.constant 0 : index
    %79 = vector.load %arg16[%c0_44, %c0_45] : memref<8x32xf32, #tpu.memory_space<vmem>>, vector<8x32xf32>
    tpu.vector_store %arg16[%c0_44, %c0_45], %78 {strides = array<i32>} : memref<8x32xf32, #tpu.memory_space<vmem>>, vector<8x32xf32>,
    %80 = math.tanh %78 : vector<8x32xf32>
    %81 = arith.mulf %74, %80 : vector<8x32xf32>
    %c0_46 = arith.constant 0 : index
    %c0_47 = arith.constant 0 : index
    %82 = vector.load %arg15[%c0_46, %c0_47] : memref<8x32xf32, #tpu.memory_space<vmem>>, vector<8x32xf32>
    tpu.vector_store %arg15[%c0_46, %c0_47], %81 {strides = array<i32>} : memref<8x32xf32, #tpu.memory_space<vmem>>, vector<8x32xf32>,
    %c8 = arith.constant 8 : index
    %c0_48 = arith.constant 0 : index
    %83 = vector.load %arg17[%c8, %c0_48] : memref<128x128xf32, #tpu.memory_space<vmem>>, vector<8x128xf32>
    %c0_49 = arith.constant 0 : index
    %c0_50 = arith.constant 0 : index
    %84 = vector.load %arg13[%c0_49, %c0_50] : memref<8x32xf32, #tpu.memory_space<vmem>>, vector<8x32xf32>
    %c0_51 = arith.constant 0 : index
    %c0_52 = arith.constant 0 : index
    %85 = vector.load %arg7[%c0_51, %c0_52] : memref<32x128xf32, #tpu.memory_space<vmem>>, vector<32x128xf32>
    %cst_53 = arith.constant dense<0.000000e+00> : vector<8x128xf32>
    %86 = tpu.matmul %84, %85, %cst_53 {dimension_numbers = #tpu.dot_dimension_numbers<[1], [0], [0], [1], [0, 0, 1, 1], [], []>} : vector<8x32xf32>, vector<32x128xf32>, vector<8x128xf32> -> vector<8x128xf32>
    %87 = arith.addf %83, %86 : vector<8x128xf32>
    %88 = vector.extract_strided_slice %87 {offsets = [0, 0], sizes = [8, 32], strides = [1, 1]} : vector<8x128xf32> to vector<8x32xf32>
    %89 = arith.negf %88 : vector<8x32xf32>
    %90 = math.exp %89 : vector<8x32xf32>
    %cst_54 = arith.constant 1.000000e+00 : f32
    %91 = vector.broadcast %cst_54 : f32 to vector<8x32xf32>
    %92 = arith.addf %91, %90 : vector<8x32xf32>
    %93 = arith.divf %91, %92 : vector<8x32xf32>
    %94 = vector.extract_strided_slice %87 {offsets = [0, 32], sizes = [8, 32], strides = [1, 1]} : vector<8x128xf32> to vector<8x32xf32>
    %95 = arith.negf %94 : vector<8x32xf32>
    %96 = math.exp %95 : vector<8x32xf32>
    %cst_55 = arith.constant 1.000000e+00 : f32
    %97 = vector.broadcast %cst_55 : f32 to vector<8x32xf32>
    %98 = arith.addf %97, %96 : vector<8x32xf32>
    %99 = arith.divf %97, %98 : vector<8x32xf32>
    %100 = vector.extract_strided_slice %87 {offsets = [0, 64], sizes = [8, 32], strides = [1, 1]} : vector<8x128xf32> to vector<8x32xf32>
    %101 = math.tanh %100 : vector<8x32xf32>
    %102 = vector.extract_strided_slice %87 {offsets = [0, 96], sizes = [8, 32], strides = [1, 1]} : vector<8x128xf32> to vector<8x32xf32>
    %103 = arith.negf %102 : vector<8x32xf32>
    %104 = math.exp %103 : vector<8x32xf32>
    %cst_56 = arith.constant 1.000000e+00 : f32
    %105 = vector.broadcast %cst_56 : f32 to vector<8x32xf32>
    %106 = arith.addf %105, %104 : vector<8x32xf32>
    %107 = arith.divf %105, %106 : vector<8x32xf32>
    %c0_57 = arith.constant 0 : index
    %c0_58 = arith.constant 0 : index
    %108 = vector.load %arg14[%c0_57, %c0_58] : memref<8x32xf32, #tpu.memory_space<vmem>>, vector<8x32xf32>
    %109 = arith.mulf %99, %108 : vector<8x32xf32>
    %110 = arith.mulf %93, %101 : vector<8x32xf32>
    %111 = arith.addf %109, %110 : vector<8x32xf32>
    %c0_59 = arith.constant 0 : index
    %c0_60 = arith.constant 0 : index
    %112 = vector.load %arg14[%c0_59, %c0_60] : memref<8x32xf32, #tpu.memory_space<vmem>>, vector<8x32xf32>
    tpu.vector_store %arg14[%c0_59, %c0_60], %111 {strides = array<i32>} : memref<8x32xf32, #tpu.memory_space<vmem>>, vector<8x32xf32>,
    %113 = math.tanh %111 : vector<8x32xf32>
    %114 = arith.mulf %107, %113 : vector<8x32xf32>
    %c0_61 = arith.constant 0 : index
    %c0_62 = arith.constant 0 : index
    %115 = vector.load %arg13[%c0_61, %c0_62] : memref<8x32xf32, #tpu.memory_space<vmem>>, vector<8x32xf32>
    tpu.vector_store %arg13[%c0_61, %c0_62], %114 {strides = array<i32>} : memref<8x32xf32, #tpu.memory_space<vmem>>, vector<8x32xf32>,
    %c112 = arith.constant 112 : index
    %c0_63 = arith.constant 0 : index
    %116 = vector.load %arg18[%c112, %c0_63] : memref<128x128xf32, #tpu.memory_space<vmem>>, vector<8x128xf32>
    %c0_64 = arith.constant 0 : index
    %c0_65 = arith.constant 0 : index
    %117 = vector.load %arg15[%c0_64, %c0_65] : memref<8x32xf32, #tpu.memory_space<vmem>>, vector<8x32xf32>
    %c0_66 = arith.constant 0 : index
    %c0_67 = arith.constant 0 : index
    %118 = vector.load %arg8[%c0_66, %c0_67] : memref<32x128xf32, #tpu.memory_space<vmem>>, vector<32x128xf32>
    %cst_68 = arith.constant dense<0.000000e+00> : vector<8x128xf32>
    %119 = tpu.matmul %117, %118, %cst_68 {dimension_numbers = #tpu.dot_dimension_numbers<[1], [0], [0], [1], [0, 0, 1, 1], [], []>} : vector<8x32xf32>, vector<32x128xf32>, vector<8x128xf32> -> vector<8x128xf32>
    %120 = arith.addf %116, %119 : vector<8x128xf32>
    %121 = vector.extract_strided_slice %120 {offsets = [0, 0], sizes = [8, 32], strides = [1, 1]} : vector<8x128xf32> to vector<8x32xf32>
    %122 = arith.negf %121 : vector<8x32xf32>
    %123 = math.exp %122 : vector<8x32xf32>
    %cst_69 = arith.constant 1.000000e+00 : f32
    %124 = vector.broadcast %cst_69 : f32 to vector<8x32xf32>
    %125 = arith.addf %124, %123 : vector<8x32xf32>
    %126 = arith.divf %124, %125 : vector<8x32xf32>
    %127 = vector.extract_strided_slice %120 {offsets = [0, 32], sizes = [8, 32], strides = [1, 1]} : vector<8x128xf32> to vector<8x32xf32>
    %128 = arith.negf %127 : vector<8x32xf32>
    %129 = math.exp %128 : vector<8x32xf32>
    %cst_70 = arith.constant 1.000000e+00 : f32
    %130 = vector.broadcast %cst_70 : f32 to vector<8x32xf32>
    %131 = arith.addf %130, %129 : vector<8x32xf32>
    %132 = arith.divf %130, %131 : vector<8x32xf32>
    %133 = vector.extract_strided_slice %120 {offsets = [0, 64], sizes = [8, 32], strides = [1, 1]} : vector<8x128xf32> to vector<8x32xf32>
    %134 = math.tanh %133 : vector<8x32xf32>
    %135 = vector.extract_strided_slice %120 {offsets = [0, 96], sizes = [8, 32], strides = [1, 1]} : vector<8x128xf32> to vector<8x32xf32>
    %136 = arith.negf %135 : vector<8x32xf32>
    %137 = math.exp %136 : vector<8x32xf32>
    %cst_71 = arith.constant 1.000000e+00 : f32
    %138 = vector.broadcast %cst_71 : f32 to vector<8x32xf32>
    %139 = arith.addf %138, %137 : vector<8x32xf32>
    %140 = arith.divf %138, %139 : vector<8x32xf32>
    %c0_72 = arith.constant 0 : index
    %c0_73 = arith.constant 0 : index
    %141 = vector.load %arg16[%c0_72, %c0_73] : memref<8x32xf32, #tpu.memory_space<vmem>>, vector<8x32xf32>
    %142 = arith.mulf %132, %141 : vector<8x32xf32>
    %143 = arith.mulf %126, %134 : vector<8x32xf32>
    %144 = arith.addf %142, %143 : vector<8x32xf32>
    %c0_74 = arith.constant 0 : index
    %c0_75 = arith.constant 0 : index
    %145 = vector.load %arg16[%c0_74, %c0_75] : memref<8x32xf32, #tpu.memory_space<vmem>>, vector<8x32xf32>
    tpu.vector_store %arg16[%c0_74, %c0_75], %144 {strides = array<i32>} : memref<8x32xf32, #tpu.memory_space<vmem>>, vector<8x32xf32>,
    %146 = math.tanh %144 : vector<8x32xf32>
    %147 = arith.mulf %140, %146 : vector<8x32xf32>
    %c0_76 = arith.constant 0 : index
    %c0_77 = arith.constant 0 : index
    %148 = vector.load %arg15[%c0_76, %c0_77] : memref<8x32xf32, #tpu.memory_space<vmem>>, vector<8x32xf32>
    tpu.vector_store %arg15[%c0_76, %c0_77], %147 {strides = array<i32>} : memref<8x32xf32, #tpu.memory_space<vmem>>, vector<8x32xf32>,
    %c16 = arith.constant 16 : index
    %c0_78 = arith.constant 0 : index
    %149 = vector.load %arg17[%c16, %c0_78] : memref<128x128xf32, #tpu.memory_space<vmem>>, vector<8x128xf32>
    %c0_79 = arith.constant 0 : index
    %c0_80 = arith.constant 0 : index
    %150 = vector.load %arg13[%c0_79, %c0_80] : memref<8x32xf32, #tpu.memory_space<vmem>>, vector<8x32xf32>
    %c0_81 = arith.constant 0 : index
    %c0_82 = arith.constant 0 : index
    %151 = vector.load %arg7[%c0_81, %c0_82] : memref<32x128xf32, #tpu.memory_space<vmem>>, vector<32x128xf32>
    %cst_83 = arith.constant dense<0.000000e+00> : vector<8x128xf32>
    %152 = tpu.matmul %150, %151, %cst_83 {dimension_numbers = #tpu.dot_dimension_numbers<[1], [0], [0], [1], [0, 0, 1, 1], [], []>} : vector<8x32xf32>, vector<32x128xf32>, vector<8x128xf32> -> vector<8x128xf32>
    %153 = arith.addf %149, %152 : vector<8x128xf32>
    %154 = vector.extract_strided_slice %153 {offsets = [0, 0], sizes = [8, 32], strides = [1, 1]} : vector<8x128xf32> to vector<8x32xf32>
    %155 = arith.negf %154 : vector<8x32xf32>
    %156 = math.exp %155 : vector<8x32xf32>
    %cst_84 = arith.constant 1.000000e+00 : f32
    %157 = vector.broadcast %cst_84 : f32 to vector<8x32xf32>
    %158 = arith.addf %157, %156 : vector<8x32xf32>
    %159 = arith.divf %157, %158 : vector<8x32xf32>
    %160 = vector.extract_strided_slice %153 {offsets = [0, 32], sizes = [8, 32], strides = [1, 1]} : vector<8x128xf32> to vector<8x32xf32>
    %161 = arith.negf %160 : vector<8x32xf32>
    %162 = math.exp %161 : vector<8x32xf32>
    %cst_85 = arith.constant 1.000000e+00 : f32
    %163 = vector.broadcast %cst_85 : f32 to vector<8x32xf32>
    %164 = arith.addf %163, %162 : vector<8x32xf32>
    %165 = arith.divf %163, %164 : vector<8x32xf32>
    %166 = vector.extract_strided_slice %153 {offsets = [0, 64], sizes = [8, 32], strides = [1, 1]} : vector<8x128xf32> to vector<8x32xf32>
    %167 = math.tanh %166 : vector<8x32xf32>
    %168 = vector.extract_strided_slice %153 {offsets = [0, 96], sizes = [8, 32], strides = [1, 1]} : vector<8x128xf32> to vector<8x32xf32>
    %169 = arith.negf %168 : vector<8x32xf32>
    %170 = math.exp %169 : vector<8x32xf32>
    %cst_86 = arith.constant 1.000000e+00 : f32
    %171 = vector.broadcast %cst_86 : f32 to vector<8x32xf32>
    %172 = arith.addf %171, %170 : vector<8x32xf32>
    %173 = arith.divf %171, %172 : vector<8x32xf32>
    %c0_87 = arith.constant 0 : index
    %c0_88 = arith.constant 0 : index
    %174 = vector.load %arg14[%c0_87, %c0_88] : memref<8x32xf32, #tpu.memory_space<vmem>>, vector<8x32xf32>
    %175 = arith.mulf %165, %174 : vector<8x32xf32>
    %176 = arith.mulf %159, %167 : vector<8x32xf32>
    %177 = arith.addf %175, %176 : vector<8x32xf32>
    %c0_89 = arith.constant 0 : index
    %c0_90 = arith.constant 0 : index
    %178 = vector.load %arg14[%c0_89, %c0_90] : memref<8x32xf32, #tpu.memory_space<vmem>>, vector<8x32xf32>
    tpu.vector_store %arg14[%c0_89, %c0_90], %177 {strides = array<i32>} : memref<8x32xf32, #tpu.memory_space<vmem>>, vector<8x32xf32>,
    %179 = math.tanh %177 : vector<8x32xf32>
    %180 = arith.mulf %173, %179 : vector<8x32xf32>
    %c0_91 = arith.constant 0 : index
    %c0_92 = arith.constant 0 : index
    %181 = vector.load %arg13[%c0_91, %c0_92] : memref<8x32xf32, #tpu.memory_space<vmem>>, vector<8x32xf32>
    tpu.vector_store %arg13[%c0_91, %c0_92], %180 {strides = array<i32>} : memref<8x32xf32, #tpu.memory_space<vmem>>, vector<8x32xf32>,
    %c104 = arith.constant 104 : index
    %c0_93 = arith.constant 0 : index
    %182 = vector.load %arg18[%c104, %c0_93] : memref<128x128xf32, #tpu.memory_space<vmem>>, vector<8x128xf32>
    %c0_94 = arith.constant 0 : index
    %c0_95 = arith.constant 0 : index
    %183 = vector.load %arg15[%c0_94, %c0_95] : memref<8x32xf32, #tpu.memory_space<vmem>>, vector<8x32xf32>
    %c0_96 = arith.constant 0 : index
    %c0_97 = arith.constant 0 : index
    %184 = vector.load %arg8[%c0_96, %c0_97] : memref<32x128xf32, #tpu.memory_space<vmem>>, vector<32x128xf32>
    %cst_98 = arith.constant dense<0.000000e+00> : vector<8x128xf32>
    %185 = tpu.matmul %183, %184, %cst_98 {dimension_numbers = #tpu.dot_dimension_numbers<[1], [0], [0], [1], [0, 0, 1, 1], [], []>} : vector<8x32xf32>, vector<32x128xf32>, vector<8x128xf32> -> vector<8x128xf32>
    %186 = arith.addf %182, %185 : vector<8x128xf32>
    %187 = vector.extract_strided_slice %186 {offsets = [0, 0], sizes = [8, 32], strides = [1, 1]} : vector<8x128xf32> to vector<8x32xf32>
    %188 = arith.negf %187 : vector<8x32xf32>
    %189 = math.exp %188 : vector<8x32xf32>
    %cst_99 = arith.constant 1.000000e+00 : f32
    %190 = vector.broadcast %cst_99 : f32 to vector<8x32xf32>
    %191 = arith.addf %190, %189 : vector<8x32xf32>
    %192 = arith.divf %190, %191 : vector<8x32xf32>
    %193 = vector.extract_strided_slice %186 {offsets = [0, 32], sizes = [8, 32], strides = [1, 1]} : vector<8x128xf32> to vector<8x32xf32>
    %194 = arith.negf %193 : vector<8x32xf32>
    %195 = math.exp %194 : vector<8x32xf32>
    %cst_100 = arith.constant 1.000000e+00 : f32
    %196 = vector.broadcast %cst_100 : f32 to vector<8x32xf32>
    %197 = arith.addf %196, %195 : vector<8x32xf32>
    %198 = arith.divf %196, %197 : vector<8x32xf32>
    %199 = vector.extract_strided_slice %186 {offsets = [0, 64], sizes = [8, 32], strides = [1, 1]} : vector<8x128xf32> to vector<8x32xf32>
    %200 = math.tanh %199 : vector<8x32xf32>
    %201 = vector.extract_strided_slice %186 {offsets = [0, 96], sizes = [8, 32], strides = [1, 1]} : vector<8x128xf32> to vector<8x32xf32>
    %202 = arith.negf %201 : vector<8x32xf32>
    %203 = math.exp %202 : vector<8x32xf32>
    %cst_101 = arith.constant 1.000000e+00 : f32
    %204 = vector.broadcast %cst_101 : f32 to vector<8x32xf32>
    %205 = arith.addf %204, %203 : vector<8x32xf32>
    %206 = arith.divf %204, %205 : vector<8x32xf32>
    %c0_102 = arith.constant 0 : index
    %c0_103 = arith.constant 0 : index
    %207 = vector.load %arg16[%c0_102, %c0_103] : memref<8x32xf32, #tpu.memory_space<vmem>>, vector<8x32xf32>
    %208 = arith.mulf %198, %207 : vector<8x32xf32>
    %209 = arith.mulf %192, %200 : vector<8x32xf32>
    %210 = arith.addf %208, %209 : vector<8x32xf32>
    %c0_104 = arith.constant 0 : index
    %c0_105 = arith.constant 0 : index
    %211 = vector.load %arg16[%c0_104, %c0_105] : memref<8x32xf32, #tpu.memory_space<vmem>>, vector<8x32xf32>
    tpu.vector_store %arg16[%c0_104, %c0_105], %210 {strides = array<i32>} : memref<8x32xf32, #tpu.memory_space<vmem>>, vector<8x32xf32>,
    %212 = math.tanh %210 : vector<8x32xf32>
    %213 = arith.mulf %206, %212 : vector<8x32xf32>
    %c0_106 = arith.constant 0 : index
    %c0_107 = arith.constant 0 : index
    %214 = vector.load %arg15[%c0_106, %c0_107] : memref<8x32xf32, #tpu.memory_space<vmem>>, vector<8x32xf32>
    tpu.vector_store %arg15[%c0_106, %c0_107], %213 {strides = array<i32>} : memref<8x32xf32, #tpu.memory_space<vmem>>, vector<8x32xf32>,
    %c24 = arith.constant 24 : index
    %c0_108 = arith.constant 0 : index
    %215 = vector.load %arg17[%c24, %c0_108] : memref<128x128xf32, #tpu.memory_space<vmem>>, vector<8x128xf32>
    %c0_109 = arith.constant 0 : index
    %c0_110 = arith.constant 0 : index
    %216 = vector.load %arg13[%c0_109, %c0_110] : memref<8x32xf32, #tpu.memory_space<vmem>>, vector<8x32xf32>
    %c0_111 = arith.constant 0 : index
    %c0_112 = arith.constant 0 : index
    %217 = vector.load %arg7[%c0_111, %c0_112] : memref<32x128xf32, #tpu.memory_space<vmem>>, vector<32x128xf32>
    %cst_113 = arith.constant dense<0.000000e+00> : vector<8x128xf32>
    %218 = tpu.matmul %216, %217, %cst_113 {dimension_numbers = #tpu.dot_dimension_numbers<[1], [0], [0], [1], [0, 0, 1, 1], [], []>} : vector<8x32xf32>, vector<32x128xf32>, vector<8x128xf32> -> vector<8x128xf32>
    %219 = arith.addf %215, %218 : vector<8x128xf32>
    %220 = vector.extract_strided_slice %219 {offsets = [0, 0], sizes = [8, 32], strides = [1, 1]} : vector<8x128xf32> to vector<8x32xf32>
    %221 = arith.negf %220 : vector<8x32xf32>
    %222 = math.exp %221 : vector<8x32xf32>
    %cst_114 = arith.constant 1.000000e+00 : f32
    %223 = vector.broadcast %cst_114 : f32 to vector<8x32xf32>
    %224 = arith.addf %223, %222 : vector<8x32xf32>
    %225 = arith.divf %223, %224 : vector<8x32xf32>
    %226 = vector.extract_strided_slice %219 {offsets = [0, 32], sizes = [8, 32], strides = [1, 1]} : vector<8x128xf32> to vector<8x32xf32>
    %227 = arith.negf %226 : vector<8x32xf32>
    %228 = math.exp %227 : vector<8x32xf32>
    %cst_115 = arith.constant 1.000000e+00 : f32
    %229 = vector.broadcast %cst_115 : f32 to vector<8x32xf32>
    %230 = arith.addf %229, %228 : vector<8x32xf32>
    %231 = arith.divf %229, %230 : vector<8x32xf32>
    %232 = vector.extract_strided_slice %219 {offsets = [0, 64], sizes = [8, 32], strides = [1, 1]} : vector<8x128xf32> to vector<8x32xf32>
    %233 = math.tanh %232 : vector<8x32xf32>
    %234 = vector.extract_strided_slice %219 {offsets = [0, 96], sizes = [8, 32], strides = [1, 1]} : vector<8x128xf32> to vector<8x32xf32>
    %235 = arith.negf %234 : vector<8x32xf32>
    %236 = math.exp %235 : vector<8x32xf32>
    %cst_116 = arith.constant 1.000000e+00 : f32
    %237 = vector.broadcast %cst_116 : f32 to vector<8x32xf32>
    %238 = arith.addf %237, %236 : vector<8x32xf32>
    %239 = arith.divf %237, %238 : vector<8x32xf32>
    %c0_117 = arith.constant 0 : index
    %c0_118 = arith.constant 0 : index
    %240 = vector.load %arg14[%c0_117, %c0_118] : memref<8x32xf32, #tpu.memory_space<vmem>>, vector<8x32xf32>
    %241 = arith.mulf %231, %240 : vector<8x32xf32>
    %242 = arith.mulf %225, %233 : vector<8x32xf32>
    %243 = arith.addf %241, %242 : vector<8x32xf32>
    %c0_119 = arith.constant 0 : index
    %c0_120 = arith.constant 0 : index
    %244 = vector.load %arg14[%c0_119, %c0_120] : memref<8x32xf32, #tpu.memory_space<vmem>>, vector<8x32xf32>
    tpu.vector_store %arg14[%c0_119, %c0_120], %243 {strides = array<i32>} : memref<8x32xf32, #tpu.memory_space<vmem>>, vector<8x32xf32>,
    %245 = math.tanh %243 : vector<8x32xf32>
    %246 = arith.mulf %239, %245 : vector<8x32xf32>
    %c0_121 = arith.constant 0 : index
    %c0_122 = arith.constant 0 : index
    %247 = vector.load %arg13[%c0_121, %c0_122] : memref<8x32xf32, #tpu.memory_space<vmem>>, vector<8x32xf32>
    tpu.vector_store %arg13[%c0_121, %c0_122], %246 {strides = array<i32>} : memref<8x32xf32, #tpu.memory_space<vmem>>, vector<8x32xf32>,
    %c96 = arith.constant 96 : index
    %c0_123 = arith.constant 0 : index
    %248 = vector.load %arg18[%c96, %c0_123] : memref<128x128xf32, #tpu.memory_space<vmem>>, vector<8x128xf32>
    %c0_124 = arith.constant 0 : index
    %c0_125 = arith.constant 0 : index
    %249 = vector.load %arg15[%c0_124, %c0_125] : memref<8x32xf32, #tpu.memory_space<vmem>>, vector<8x32xf32>
    %c0_126 = arith.constant 0 : index
    %c0_127 = arith.constant 0 : index
    %250 = vector.load %arg8[%c0_126, %c0_127] : memref<32x128xf32, #tpu.memory_space<vmem>>, vector<32x128xf32>
    %cst_128 = arith.constant dense<0.000000e+00> : vector<8x128xf32>
    %251 = tpu.matmul %249, %250, %cst_128 {dimension_numbers = #tpu.dot_dimension_numbers<[1], [0], [0], [1], [0, 0, 1, 1], [], []>} : vector<8x32xf32>, vector<32x128xf32>, vector<8x128xf32> -> vector<8x128xf32>
    %252 = arith.addf %248, %251 : vector<8x128xf32>
    %253 = vector.extract_strided_slice %252 {offsets = [0, 0], sizes = [8, 32], strides = [1, 1]} : vector<8x128xf32> to vector<8x32xf32>
    %254 = arith.negf %253 : vector<8x32xf32>
    %255 = math.exp %254 : vector<8x32xf32>
    %cst_129 = arith.constant 1.000000e+00 : f32
    %256 = vector.broadcast %cst_129 : f32 to vector<8x32xf32>
    %257 = arith.addf %256, %255 : vector<8x32xf32>
    %258 = arith.divf %256, %257 : vector<8x32xf32>
    %259 = vector.extract_strided_slice %252 {offsets = [0, 32], sizes = [8, 32], strides = [1, 1]} : vector<8x128xf32> to vector<8x32xf32>
    %260 = arith.negf %259 : vector<8x32xf32>
    %261 = math.exp %260 : vector<8x32xf32>
    %cst_130 = arith.constant 1.000000e+00 : f32
    %262 = vector.broadcast %cst_130 : f32 to vector<8x32xf32>
    %263 = arith.addf %262, %261 : vector<8x32xf32>
    %264 = arith.divf %262, %263 : vector<8x32xf32>
    %265 = vector.extract_strided_slice %252 {offsets = [0, 64], sizes = [8, 32], strides = [1, 1]} : vector<8x128xf32> to vector<8x32xf32>
    %266 = math.tanh %265 : vector<8x32xf32>
    %267 = vector.extract_strided_slice %252 {offsets = [0, 96], sizes = [8, 32], strides = [1, 1]} : vector<8x128xf32> to vector<8x32xf32>
    %268 = arith.negf %267 : vector<8x32xf32>
    %269 = math.exp %268 : vector<8x32xf32>
    %cst_131 = arith.constant 1.000000e+00 : f32
    %270 = vector.broadcast %cst_131 : f32 to vector<8x32xf32>
    %271 = arith.addf %270, %269 : vector<8x32xf32>
    %272 = arith.divf %270, %271 : vector<8x32xf32>
    %c0_132 = arith.constant 0 : index
    %c0_133 = arith.constant 0 : index
    %273 = vector.load %arg16[%c0_132, %c0_133] : memref<8x32xf32, #tpu.memory_space<vmem>>, vector<8x32xf32>
    %274 = arith.mulf %264, %273 : vector<8x32xf32>
    %275 = arith.mulf %258, %266 : vector<8x32xf32>
    %276 = arith.addf %274, %275 : vector<8x32xf32>
    %c0_134 = arith.constant 0 : index
    %c0_135 = arith.constant 0 : index
    %277 = vector.load %arg16[%c0_134, %c0_135] : memref<8x32xf32, #tpu.memory_space<vmem>>, vector<8x32xf32>
    tpu.vector_store %arg16[%c0_134, %c0_135], %276 {strides = array<i32>} : memref<8x32xf32, #tpu.memory_space<vmem>>, vector<8x32xf32>,
    %278 = math.tanh %276 : vector<8x32xf32>
    %279 = arith.mulf %272, %278 : vector<8x32xf32>
    %c0_136 = arith.constant 0 : index
    %c0_137 = arith.constant 0 : index
    %280 = vector.load %arg15[%c0_136, %c0_137] : memref<8x32xf32, #tpu.memory_space<vmem>>, vector<8x32xf32>
    tpu.vector_store %arg15[%c0_136, %c0_137], %279 {strides = array<i32>} : memref<8x32xf32, #tpu.memory_space<vmem>>, vector<8x32xf32>,
    %c32 = arith.constant 32 : index
    %c0_138 = arith.constant 0 : index
    %281 = vector.load %arg17[%c32, %c0_138] : memref<128x128xf32, #tpu.memory_space<vmem>>, vector<8x128xf32>
    %c0_139 = arith.constant 0 : index
    %c0_140 = arith.constant 0 : index
    %282 = vector.load %arg13[%c0_139, %c0_140] : memref<8x32xf32, #tpu.memory_space<vmem>>, vector<8x32xf32>
    %c0_141 = arith.constant 0 : index
    %c0_142 = arith.constant 0 : index
    %283 = vector.load %arg7[%c0_141, %c0_142] : memref<32x128xf32, #tpu.memory_space<vmem>>, vector<32x128xf32>
    %cst_143 = arith.constant dense<0.000000e+00> : vector<8x128xf32>
    %284 = tpu.matmul %282, %283, %cst_143 {dimension_numbers = #tpu.dot_dimension_numbers<[1], [0], [0], [1], [0, 0, 1, 1], [], []>} : vector<8x32xf32>, vector<32x128xf32>, vector<8x128xf32> -> vector<8x128xf32>
    %285 = arith.addf %281, %284 : vector<8x128xf32>
    %286 = vector.extract_strided_slice %285 {offsets = [0, 0], sizes = [8, 32], strides = [1, 1]} : vector<8x128xf32> to vector<8x32xf32>
    %287 = arith.negf %286 : vector<8x32xf32>
    %288 = math.exp %287 : vector<8x32xf32>
    %cst_144 = arith.constant 1.000000e+00 : f32
    %289 = vector.broadcast %cst_144 : f32 to vector<8x32xf32>
    %290 = arith.addf %289, %288 : vector<8x32xf32>
    %291 = arith.divf %289, %290 : vector<8x32xf32>
    %292 = vector.extract_strided_slice %285 {offsets = [0, 32], sizes = [8, 32], strides = [1, 1]} : vector<8x128xf32> to vector<8x32xf32>
    %293 = arith.negf %292 : vector<8x32xf32>
    %294 = math.exp %293 : vector<8x32xf32>
    %cst_145 = arith.constant 1.000000e+00 : f32
    %295 = vector.broadcast %cst_145 : f32 to vector<8x32xf32>
    %296 = arith.addf %295, %294 : vector<8x32xf32>
    %297 = arith.divf %295, %296 : vector<8x32xf32>
    %298 = vector.extract_strided_slice %285 {offsets = [0, 64], sizes = [8, 32], strides = [1, 1]} : vector<8x128xf32> to vector<8x32xf32>
    %299 = math.tanh %298 : vector<8x32xf32>
    %300 = vector.extract_strided_slice %285 {offsets = [0, 96], sizes = [8, 32], strides = [1, 1]} : vector<8x128xf32> to vector<8x32xf32>
    %301 = arith.negf %300 : vector<8x32xf32>
    %302 = math.exp %301 : vector<8x32xf32>
    %cst_146 = arith.constant 1.000000e+00 : f32
    %303 = vector.broadcast %cst_146 : f32 to vector<8x32xf32>
    %304 = arith.addf %303, %302 : vector<8x32xf32>
    %305 = arith.divf %303, %304 : vector<8x32xf32>
    %c0_147 = arith.constant 0 : index
    %c0_148 = arith.constant 0 : index
    %306 = vector.load %arg14[%c0_147, %c0_148] : memref<8x32xf32, #tpu.memory_space<vmem>>, vector<8x32xf32>
    %307 = arith.mulf %297, %306 : vector<8x32xf32>
    %308 = arith.mulf %291, %299 : vector<8x32xf32>
    %309 = arith.addf %307, %308 : vector<8x32xf32>
    %c0_149 = arith.constant 0 : index
    %c0_150 = arith.constant 0 : index
    %310 = vector.load %arg14[%c0_149, %c0_150] : memref<8x32xf32, #tpu.memory_space<vmem>>, vector<8x32xf32>
    tpu.vector_store %arg14[%c0_149, %c0_150], %309 {strides = array<i32>} : memref<8x32xf32, #tpu.memory_space<vmem>>, vector<8x32xf32>,
    %311 = math.tanh %309 : vector<8x32xf32>
    %312 = arith.mulf %305, %311 : vector<8x32xf32>
    %c0_151 = arith.constant 0 : index
    %c0_152 = arith.constant 0 : index
    %313 = vector.load %arg13[%c0_151, %c0_152] : memref<8x32xf32, #tpu.memory_space<vmem>>, vector<8x32xf32>
    tpu.vector_store %arg13[%c0_151, %c0_152], %312 {strides = array<i32>} : memref<8x32xf32, #tpu.memory_space<vmem>>, vector<8x32xf32>,
    %c88 = arith.constant 88 : index
    %c0_153 = arith.constant 0 : index
    %314 = vector.load %arg18[%c88, %c0_153] : memref<128x128xf32, #tpu.memory_space<vmem>>, vector<8x128xf32>
    %c0_154 = arith.constant 0 : index
    %c0_155 = arith.constant 0 : index
    %315 = vector.load %arg15[%c0_154, %c0_155] : memref<8x32xf32, #tpu.memory_space<vmem>>, vector<8x32xf32>
    %c0_156 = arith.constant 0 : index
    %c0_157 = arith.constant 0 : index
    %316 = vector.load %arg8[%c0_156, %c0_157] : memref<32x128xf32, #tpu.memory_space<vmem>>, vector<32x128xf32>
    %cst_158 = arith.constant dense<0.000000e+00> : vector<8x128xf32>
    %317 = tpu.matmul %315, %316, %cst_158 {dimension_numbers = #tpu.dot_dimension_numbers<[1], [0], [0], [1], [0, 0, 1, 1], [], []>} : vector<8x32xf32>, vector<32x128xf32>, vector<8x128xf32> -> vector<8x128xf32>
    %318 = arith.addf %314, %317 : vector<8x128xf32>
    %319 = vector.extract_strided_slice %318 {offsets = [0, 0], sizes = [8, 32], strides = [1, 1]} : vector<8x128xf32> to vector<8x32xf32>
    %320 = arith.negf %319 : vector<8x32xf32>
    %321 = math.exp %320 : vector<8x32xf32>
    %cst_159 = arith.constant 1.000000e+00 : f32
    %322 = vector.broadcast %cst_159 : f32 to vector<8x32xf32>
    %323 = arith.addf %322, %321 : vector<8x32xf32>
    %324 = arith.divf %322, %323 : vector<8x32xf32>
    %325 = vector.extract_strided_slice %318 {offsets = [0, 32], sizes = [8, 32], strides = [1, 1]} : vector<8x128xf32> to vector<8x32xf32>
    %326 = arith.negf %325 : vector<8x32xf32>
    %327 = math.exp %326 : vector<8x32xf32>
    %cst_160 = arith.constant 1.000000e+00 : f32
    %328 = vector.broadcast %cst_160 : f32 to vector<8x32xf32>
    %329 = arith.addf %328, %327 : vector<8x32xf32>
    %330 = arith.divf %328, %329 : vector<8x32xf32>
    %331 = vector.extract_strided_slice %318 {offsets = [0, 64], sizes = [8, 32], strides = [1, 1]} : vector<8x128xf32> to vector<8x32xf32>
    %332 = math.tanh %331 : vector<8x32xf32>
    %333 = vector.extract_strided_slice %318 {offsets = [0, 96], sizes = [8, 32], strides = [1, 1]} : vector<8x128xf32> to vector<8x32xf32>
    %334 = arith.negf %333 : vector<8x32xf32>
    %335 = math.exp %334 : vector<8x32xf32>
    %cst_161 = arith.constant 1.000000e+00 : f32
    %336 = vector.broadcast %cst_161 : f32 to vector<8x32xf32>
    %337 = arith.addf %336, %335 : vector<8x32xf32>
    %338 = arith.divf %336, %337 : vector<8x32xf32>
    %c0_162 = arith.constant 0 : index
    %c0_163 = arith.constant 0 : index
    %339 = vector.load %arg16[%c0_162, %c0_163] : memref<8x32xf32, #tpu.memory_space<vmem>>, vector<8x32xf32>
    %340 = arith.mulf %330, %339 : vector<8x32xf32>
    %341 = arith.mulf %324, %332 : vector<8x32xf32>
    %342 = arith.addf %340, %341 : vector<8x32xf32>
    %c0_164 = arith.constant 0 : index
    %c0_165 = arith.constant 0 : index
    %343 = vector.load %arg16[%c0_164, %c0_165] : memref<8x32xf32, #tpu.memory_space<vmem>>, vector<8x32xf32>
    tpu.vector_store %arg16[%c0_164, %c0_165], %342 {strides = array<i32>} : memref<8x32xf32, #tpu.memory_space<vmem>>, vector<8x32xf32>,
    %344 = math.tanh %342 : vector<8x32xf32>
    %345 = arith.mulf %338, %344 : vector<8x32xf32>
    %c0_166 = arith.constant 0 : index
    %c0_167 = arith.constant 0 : index
    %346 = vector.load %arg15[%c0_166, %c0_167] : memref<8x32xf32, #tpu.memory_space<vmem>>, vector<8x32xf32>
    tpu.vector_store %arg15[%c0_166, %c0_167], %345 {strides = array<i32>} : memref<8x32xf32, #tpu.memory_space<vmem>>, vector<8x32xf32>,
    %c40 = arith.constant 40 : index
    %c0_168 = arith.constant 0 : index
    %347 = vector.load %arg17[%c40, %c0_168] : memref<128x128xf32, #tpu.memory_space<vmem>>, vector<8x128xf32>
    %c0_169 = arith.constant 0 : index
    %c0_170 = arith.constant 0 : index
    %348 = vector.load %arg13[%c0_169, %c0_170] : memref<8x32xf32, #tpu.memory_space<vmem>>, vector<8x32xf32>
    %c0_171 = arith.constant 0 : index
    %c0_172 = arith.constant 0 : index
    %349 = vector.load %arg7[%c0_171, %c0_172] : memref<32x128xf32, #tpu.memory_space<vmem>>, vector<32x128xf32>
    %cst_173 = arith.constant dense<0.000000e+00> : vector<8x128xf32>
    %350 = tpu.matmul %348, %349, %cst_173 {dimension_numbers = #tpu.dot_dimension_numbers<[1], [0], [0], [1], [0, 0, 1, 1], [], []>} : vector<8x32xf32>, vector<32x128xf32>, vector<8x128xf32> -> vector<8x128xf32>
    %351 = arith.addf %347, %350 : vector<8x128xf32>
    %352 = vector.extract_strided_slice %351 {offsets = [0, 0], sizes = [8, 32], strides = [1, 1]} : vector<8x128xf32> to vector<8x32xf32>
    %353 = arith.negf %352 : vector<8x32xf32>
    %354 = math.exp %353 : vector<8x32xf32>
    %cst_174 = arith.constant 1.000000e+00 : f32
    %355 = vector.broadcast %cst_174 : f32 to vector<8x32xf32>
    %356 = arith.addf %355, %354 : vector<8x32xf32>
    %357 = arith.divf %355, %356 : vector<8x32xf32>
    %358 = vector.extract_strided_slice %351 {offsets = [0, 32], sizes = [8, 32], strides = [1, 1]} : vector<8x128xf32> to vector<8x32xf32>
    %359 = arith.negf %358 : vector<8x32xf32>
    %360 = math.exp %359 : vector<8x32xf32>
    %cst_175 = arith.constant 1.000000e+00 : f32
    %361 = vector.broadcast %cst_175 : f32 to vector<8x32xf32>
    %362 = arith.addf %361, %360 : vector<8x32xf32>
    %363 = arith.divf %361, %362 : vector<8x32xf32>
    %364 = vector.extract_strided_slice %351 {offsets = [0, 64], sizes = [8, 32], strides = [1, 1]} : vector<8x128xf32> to vector<8x32xf32>
    %365 = math.tanh %364 : vector<8x32xf32>
    %366 = vector.extract_strided_slice %351 {offsets = [0, 96], sizes = [8, 32], strides = [1, 1]} : vector<8x128xf32> to vector<8x32xf32>
    %367 = arith.negf %366 : vector<8x32xf32>
    %368 = math.exp %367 : vector<8x32xf32>
    %cst_176 = arith.constant 1.000000e+00 : f32
    %369 = vector.broadcast %cst_176 : f32 to vector<8x32xf32>
    %370 = arith.addf %369, %368 : vector<8x32xf32>
    %371 = arith.divf %369, %370 : vector<8x32xf32>
    %c0_177 = arith.constant 0 : index
    %c0_178 = arith.constant 0 : index
    %372 = vector.load %arg14[%c0_177, %c0_178] : memref<8x32xf32, #tpu.memory_space<vmem>>, vector<8x32xf32>
    %373 = arith.mulf %363, %372 : vector<8x32xf32>
    %374 = arith.mulf %357, %365 : vector<8x32xf32>
    %375 = arith.addf %373, %374 : vector<8x32xf32>
    %c0_179 = arith.constant 0 : index
    %c0_180 = arith.constant 0 : index
    %376 = vector.load %arg14[%c0_179, %c0_180] : memref<8x32xf32, #tpu.memory_space<vmem>>, vector<8x32xf32>
    tpu.vector_store %arg14[%c0_179, %c0_180], %375 {strides = array<i32>} : memref<8x32xf32, #tpu.memory_space<vmem>>, vector<8x32xf32>,
    %377 = math.tanh %375 : vector<8x32xf32>
    %378 = arith.mulf %371, %377 : vector<8x32xf32>
    %c0_181 = arith.constant 0 : index
    %c0_182 = arith.constant 0 : index
    %379 = vector.load %arg13[%c0_181, %c0_182] : memref<8x32xf32, #tpu.memory_space<vmem>>, vector<8x32xf32>
    tpu.vector_store %arg13[%c0_181, %c0_182], %378 {strides = array<i32>} : memref<8x32xf32, #tpu.memory_space<vmem>>, vector<8x32xf32>,
    %c80 = arith.constant 80 : index
    %c0_183 = arith.constant 0 : index
    %380 = vector.load %arg18[%c80, %c0_183] : memref<128x128xf32, #tpu.memory_space<vmem>>, vector<8x128xf32>
    %c0_184 = arith.constant 0 : index
    %c0_185 = arith.constant 0 : index
    %381 = vector.load %arg15[%c0_184, %c0_185] : memref<8x32xf32, #tpu.memory_space<vmem>>, vector<8x32xf32>
    %c0_186 = arith.constant 0 : index
    %c0_187 = arith.constant 0 : index
    %382 = vector.load %arg8[%c0_186, %c0_187] : memref<32x128xf32, #tpu.memory_space<vmem>>, vector<32x128xf32>
    %cst_188 = arith.constant dense<0.000000e+00> : vector<8x128xf32>
    %383 = tpu.matmul %381, %382, %cst_188 {dimension_numbers = #tpu.dot_dimension_numbers<[1], [0], [0], [1], [0, 0, 1, 1], [], []>} : vector<8x32xf32>, vector<32x128xf32>, vector<8x128xf32> -> vector<8x128xf32>
    %384 = arith.addf %380, %383 : vector<8x128xf32>
    %385 = vector.extract_strided_slice %384 {offsets = [0, 0], sizes = [8, 32], strides = [1, 1]} : vector<8x128xf32> to vector<8x32xf32>
    %386 = arith.negf %385 : vector<8x32xf32>
    %387 = math.exp %386 : vector<8x32xf32>
    %cst_189 = arith.constant 1.000000e+00 : f32
    %388 = vector.broadcast %cst_189 : f32 to vector<8x32xf32>
    %389 = arith.addf %388, %387 : vector<8x32xf32>
    %390 = arith.divf %388, %389 : vector<8x32xf32>
    %391 = vector.extract_strided_slice %384 {offsets = [0, 32], sizes = [8, 32], strides = [1, 1]} : vector<8x128xf32> to vector<8x32xf32>
    %392 = arith.negf %391 : vector<8x32xf32>
    %393 = math.exp %392 : vector<8x32xf32>
    %cst_190 = arith.constant 1.000000e+00 : f32
    %394 = vector.broadcast %cst_190 : f32 to vector<8x32xf32>
    %395 = arith.addf %394, %393 : vector<8x32xf32>
    %396 = arith.divf %394, %395 : vector<8x32xf32>
    %397 = vector.extract_strided_slice %384 {offsets = [0, 64], sizes = [8, 32], strides = [1, 1]} : vector<8x128xf32> to vector<8x32xf32>
    %398 = math.tanh %397 : vector<8x32xf32>
    %399 = vector.extract_strided_slice %384 {offsets = [0, 96], sizes = [8, 32], strides = [1, 1]} : vector<8x128xf32> to vector<8x32xf32>
    %400 = arith.negf %399 : vector<8x32xf32>
    %401 = math.exp %400 : vector<8x32xf32>
    %cst_191 = arith.constant 1.000000e+00 : f32
    %402 = vector.broadcast %cst_191 : f32 to vector<8x32xf32>
    %403 = arith.addf %402, %401 : vector<8x32xf32>
    %404 = arith.divf %402, %403 : vector<8x32xf32>
    %c0_192 = arith.constant 0 : index
    %c0_193 = arith.constant 0 : index
    %405 = vector.load %arg16[%c0_192, %c0_193] : memref<8x32xf32, #tpu.memory_space<vmem>>, vector<8x32xf32>
    %406 = arith.mulf %396, %405 : vector<8x32xf32>
    %407 = arith.mulf %390, %398 : vector<8x32xf32>
    %408 = arith.addf %406, %407 : vector<8x32xf32>
    %c0_194 = arith.constant 0 : index
    %c0_195 = arith.constant 0 : index
    %409 = vector.load %arg16[%c0_194, %c0_195] : memref<8x32xf32, #tpu.memory_space<vmem>>, vector<8x32xf32>
    tpu.vector_store %arg16[%c0_194, %c0_195], %408 {strides = array<i32>} : memref<8x32xf32, #tpu.memory_space<vmem>>, vector<8x32xf32>,
    %410 = math.tanh %408 : vector<8x32xf32>
    %411 = arith.mulf %404, %410 : vector<8x32xf32>
    %c0_196 = arith.constant 0 : index
    %c0_197 = arith.constant 0 : index
    %412 = vector.load %arg15[%c0_196, %c0_197] : memref<8x32xf32, #tpu.memory_space<vmem>>, vector<8x32xf32>
    tpu.vector_store %arg15[%c0_196, %c0_197], %411 {strides = array<i32>} : memref<8x32xf32, #tpu.memory_space<vmem>>, vector<8x32xf32>,
    %c48 = arith.constant 48 : index
    %c0_198 = arith.constant 0 : index
    %413 = vector.load %arg17[%c48, %c0_198] : memref<128x128xf32, #tpu.memory_space<vmem>>, vector<8x128xf32>
    %c0_199 = arith.constant 0 : index
    %c0_200 = arith.constant 0 : index
    %414 = vector.load %arg13[%c0_199, %c0_200] : memref<8x32xf32, #tpu.memory_space<vmem>>, vector<8x32xf32>
    %c0_201 = arith.constant 0 : index
    %c0_202 = arith.constant 0 : index
    %415 = vector.load %arg7[%c0_201, %c0_202] : memref<32x128xf32, #tpu.memory_space<vmem>>, vector<32x128xf32>
    %cst_203 = arith.constant dense<0.000000e+00> : vector<8x128xf32>
    %416 = tpu.matmul %414, %415, %cst_203 {dimension_numbers = #tpu.dot_dimension_numbers<[1], [0], [0], [1], [0, 0, 1, 1], [], []>} : vector<8x32xf32>, vector<32x128xf32>, vector<8x128xf32> -> vector<8x128xf32>
    %417 = arith.addf %413, %416 : vector<8x128xf32>
    %418 = vector.extract_strided_slice %417 {offsets = [0, 0], sizes = [8, 32], strides = [1, 1]} : vector<8x128xf32> to vector<8x32xf32>
    %419 = arith.negf %418 : vector<8x32xf32>
    %420 = math.exp %419 : vector<8x32xf32>
    %cst_204 = arith.constant 1.000000e+00 : f32
    %421 = vector.broadcast %cst_204 : f32 to vector<8x32xf32>
    %422 = arith.addf %421, %420 : vector<8x32xf32>
    %423 = arith.divf %421, %422 : vector<8x32xf32>
    %424 = vector.extract_strided_slice %417 {offsets = [0, 32], sizes = [8, 32], strides = [1, 1]} : vector<8x128xf32> to vector<8x32xf32>
    %425 = arith.negf %424 : vector<8x32xf32>
    %426 = math.exp %425 : vector<8x32xf32>
    %cst_205 = arith.constant 1.000000e+00 : f32
    %427 = vector.broadcast %cst_205 : f32 to vector<8x32xf32>
    %428 = arith.addf %427, %426 : vector<8x32xf32>
    %429 = arith.divf %427, %428 : vector<8x32xf32>
    %430 = vector.extract_strided_slice %417 {offsets = [0, 64], sizes = [8, 32], strides = [1, 1]} : vector<8x128xf32> to vector<8x32xf32>
    %431 = math.tanh %430 : vector<8x32xf32>
    %432 = vector.extract_strided_slice %417 {offsets = [0, 96], sizes = [8, 32], strides = [1, 1]} : vector<8x128xf32> to vector<8x32xf32>
    %433 = arith.negf %432 : vector<8x32xf32>
    %434 = math.exp %433 : vector<8x32xf32>
    %cst_206 = arith.constant 1.000000e+00 : f32
    %435 = vector.broadcast %cst_206 : f32 to vector<8x32xf32>
    %436 = arith.addf %435, %434 : vector<8x32xf32>
    %437 = arith.divf %435, %436 : vector<8x32xf32>
    %c0_207 = arith.constant 0 : index
    %c0_208 = arith.constant 0 : index
    %438 = vector.load %arg14[%c0_207, %c0_208] : memref<8x32xf32, #tpu.memory_space<vmem>>, vector<8x32xf32>
    %439 = arith.mulf %429, %438 : vector<8x32xf32>
    %440 = arith.mulf %423, %431 : vector<8x32xf32>
    %441 = arith.addf %439, %440 : vector<8x32xf32>
    %c0_209 = arith.constant 0 : index
    %c0_210 = arith.constant 0 : index
    %442 = vector.load %arg14[%c0_209, %c0_210] : memref<8x32xf32, #tpu.memory_space<vmem>>, vector<8x32xf32>
    tpu.vector_store %arg14[%c0_209, %c0_210], %441 {strides = array<i32>} : memref<8x32xf32, #tpu.memory_space<vmem>>, vector<8x32xf32>,
    %443 = math.tanh %441 : vector<8x32xf32>
    %444 = arith.mulf %437, %443 : vector<8x32xf32>
    %c0_211 = arith.constant 0 : index
    %c0_212 = arith.constant 0 : index
    %445 = vector.load %arg13[%c0_211, %c0_212] : memref<8x32xf32, #tpu.memory_space<vmem>>, vector<8x32xf32>
    tpu.vector_store %arg13[%c0_211, %c0_212], %444 {strides = array<i32>} : memref<8x32xf32, #tpu.memory_space<vmem>>, vector<8x32xf32>,
    %c72 = arith.constant 72 : index
    %c0_213 = arith.constant 0 : index
    %446 = vector.load %arg18[%c72, %c0_213] : memref<128x128xf32, #tpu.memory_space<vmem>>, vector<8x128xf32>
    %c0_214 = arith.constant 0 : index
    %c0_215 = arith.constant 0 : index
    %447 = vector.load %arg15[%c0_214, %c0_215] : memref<8x32xf32, #tpu.memory_space<vmem>>, vector<8x32xf32>
    %c0_216 = arith.constant 0 : index
    %c0_217 = arith.constant 0 : index
    %448 = vector.load %arg8[%c0_216, %c0_217] : memref<32x128xf32, #tpu.memory_space<vmem>>, vector<32x128xf32>
    %cst_218 = arith.constant dense<0.000000e+00> : vector<8x128xf32>
    %449 = tpu.matmul %447, %448, %cst_218 {dimension_numbers = #tpu.dot_dimension_numbers<[1], [0], [0], [1], [0, 0, 1, 1], [], []>} : vector<8x32xf32>, vector<32x128xf32>, vector<8x128xf32> -> vector<8x128xf32>
    %450 = arith.addf %446, %449 : vector<8x128xf32>
    %451 = vector.extract_strided_slice %450 {offsets = [0, 0], sizes = [8, 32], strides = [1, 1]} : vector<8x128xf32> to vector<8x32xf32>
    %452 = arith.negf %451 : vector<8x32xf32>
    %453 = math.exp %452 : vector<8x32xf32>
    %cst_219 = arith.constant 1.000000e+00 : f32
    %454 = vector.broadcast %cst_219 : f32 to vector<8x32xf32>
    %455 = arith.addf %454, %453 : vector<8x32xf32>
    %456 = arith.divf %454, %455 : vector<8x32xf32>
    %457 = vector.extract_strided_slice %450 {offsets = [0, 32], sizes = [8, 32], strides = [1, 1]} : vector<8x128xf32> to vector<8x32xf32>
    %458 = arith.negf %457 : vector<8x32xf32>
    %459 = math.exp %458 : vector<8x32xf32>
    %cst_220 = arith.constant 1.000000e+00 : f32
    %460 = vector.broadcast %cst_220 : f32 to vector<8x32xf32>
    %461 = arith.addf %460, %459 : vector<8x32xf32>
    %462 = arith.divf %460, %461 : vector<8x32xf32>
    %463 = vector.extract_strided_slice %450 {offsets = [0, 64], sizes = [8, 32], strides = [1, 1]} : vector<8x128xf32> to vector<8x32xf32>
    %464 = math.tanh %463 : vector<8x32xf32>
    %465 = vector.extract_strided_slice %450 {offsets = [0, 96], sizes = [8, 32], strides = [1, 1]} : vector<8x128xf32> to vector<8x32xf32>
    %466 = arith.negf %465 : vector<8x32xf32>
    %467 = math.exp %466 : vector<8x32xf32>
    %cst_221 = arith.constant 1.000000e+00 : f32
    %468 = vector.broadcast %cst_221 : f32 to vector<8x32xf32>
    %469 = arith.addf %468, %467 : vector<8x32xf32>
    %470 = arith.divf %468, %469 : vector<8x32xf32>
    %c0_222 = arith.constant 0 : index
    %c0_223 = arith.constant 0 : index
    %471 = vector.load %arg16[%c0_222, %c0_223] : memref<8x32xf32, #tpu.memory_space<vmem>>, vector<8x32xf32>
    %472 = arith.mulf %462, %471 : vector<8x32xf32>
    %473 = arith.mulf %456, %464 : vector<8x32xf32>
    %474 = arith.addf %472, %473 : vector<8x32xf32>
    %c0_224 = arith.constant 0 : index
    %c0_225 = arith.constant 0 : index
    %475 = vector.load %arg16[%c0_224, %c0_225] : memref<8x32xf32, #tpu.memory_space<vmem>>, vector<8x32xf32>
    tpu.vector_store %arg16[%c0_224, %c0_225], %474 {strides = array<i32>} : memref<8x32xf32, #tpu.memory_space<vmem>>, vector<8x32xf32>,
    %476 = math.tanh %474 : vector<8x32xf32>
    %477 = arith.mulf %470, %476 : vector<8x32xf32>
    %c0_226 = arith.constant 0 : index
    %c0_227 = arith.constant 0 : index
    %478 = vector.load %arg15[%c0_226, %c0_227] : memref<8x32xf32, #tpu.memory_space<vmem>>, vector<8x32xf32>
    tpu.vector_store %arg15[%c0_226, %c0_227], %477 {strides = array<i32>} : memref<8x32xf32, #tpu.memory_space<vmem>>, vector<8x32xf32>,
    %c56 = arith.constant 56 : index
    %c0_228 = arith.constant 0 : index
    %479 = vector.load %arg17[%c56, %c0_228] : memref<128x128xf32, #tpu.memory_space<vmem>>, vector<8x128xf32>
    %c0_229 = arith.constant 0 : index
    %c0_230 = arith.constant 0 : index
    %480 = vector.load %arg13[%c0_229, %c0_230] : memref<8x32xf32, #tpu.memory_space<vmem>>, vector<8x32xf32>
    %c0_231 = arith.constant 0 : index
    %c0_232 = arith.constant 0 : index
    %481 = vector.load %arg7[%c0_231, %c0_232] : memref<32x128xf32, #tpu.memory_space<vmem>>, vector<32x128xf32>
    %cst_233 = arith.constant dense<0.000000e+00> : vector<8x128xf32>
    %482 = tpu.matmul %480, %481, %cst_233 {dimension_numbers = #tpu.dot_dimension_numbers<[1], [0], [0], [1], [0, 0, 1, 1], [], []>} : vector<8x32xf32>, vector<32x128xf32>, vector<8x128xf32> -> vector<8x128xf32>
    %483 = arith.addf %479, %482 : vector<8x128xf32>
    %484 = vector.extract_strided_slice %483 {offsets = [0, 0], sizes = [8, 32], strides = [1, 1]} : vector<8x128xf32> to vector<8x32xf32>
    %485 = arith.negf %484 : vector<8x32xf32>
    %486 = math.exp %485 : vector<8x32xf32>
    %cst_234 = arith.constant 1.000000e+00 : f32
    %487 = vector.broadcast %cst_234 : f32 to vector<8x32xf32>
    %488 = arith.addf %487, %486 : vector<8x32xf32>
    %489 = arith.divf %487, %488 : vector<8x32xf32>
    %490 = vector.extract_strided_slice %483 {offsets = [0, 32], sizes = [8, 32], strides = [1, 1]} : vector<8x128xf32> to vector<8x32xf32>
    %491 = arith.negf %490 : vector<8x32xf32>
    %492 = math.exp %491 : vector<8x32xf32>
    %cst_235 = arith.constant 1.000000e+00 : f32
    %493 = vector.broadcast %cst_235 : f32 to vector<8x32xf32>
    %494 = arith.addf %493, %492 : vector<8x32xf32>
    %495 = arith.divf %493, %494 : vector<8x32xf32>
    %496 = vector.extract_strided_slice %483 {offsets = [0, 64], sizes = [8, 32], strides = [1, 1]} : vector<8x128xf32> to vector<8x32xf32>
    %497 = math.tanh %496 : vector<8x32xf32>
    %498 = vector.extract_strided_slice %483 {offsets = [0, 96], sizes = [8, 32], strides = [1, 1]} : vector<8x128xf32> to vector<8x32xf32>
    %499 = arith.negf %498 : vector<8x32xf32>
    %500 = math.exp %499 : vector<8x32xf32>
    %cst_236 = arith.constant 1.000000e+00 : f32
    %501 = vector.broadcast %cst_236 : f32 to vector<8x32xf32>
    %502 = arith.addf %501, %500 : vector<8x32xf32>
    %503 = arith.divf %501, %502 : vector<8x32xf32>
    %c0_237 = arith.constant 0 : index
    %c0_238 = arith.constant 0 : index
    %504 = vector.load %arg14[%c0_237, %c0_238] : memref<8x32xf32, #tpu.memory_space<vmem>>, vector<8x32xf32>
    %505 = arith.mulf %495, %504 : vector<8x32xf32>
    %506 = arith.mulf %489, %497 : vector<8x32xf32>
    %507 = arith.addf %505, %506 : vector<8x32xf32>
    %c0_239 = arith.constant 0 : index
    %c0_240 = arith.constant 0 : index
    %508 = vector.load %arg14[%c0_239, %c0_240] : memref<8x32xf32, #tpu.memory_space<vmem>>, vector<8x32xf32>
    tpu.vector_store %arg14[%c0_239, %c0_240], %507 {strides = array<i32>} : memref<8x32xf32, #tpu.memory_space<vmem>>, vector<8x32xf32>,
    %509 = math.tanh %507 : vector<8x32xf32>
    %510 = arith.mulf %503, %509 : vector<8x32xf32>
    %c0_241 = arith.constant 0 : index
    %c0_242 = arith.constant 0 : index
    %511 = vector.load %arg13[%c0_241, %c0_242] : memref<8x32xf32, #tpu.memory_space<vmem>>, vector<8x32xf32>
    tpu.vector_store %arg13[%c0_241, %c0_242], %510 {strides = array<i32>} : memref<8x32xf32, #tpu.memory_space<vmem>>, vector<8x32xf32>,
    %c64 = arith.constant 64 : index
    %c0_243 = arith.constant 0 : index
    %512 = vector.load %arg18[%c64, %c0_243] : memref<128x128xf32, #tpu.memory_space<vmem>>, vector<8x128xf32>
    %c0_244 = arith.constant 0 : index
    %c0_245 = arith.constant 0 : index
    %513 = vector.load %arg15[%c0_244, %c0_245] : memref<8x32xf32, #tpu.memory_space<vmem>>, vector<8x32xf32>
    %c0_246 = arith.constant 0 : index
    %c0_247 = arith.constant 0 : index
    %514 = vector.load %arg8[%c0_246, %c0_247] : memref<32x128xf32, #tpu.memory_space<vmem>>, vector<32x128xf32>
    %cst_248 = arith.constant dense<0.000000e+00> : vector<8x128xf32>
    %515 = tpu.matmul %513, %514, %cst_248 {dimension_numbers = #tpu.dot_dimension_numbers<[1], [0], [0], [1], [0, 0, 1, 1], [], []>} : vector<8x32xf32>, vector<32x128xf32>, vector<8x128xf32> -> vector<8x128xf32>
    %516 = arith.addf %512, %515 : vector<8x128xf32>
    %517 = vector.extract_strided_slice %516 {offsets = [0, 0], sizes = [8, 32], strides = [1, 1]} : vector<8x128xf32> to vector<8x32xf32>
    %518 = arith.negf %517 : vector<8x32xf32>
    %519 = math.exp %518 : vector<8x32xf32>
    %cst_249 = arith.constant 1.000000e+00 : f32
    %520 = vector.broadcast %cst_249 : f32 to vector<8x32xf32>
    %521 = arith.addf %520, %519 : vector<8x32xf32>
    %522 = arith.divf %520, %521 : vector<8x32xf32>
    %523 = vector.extract_strided_slice %516 {offsets = [0, 32], sizes = [8, 32], strides = [1, 1]} : vector<8x128xf32> to vector<8x32xf32>
    %524 = arith.negf %523 : vector<8x32xf32>
    %525 = math.exp %524 : vector<8x32xf32>
    %cst_250 = arith.constant 1.000000e+00 : f32
    %526 = vector.broadcast %cst_250 : f32 to vector<8x32xf32>
    %527 = arith.addf %526, %525 : vector<8x32xf32>
    %528 = arith.divf %526, %527 : vector<8x32xf32>
    %529 = vector.extract_strided_slice %516 {offsets = [0, 64], sizes = [8, 32], strides = [1, 1]} : vector<8x128xf32> to vector<8x32xf32>
    %530 = math.tanh %529 : vector<8x32xf32>
    %531 = vector.extract_strided_slice %516 {offsets = [0, 96], sizes = [8, 32], strides = [1, 1]} : vector<8x128xf32> to vector<8x32xf32>
    %532 = arith.negf %531 : vector<8x32xf32>
    %533 = math.exp %532 : vector<8x32xf32>
    %cst_251 = arith.constant 1.000000e+00 : f32
    %534 = vector.broadcast %cst_251 : f32 to vector<8x32xf32>
    %535 = arith.addf %534, %533 : vector<8x32xf32>
    %536 = arith.divf %534, %535 : vector<8x32xf32>
    %c0_252 = arith.constant 0 : index
    %c0_253 = arith.constant 0 : index
    %537 = vector.load %arg16[%c0_252, %c0_253] : memref<8x32xf32, #tpu.memory_space<vmem>>, vector<8x32xf32>
    %538 = arith.mulf %528, %537 : vector<8x32xf32>
    %539 = arith.mulf %522, %530 : vector<8x32xf32>
    %540 = arith.addf %538, %539 : vector<8x32xf32>
    %c0_254 = arith.constant 0 : index
    %c0_255 = arith.constant 0 : index
    %541 = vector.load %arg16[%c0_254, %c0_255] : memref<8x32xf32, #tpu.memory_space<vmem>>, vector<8x32xf32>
    tpu.vector_store %arg16[%c0_254, %c0_255], %540 {strides = array<i32>} : memref<8x32xf32, #tpu.memory_space<vmem>>, vector<8x32xf32>,
    %542 = math.tanh %540 : vector<8x32xf32>
    %543 = arith.mulf %536, %542 : vector<8x32xf32>
    %c0_256 = arith.constant 0 : index
    %c0_257 = arith.constant 0 : index
    %544 = vector.load %arg15[%c0_256, %c0_257] : memref<8x32xf32, #tpu.memory_space<vmem>>, vector<8x32xf32>
    tpu.vector_store %arg15[%c0_256, %c0_257], %543 {strides = array<i32>} : memref<8x32xf32, #tpu.memory_space<vmem>>, vector<8x32xf32>,
    %c64_258 = arith.constant 64 : index
    %c0_259 = arith.constant 0 : index
    %545 = vector.load %arg17[%c64_258, %c0_259] : memref<128x128xf32, #tpu.memory_space<vmem>>, vector<8x128xf32>
    %c0_260 = arith.constant 0 : index
    %c0_261 = arith.constant 0 : index
    %546 = vector.load %arg13[%c0_260, %c0_261] : memref<8x32xf32, #tpu.memory_space<vmem>>, vector<8x32xf32>
    %c0_262 = arith.constant 0 : index
    %c0_263 = arith.constant 0 : index
    %547 = vector.load %arg7[%c0_262, %c0_263] : memref<32x128xf32, #tpu.memory_space<vmem>>, vector<32x128xf32>
    %cst_264 = arith.constant dense<0.000000e+00> : vector<8x128xf32>
    %548 = tpu.matmul %546, %547, %cst_264 {dimension_numbers = #tpu.dot_dimension_numbers<[1], [0], [0], [1], [0, 0, 1, 1], [], []>} : vector<8x32xf32>, vector<32x128xf32>, vector<8x128xf32> -> vector<8x128xf32>
    %549 = arith.addf %545, %548 : vector<8x128xf32>
    %550 = vector.extract_strided_slice %549 {offsets = [0, 0], sizes = [8, 32], strides = [1, 1]} : vector<8x128xf32> to vector<8x32xf32>
    %551 = arith.negf %550 : vector<8x32xf32>
    %552 = math.exp %551 : vector<8x32xf32>
    %cst_265 = arith.constant 1.000000e+00 : f32
    %553 = vector.broadcast %cst_265 : f32 to vector<8x32xf32>
    %554 = arith.addf %553, %552 : vector<8x32xf32>
    %555 = arith.divf %553, %554 : vector<8x32xf32>
    %556 = vector.extract_strided_slice %549 {offsets = [0, 32], sizes = [8, 32], strides = [1, 1]} : vector<8x128xf32> to vector<8x32xf32>
    %557 = arith.negf %556 : vector<8x32xf32>
    %558 = math.exp %557 : vector<8x32xf32>
    %cst_266 = arith.constant 1.000000e+00 : f32
    %559 = vector.broadcast %cst_266 : f32 to vector<8x32xf32>
    %560 = arith.addf %559, %558 : vector<8x32xf32>
    %561 = arith.divf %559, %560 : vector<8x32xf32>
    %562 = vector.extract_strided_slice %549 {offsets = [0, 64], sizes = [8, 32], strides = [1, 1]} : vector<8x128xf32> to vector<8x32xf32>
    %563 = math.tanh %562 : vector<8x32xf32>
    %564 = vector.extract_strided_slice %549 {offsets = [0, 96], sizes = [8, 32], strides = [1, 1]} : vector<8x128xf32> to vector<8x32xf32>
    %565 = arith.negf %564 : vector<8x32xf32>
    %566 = math.exp %565 : vector<8x32xf32>
    %cst_267 = arith.constant 1.000000e+00 : f32
    %567 = vector.broadcast %cst_267 : f32 to vector<8x32xf32>
    %568 = arith.addf %567, %566 : vector<8x32xf32>
    %569 = arith.divf %567, %568 : vector<8x32xf32>
    %c0_268 = arith.constant 0 : index
    %c0_269 = arith.constant 0 : index
    %570 = vector.load %arg14[%c0_268, %c0_269] : memref<8x32xf32, #tpu.memory_space<vmem>>, vector<8x32xf32>
    %571 = arith.mulf %561, %570 : vector<8x32xf32>
    %572 = arith.mulf %555, %563 : vector<8x32xf32>
    %573 = arith.addf %571, %572 : vector<8x32xf32>
    %c0_270 = arith.constant 0 : index
    %c0_271 = arith.constant 0 : index
    %574 = vector.load %arg14[%c0_270, %c0_271] : memref<8x32xf32, #tpu.memory_space<vmem>>, vector<8x32xf32>
    tpu.vector_store %arg14[%c0_270, %c0_271], %573 {strides = array<i32>} : memref<8x32xf32, #tpu.memory_space<vmem>>, vector<8x32xf32>,
    %575 = math.tanh %573 : vector<8x32xf32>
    %576 = arith.mulf %569, %575 : vector<8x32xf32>
    %c0_272 = arith.constant 0 : index
    %c0_273 = arith.constant 0 : index
    %577 = vector.load %arg13[%c0_272, %c0_273] : memref<8x32xf32, #tpu.memory_space<vmem>>, vector<8x32xf32>
    tpu.vector_store %arg13[%c0_272, %c0_273], %576 {strides = array<i32>} : memref<8x32xf32, #tpu.memory_space<vmem>>, vector<8x32xf32>,
    %c56_274 = arith.constant 56 : index
    %c0_275 = arith.constant 0 : index
    %578 = vector.load %arg18[%c56_274, %c0_275] : memref<128x128xf32, #tpu.memory_space<vmem>>, vector<8x128xf32>
    %c0_276 = arith.constant 0 : index
    %c0_277 = arith.constant 0 : index
    %579 = vector.load %arg15[%c0_276, %c0_277] : memref<8x32xf32, #tpu.memory_space<vmem>>, vector<8x32xf32>
    %c0_278 = arith.constant 0 : index
    %c0_279 = arith.constant 0 : index
    %580 = vector.load %arg8[%c0_278, %c0_279] : memref<32x128xf32, #tpu.memory_space<vmem>>, vector<32x128xf32>
    %cst_280 = arith.constant dense<0.000000e+00> : vector<8x128xf32>
    %581 = tpu.matmul %579, %580, %cst_280 {dimension_numbers = #tpu.dot_dimension_numbers<[1], [0], [0], [1], [0, 0, 1, 1], [], []>} : vector<8x32xf32>, vector<32x128xf32>, vector<8x128xf32> -> vector<8x128xf32>
    %582 = arith.addf %578, %581 : vector<8x128xf32>
    %583 = vector.extract_strided_slice %582 {offsets = [0, 0], sizes = [8, 32], strides = [1, 1]} : vector<8x128xf32> to vector<8x32xf32>
    %584 = arith.negf %583 : vector<8x32xf32>
    %585 = math.exp %584 : vector<8x32xf32>
    %cst_281 = arith.constant 1.000000e+00 : f32
    %586 = vector.broadcast %cst_281 : f32 to vector<8x32xf32>
    %587 = arith.addf %586, %585 : vector<8x32xf32>
    %588 = arith.divf %586, %587 : vector<8x32xf32>
    %589 = vector.extract_strided_slice %582 {offsets = [0, 32], sizes = [8, 32], strides = [1, 1]} : vector<8x128xf32> to vector<8x32xf32>
    %590 = arith.negf %589 : vector<8x32xf32>
    %591 = math.exp %590 : vector<8x32xf32>
    %cst_282 = arith.constant 1.000000e+00 : f32
    %592 = vector.broadcast %cst_282 : f32 to vector<8x32xf32>
    %593 = arith.addf %592, %591 : vector<8x32xf32>
    %594 = arith.divf %592, %593 : vector<8x32xf32>
    %595 = vector.extract_strided_slice %582 {offsets = [0, 64], sizes = [8, 32], strides = [1, 1]} : vector<8x128xf32> to vector<8x32xf32>
    %596 = math.tanh %595 : vector<8x32xf32>
    %597 = vector.extract_strided_slice %582 {offsets = [0, 96], sizes = [8, 32], strides = [1, 1]} : vector<8x128xf32> to vector<8x32xf32>
    %598 = arith.negf %597 : vector<8x32xf32>
    %599 = math.exp %598 : vector<8x32xf32>
    %cst_283 = arith.constant 1.000000e+00 : f32
    %600 = vector.broadcast %cst_283 : f32 to vector<8x32xf32>
    %601 = arith.addf %600, %599 : vector<8x32xf32>
    %602 = arith.divf %600, %601 : vector<8x32xf32>
    %c0_284 = arith.constant 0 : index
    %c0_285 = arith.constant 0 : index
    %603 = vector.load %arg16[%c0_284, %c0_285] : memref<8x32xf32, #tpu.memory_space<vmem>>, vector<8x32xf32>
    %604 = arith.mulf %594, %603 : vector<8x32xf32>
    %605 = arith.mulf %588, %596 : vector<8x32xf32>
    %606 = arith.addf %604, %605 : vector<8x32xf32>
    %c0_286 = arith.constant 0 : index
    %c0_287 = arith.constant 0 : index
    %607 = vector.load %arg16[%c0_286, %c0_287] : memref<8x32xf32, #tpu.memory_space<vmem>>, vector<8x32xf32>
    tpu.vector_store %arg16[%c0_286, %c0_287], %606 {strides = array<i32>} : memref<8x32xf32, #tpu.memory_space<vmem>>, vector<8x32xf32>,
    %608 = math.tanh %606 : vector<8x32xf32>
    %609 = arith.mulf %602, %608 : vector<8x32xf32>
    %c0_288 = arith.constant 0 : index
    %c0_289 = arith.constant 0 : index
    %610 = vector.load %arg15[%c0_288, %c0_289] : memref<8x32xf32, #tpu.memory_space<vmem>>, vector<8x32xf32>
    tpu.vector_store %arg15[%c0_288, %c0_289], %609 {strides = array<i32>} : memref<8x32xf32, #tpu.memory_space<vmem>>, vector<8x32xf32>,
    %c72_290 = arith.constant 72 : index
    %c0_291 = arith.constant 0 : index
    %611 = vector.load %arg17[%c72_290, %c0_291] : memref<128x128xf32, #tpu.memory_space<vmem>>, vector<8x128xf32>
    %c0_292 = arith.constant 0 : index
    %c0_293 = arith.constant 0 : index
    %612 = vector.load %arg13[%c0_292, %c0_293] : memref<8x32xf32, #tpu.memory_space<vmem>>, vector<8x32xf32>
    %c0_294 = arith.constant 0 : index
    %c0_295 = arith.constant 0 : index
    %613 = vector.load %arg7[%c0_294, %c0_295] : memref<32x128xf32, #tpu.memory_space<vmem>>, vector<32x128xf32>
    %cst_296 = arith.constant dense<0.000000e+00> : vector<8x128xf32>
    %614 = tpu.matmul %612, %613, %cst_296 {dimension_numbers = #tpu.dot_dimension_numbers<[1], [0], [0], [1], [0, 0, 1, 1], [], []>} : vector<8x32xf32>, vector<32x128xf32>, vector<8x128xf32> -> vector<8x128xf32>
    %615 = arith.addf %611, %614 : vector<8x128xf32>
    %616 = vector.extract_strided_slice %615 {offsets = [0, 0], sizes = [8, 32], strides = [1, 1]} : vector<8x128xf32> to vector<8x32xf32>
    %617 = arith.negf %616 : vector<8x32xf32>
    %618 = math.exp %617 : vector<8x32xf32>
    %cst_297 = arith.constant 1.000000e+00 : f32
    %619 = vector.broadcast %cst_297 : f32 to vector<8x32xf32>
    %620 = arith.addf %619, %618 : vector<8x32xf32>
    %621 = arith.divf %619, %620 : vector<8x32xf32>
    %622 = vector.extract_strided_slice %615 {offsets = [0, 32], sizes = [8, 32], strides = [1, 1]} : vector<8x128xf32> to vector<8x32xf32>
    %623 = arith.negf %622 : vector<8x32xf32>
    %624 = math.exp %623 : vector<8x32xf32>
    %cst_298 = arith.constant 1.000000e+00 : f32
    %625 = vector.broadcast %cst_298 : f32 to vector<8x32xf32>
    %626 = arith.addf %625, %624 : vector<8x32xf32>
    %627 = arith.divf %625, %626 : vector<8x32xf32>
    %628 = vector.extract_strided_slice %615 {offsets = [0, 64], sizes = [8, 32], strides = [1, 1]} : vector<8x128xf32> to vector<8x32xf32>
    %629 = math.tanh %628 : vector<8x32xf32>
    %630 = vector.extract_strided_slice %615 {offsets = [0, 96], sizes = [8, 32], strides = [1, 1]} : vector<8x128xf32> to vector<8x32xf32>
    %631 = arith.negf %630 : vector<8x32xf32>
    %632 = math.exp %631 : vector<8x32xf32>
    %cst_299 = arith.constant 1.000000e+00 : f32
    %633 = vector.broadcast %cst_299 : f32 to vector<8x32xf32>
    %634 = arith.addf %633, %632 : vector<8x32xf32>
    %635 = arith.divf %633, %634 : vector<8x32xf32>
    %c0_300 = arith.constant 0 : index
    %c0_301 = arith.constant 0 : index
    %636 = vector.load %arg14[%c0_300, %c0_301] : memref<8x32xf32, #tpu.memory_space<vmem>>, vector<8x32xf32>
    %637 = arith.mulf %627, %636 : vector<8x32xf32>
    %638 = arith.mulf %621, %629 : vector<8x32xf32>
    %639 = arith.addf %637, %638 : vector<8x32xf32>
    %c0_302 = arith.constant 0 : index
    %c0_303 = arith.constant 0 : index
    %640 = vector.load %arg14[%c0_302, %c0_303] : memref<8x32xf32, #tpu.memory_space<vmem>>, vector<8x32xf32>
    tpu.vector_store %arg14[%c0_302, %c0_303], %639 {strides = array<i32>} : memref<8x32xf32, #tpu.memory_space<vmem>>, vector<8x32xf32>,
    %641 = math.tanh %639 : vector<8x32xf32>
    %642 = arith.mulf %635, %641 : vector<8x32xf32>
    %c0_304 = arith.constant 0 : index
    %c0_305 = arith.constant 0 : index
    %643 = vector.load %arg13[%c0_304, %c0_305] : memref<8x32xf32, #tpu.memory_space<vmem>>, vector<8x32xf32>
    tpu.vector_store %arg13[%c0_304, %c0_305], %642 {strides = array<i32>} : memref<8x32xf32, #tpu.memory_space<vmem>>, vector<8x32xf32>,
    %c48_306 = arith.constant 48 : index
    %c0_307 = arith.constant 0 : index
    %644 = vector.load %arg18[%c48_306, %c0_307] : memref<128x128xf32, #tpu.memory_space<vmem>>, vector<8x128xf32>
    %c0_308 = arith.constant 0 : index
    %c0_309 = arith.constant 0 : index
    %645 = vector.load %arg15[%c0_308, %c0_309] : memref<8x32xf32, #tpu.memory_space<vmem>>, vector<8x32xf32>
    %c0_310 = arith.constant 0 : index
    %c0_311 = arith.constant 0 : index
    %646 = vector.load %arg8[%c0_310, %c0_311] : memref<32x128xf32, #tpu.memory_space<vmem>>, vector<32x128xf32>
    %cst_312 = arith.constant dense<0.000000e+00> : vector<8x128xf32>
    %647 = tpu.matmul %645, %646, %cst_312 {dimension_numbers = #tpu.dot_dimension_numbers<[1], [0], [0], [1], [0, 0, 1, 1], [], []>} : vector<8x32xf32>, vector<32x128xf32>, vector<8x128xf32> -> vector<8x128xf32>
    %648 = arith.addf %644, %647 : vector<8x128xf32>
    %649 = vector.extract_strided_slice %648 {offsets = [0, 0], sizes = [8, 32], strides = [1, 1]} : vector<8x128xf32> to vector<8x32xf32>
    %650 = arith.negf %649 : vector<8x32xf32>
    %651 = math.exp %650 : vector<8x32xf32>
    %cst_313 = arith.constant 1.000000e+00 : f32
    %652 = vector.broadcast %cst_313 : f32 to vector<8x32xf32>
    %653 = arith.addf %652, %651 : vector<8x32xf32>
    %654 = arith.divf %652, %653 : vector<8x32xf32>
    %655 = vector.extract_strided_slice %648 {offsets = [0, 32], sizes = [8, 32], strides = [1, 1]} : vector<8x128xf32> to vector<8x32xf32>
    %656 = arith.negf %655 : vector<8x32xf32>
    %657 = math.exp %656 : vector<8x32xf32>
    %cst_314 = arith.constant 1.000000e+00 : f32
    %658 = vector.broadcast %cst_314 : f32 to vector<8x32xf32>
    %659 = arith.addf %658, %657 : vector<8x32xf32>
    %660 = arith.divf %658, %659 : vector<8x32xf32>
    %661 = vector.extract_strided_slice %648 {offsets = [0, 64], sizes = [8, 32], strides = [1, 1]} : vector<8x128xf32> to vector<8x32xf32>
    %662 = math.tanh %661 : vector<8x32xf32>
    %663 = vector.extract_strided_slice %648 {offsets = [0, 96], sizes = [8, 32], strides = [1, 1]} : vector<8x128xf32> to vector<8x32xf32>
    %664 = arith.negf %663 : vector<8x32xf32>
    %665 = math.exp %664 : vector<8x32xf32>
    %cst_315 = arith.constant 1.000000e+00 : f32
    %666 = vector.broadcast %cst_315 : f32 to vector<8x32xf32>
    %667 = arith.addf %666, %665 : vector<8x32xf32>
    %668 = arith.divf %666, %667 : vector<8x32xf32>
    %c0_316 = arith.constant 0 : index
    %c0_317 = arith.constant 0 : index
    %669 = vector.load %arg16[%c0_316, %c0_317] : memref<8x32xf32, #tpu.memory_space<vmem>>, vector<8x32xf32>
    %670 = arith.mulf %660, %669 : vector<8x32xf32>
    %671 = arith.mulf %654, %662 : vector<8x32xf32>
    %672 = arith.addf %670, %671 : vector<8x32xf32>
    %c0_318 = arith.constant 0 : index
    %c0_319 = arith.constant 0 : index
    %673 = vector.load %arg16[%c0_318, %c0_319] : memref<8x32xf32, #tpu.memory_space<vmem>>, vector<8x32xf32>
    tpu.vector_store %arg16[%c0_318, %c0_319], %672 {strides = array<i32>} : memref<8x32xf32, #tpu.memory_space<vmem>>, vector<8x32xf32>,
    %674 = math.tanh %672 : vector<8x32xf32>
    %675 = arith.mulf %668, %674 : vector<8x32xf32>
    %c0_320 = arith.constant 0 : index
    %c0_321 = arith.constant 0 : index
    %676 = vector.load %arg15[%c0_320, %c0_321] : memref<8x32xf32, #tpu.memory_space<vmem>>, vector<8x32xf32>
    tpu.vector_store %arg15[%c0_320, %c0_321], %675 {strides = array<i32>} : memref<8x32xf32, #tpu.memory_space<vmem>>, vector<8x32xf32>,
    %c80_322 = arith.constant 80 : index
    %c0_323 = arith.constant 0 : index
    %677 = vector.load %arg17[%c80_322, %c0_323] : memref<128x128xf32, #tpu.memory_space<vmem>>, vector<8x128xf32>
    %c0_324 = arith.constant 0 : index
    %c0_325 = arith.constant 0 : index
    %678 = vector.load %arg13[%c0_324, %c0_325] : memref<8x32xf32, #tpu.memory_space<vmem>>, vector<8x32xf32>
    %c0_326 = arith.constant 0 : index
    %c0_327 = arith.constant 0 : index
    %679 = vector.load %arg7[%c0_326, %c0_327] : memref<32x128xf32, #tpu.memory_space<vmem>>, vector<32x128xf32>
    %cst_328 = arith.constant dense<0.000000e+00> : vector<8x128xf32>
    %680 = tpu.matmul %678, %679, %cst_328 {dimension_numbers = #tpu.dot_dimension_numbers<[1], [0], [0], [1], [0, 0, 1, 1], [], []>} : vector<8x32xf32>, vector<32x128xf32>, vector<8x128xf32> -> vector<8x128xf32>
    %681 = arith.addf %677, %680 : vector<8x128xf32>
    %682 = vector.extract_strided_slice %681 {offsets = [0, 0], sizes = [8, 32], strides = [1, 1]} : vector<8x128xf32> to vector<8x32xf32>
    %683 = arith.negf %682 : vector<8x32xf32>
    %684 = math.exp %683 : vector<8x32xf32>
    %cst_329 = arith.constant 1.000000e+00 : f32
    %685 = vector.broadcast %cst_329 : f32 to vector<8x32xf32>
    %686 = arith.addf %685, %684 : vector<8x32xf32>
    %687 = arith.divf %685, %686 : vector<8x32xf32>
    %688 = vector.extract_strided_slice %681 {offsets = [0, 32], sizes = [8, 32], strides = [1, 1]} : vector<8x128xf32> to vector<8x32xf32>
    %689 = arith.negf %688 : vector<8x32xf32>
    %690 = math.exp %689 : vector<8x32xf32>
    %cst_330 = arith.constant 1.000000e+00 : f32
    %691 = vector.broadcast %cst_330 : f32 to vector<8x32xf32>
    %692 = arith.addf %691, %690 : vector<8x32xf32>
    %693 = arith.divf %691, %692 : vector<8x32xf32>
    %694 = vector.extract_strided_slice %681 {offsets = [0, 64], sizes = [8, 32], strides = [1, 1]} : vector<8x128xf32> to vector<8x32xf32>
    %695 = math.tanh %694 : vector<8x32xf32>
    %696 = vector.extract_strided_slice %681 {offsets = [0, 96], sizes = [8, 32], strides = [1, 1]} : vector<8x128xf32> to vector<8x32xf32>
    %697 = arith.negf %696 : vector<8x32xf32>
    %698 = math.exp %697 : vector<8x32xf32>
    %cst_331 = arith.constant 1.000000e+00 : f32
    %699 = vector.broadcast %cst_331 : f32 to vector<8x32xf32>
    %700 = arith.addf %699, %698 : vector<8x32xf32>
    %701 = arith.divf %699, %700 : vector<8x32xf32>
    %c0_332 = arith.constant 0 : index
    %c0_333 = arith.constant 0 : index
    %702 = vector.load %arg14[%c0_332, %c0_333] : memref<8x32xf32, #tpu.memory_space<vmem>>, vector<8x32xf32>
    %703 = arith.mulf %693, %702 : vector<8x32xf32>
    %704 = arith.mulf %687, %695 : vector<8x32xf32>
    %705 = arith.addf %703, %704 : vector<8x32xf32>
    %c0_334 = arith.constant 0 : index
    %c0_335 = arith.constant 0 : index
    %706 = vector.load %arg14[%c0_334, %c0_335] : memref<8x32xf32, #tpu.memory_space<vmem>>, vector<8x32xf32>
    tpu.vector_store %arg14[%c0_334, %c0_335], %705 {strides = array<i32>} : memref<8x32xf32, #tpu.memory_space<vmem>>, vector<8x32xf32>,
    %707 = math.tanh %705 : vector<8x32xf32>
    %708 = arith.mulf %701, %707 : vector<8x32xf32>
    %c0_336 = arith.constant 0 : index
    %c0_337 = arith.constant 0 : index
    %709 = vector.load %arg13[%c0_336, %c0_337] : memref<8x32xf32, #tpu.memory_space<vmem>>, vector<8x32xf32>
    tpu.vector_store %arg13[%c0_336, %c0_337], %708 {strides = array<i32>} : memref<8x32xf32, #tpu.memory_space<vmem>>, vector<8x32xf32>,
    %c40_338 = arith.constant 40 : index
    %c0_339 = arith.constant 0 : index
    %710 = vector.load %arg18[%c40_338, %c0_339] : memref<128x128xf32, #tpu.memory_space<vmem>>, vector<8x128xf32>
    %c0_340 = arith.constant 0 : index
    %c0_341 = arith.constant 0 : index
    %711 = vector.load %arg15[%c0_340, %c0_341] : memref<8x32xf32, #tpu.memory_space<vmem>>, vector<8x32xf32>
    %c0_342 = arith.constant 0 : index
    %c0_343 = arith.constant 0 : index
    %712 = vector.load %arg8[%c0_342, %c0_343] : memref<32x128xf32, #tpu.memory_space<vmem>>, vector<32x128xf32>
    %cst_344 = arith.constant dense<0.000000e+00> : vector<8x128xf32>
    %713 = tpu.matmul %711, %712, %cst_344 {dimension_numbers = #tpu.dot_dimension_numbers<[1], [0], [0], [1], [0, 0, 1, 1], [], []>} : vector<8x32xf32>, vector<32x128xf32>, vector<8x128xf32> -> vector<8x128xf32>
    %714 = arith.addf %710, %713 : vector<8x128xf32>
    %715 = vector.extract_strided_slice %714 {offsets = [0, 0], sizes = [8, 32], strides = [1, 1]} : vector<8x128xf32> to vector<8x32xf32>
    %716 = arith.negf %715 : vector<8x32xf32>
    %717 = math.exp %716 : vector<8x32xf32>
    %cst_345 = arith.constant 1.000000e+00 : f32
    %718 = vector.broadcast %cst_345 : f32 to vector<8x32xf32>
    %719 = arith.addf %718, %717 : vector<8x32xf32>
    %720 = arith.divf %718, %719 : vector<8x32xf32>
    %721 = vector.extract_strided_slice %714 {offsets = [0, 32], sizes = [8, 32], strides = [1, 1]} : vector<8x128xf32> to vector<8x32xf32>
    %722 = arith.negf %721 : vector<8x32xf32>
    %723 = math.exp %722 : vector<8x32xf32>
    %cst_346 = arith.constant 1.000000e+00 : f32
    %724 = vector.broadcast %cst_346 : f32 to vector<8x32xf32>
    %725 = arith.addf %724, %723 : vector<8x32xf32>
    %726 = arith.divf %724, %725 : vector<8x32xf32>
    %727 = vector.extract_strided_slice %714 {offsets = [0, 64], sizes = [8, 32], strides = [1, 1]} : vector<8x128xf32> to vector<8x32xf32>
    %728 = math.tanh %727 : vector<8x32xf32>
    %729 = vector.extract_strided_slice %714 {offsets = [0, 96], sizes = [8, 32], strides = [1, 1]} : vector<8x128xf32> to vector<8x32xf32>
    %730 = arith.negf %729 : vector<8x32xf32>
    %731 = math.exp %730 : vector<8x32xf32>
    %cst_347 = arith.constant 1.000000e+00 : f32
    %732 = vector.broadcast %cst_347 : f32 to vector<8x32xf32>
    %733 = arith.addf %732, %731 : vector<8x32xf32>
    %734 = arith.divf %732, %733 : vector<8x32xf32>
    %c0_348 = arith.constant 0 : index
    %c0_349 = arith.constant 0 : index
    %735 = vector.load %arg16[%c0_348, %c0_349] : memref<8x32xf32, #tpu.memory_space<vmem>>, vector<8x32xf32>
    %736 = arith.mulf %726, %735 : vector<8x32xf32>
    %737 = arith.mulf %720, %728 : vector<8x32xf32>
    %738 = arith.addf %736, %737 : vector<8x32xf32>
    %c0_350 = arith.constant 0 : index
    %c0_351 = arith.constant 0 : index
    %739 = vector.load %arg16[%c0_350, %c0_351] : memref<8x32xf32, #tpu.memory_space<vmem>>, vector<8x32xf32>
    tpu.vector_store %arg16[%c0_350, %c0_351], %738 {strides = array<i32>} : memref<8x32xf32, #tpu.memory_space<vmem>>, vector<8x32xf32>,
    %740 = math.tanh %738 : vector<8x32xf32>
    %741 = arith.mulf %734, %740 : vector<8x32xf32>
    %c0_352 = arith.constant 0 : index
    %c0_353 = arith.constant 0 : index
    %742 = vector.load %arg15[%c0_352, %c0_353] : memref<8x32xf32, #tpu.memory_space<vmem>>, vector<8x32xf32>
    tpu.vector_store %arg15[%c0_352, %c0_353], %741 {strides = array<i32>} : memref<8x32xf32, #tpu.memory_space<vmem>>, vector<8x32xf32>,
    %c88_354 = arith.constant 88 : index
    %c0_355 = arith.constant 0 : index
    %743 = vector.load %arg17[%c88_354, %c0_355] : memref<128x128xf32, #tpu.memory_space<vmem>>, vector<8x128xf32>
    %c0_356 = arith.constant 0 : index
    %c0_357 = arith.constant 0 : index
    %744 = vector.load %arg13[%c0_356, %c0_357] : memref<8x32xf32, #tpu.memory_space<vmem>>, vector<8x32xf32>
    %c0_358 = arith.constant 0 : index
    %c0_359 = arith.constant 0 : index
    %745 = vector.load %arg7[%c0_358, %c0_359] : memref<32x128xf32, #tpu.memory_space<vmem>>, vector<32x128xf32>
    %cst_360 = arith.constant dense<0.000000e+00> : vector<8x128xf32>
    %746 = tpu.matmul %744, %745, %cst_360 {dimension_numbers = #tpu.dot_dimension_numbers<[1], [0], [0], [1], [0, 0, 1, 1], [], []>} : vector<8x32xf32>, vector<32x128xf32>, vector<8x128xf32> -> vector<8x128xf32>
    %747 = arith.addf %743, %746 : vector<8x128xf32>
    %748 = vector.extract_strided_slice %747 {offsets = [0, 0], sizes = [8, 32], strides = [1, 1]} : vector<8x128xf32> to vector<8x32xf32>
    %749 = arith.negf %748 : vector<8x32xf32>
    %750 = math.exp %749 : vector<8x32xf32>
    %cst_361 = arith.constant 1.000000e+00 : f32
    %751 = vector.broadcast %cst_361 : f32 to vector<8x32xf32>
    %752 = arith.addf %751, %750 : vector<8x32xf32>
    %753 = arith.divf %751, %752 : vector<8x32xf32>
    %754 = vector.extract_strided_slice %747 {offsets = [0, 32], sizes = [8, 32], strides = [1, 1]} : vector<8x128xf32> to vector<8x32xf32>
    %755 = arith.negf %754 : vector<8x32xf32>
    %756 = math.exp %755 : vector<8x32xf32>
    %cst_362 = arith.constant 1.000000e+00 : f32
    %757 = vector.broadcast %cst_362 : f32 to vector<8x32xf32>
    %758 = arith.addf %757, %756 : vector<8x32xf32>
    %759 = arith.divf %757, %758 : vector<8x32xf32>
    %760 = vector.extract_strided_slice %747 {offsets = [0, 64], sizes = [8, 32], strides = [1, 1]} : vector<8x128xf32> to vector<8x32xf32>
    %761 = math.tanh %760 : vector<8x32xf32>
    %762 = vector.extract_strided_slice %747 {offsets = [0, 96], sizes = [8, 32], strides = [1, 1]} : vector<8x128xf32> to vector<8x32xf32>
    %763 = arith.negf %762 : vector<8x32xf32>
    %764 = math.exp %763 : vector<8x32xf32>
    %cst_363 = arith.constant 1.000000e+00 : f32
    %765 = vector.broadcast %cst_363 : f32 to vector<8x32xf32>
    %766 = arith.addf %765, %764 : vector<8x32xf32>
    %767 = arith.divf %765, %766 : vector<8x32xf32>
    %c0_364 = arith.constant 0 : index
    %c0_365 = arith.constant 0 : index
    %768 = vector.load %arg14[%c0_364, %c0_365] : memref<8x32xf32, #tpu.memory_space<vmem>>, vector<8x32xf32>
    %769 = arith.mulf %759, %768 : vector<8x32xf32>
    %770 = arith.mulf %753, %761 : vector<8x32xf32>
    %771 = arith.addf %769, %770 : vector<8x32xf32>
    %c0_366 = arith.constant 0 : index
    %c0_367 = arith.constant 0 : index
    %772 = vector.load %arg14[%c0_366, %c0_367] : memref<8x32xf32, #tpu.memory_space<vmem>>, vector<8x32xf32>
    tpu.vector_store %arg14[%c0_366, %c0_367], %771 {strides = array<i32>} : memref<8x32xf32, #tpu.memory_space<vmem>>, vector<8x32xf32>,
    %773 = math.tanh %771 : vector<8x32xf32>
    %774 = arith.mulf %767, %773 : vector<8x32xf32>
    %c0_368 = arith.constant 0 : index
    %c0_369 = arith.constant 0 : index
    %775 = vector.load %arg13[%c0_368, %c0_369] : memref<8x32xf32, #tpu.memory_space<vmem>>, vector<8x32xf32>
    tpu.vector_store %arg13[%c0_368, %c0_369], %774 {strides = array<i32>} : memref<8x32xf32, #tpu.memory_space<vmem>>, vector<8x32xf32>,
    %c32_370 = arith.constant 32 : index
    %c0_371 = arith.constant 0 : index
    %776 = vector.load %arg18[%c32_370, %c0_371] : memref<128x128xf32, #tpu.memory_space<vmem>>, vector<8x128xf32>
    %c0_372 = arith.constant 0 : index
    %c0_373 = arith.constant 0 : index
    %777 = vector.load %arg15[%c0_372, %c0_373] : memref<8x32xf32, #tpu.memory_space<vmem>>, vector<8x32xf32>
    %c0_374 = arith.constant 0 : index
    %c0_375 = arith.constant 0 : index
    %778 = vector.load %arg8[%c0_374, %c0_375] : memref<32x128xf32, #tpu.memory_space<vmem>>, vector<32x128xf32>
    %cst_376 = arith.constant dense<0.000000e+00> : vector<8x128xf32>
    %779 = tpu.matmul %777, %778, %cst_376 {dimension_numbers = #tpu.dot_dimension_numbers<[1], [0], [0], [1], [0, 0, 1, 1], [], []>} : vector<8x32xf32>, vector<32x128xf32>, vector<8x128xf32> -> vector<8x128xf32>
    %780 = arith.addf %776, %779 : vector<8x128xf32>
    %781 = vector.extract_strided_slice %780 {offsets = [0, 0], sizes = [8, 32], strides = [1, 1]} : vector<8x128xf32> to vector<8x32xf32>
    %782 = arith.negf %781 : vector<8x32xf32>
    %783 = math.exp %782 : vector<8x32xf32>
    %cst_377 = arith.constant 1.000000e+00 : f32
    %784 = vector.broadcast %cst_377 : f32 to vector<8x32xf32>
    %785 = arith.addf %784, %783 : vector<8x32xf32>
    %786 = arith.divf %784, %785 : vector<8x32xf32>
    %787 = vector.extract_strided_slice %780 {offsets = [0, 32], sizes = [8, 32], strides = [1, 1]} : vector<8x128xf32> to vector<8x32xf32>
    %788 = arith.negf %787 : vector<8x32xf32>
    %789 = math.exp %788 : vector<8x32xf32>
    %cst_378 = arith.constant 1.000000e+00 : f32
    %790 = vector.broadcast %cst_378 : f32 to vector<8x32xf32>
    %791 = arith.addf %790, %789 : vector<8x32xf32>
    %792 = arith.divf %790, %791 : vector<8x32xf32>
    %793 = vector.extract_strided_slice %780 {offsets = [0, 64], sizes = [8, 32], strides = [1, 1]} : vector<8x128xf32> to vector<8x32xf32>
    %794 = math.tanh %793 : vector<8x32xf32>
    %795 = vector.extract_strided_slice %780 {offsets = [0, 96], sizes = [8, 32], strides = [1, 1]} : vector<8x128xf32> to vector<8x32xf32>
    %796 = arith.negf %795 : vector<8x32xf32>
    %797 = math.exp %796 : vector<8x32xf32>
    %cst_379 = arith.constant 1.000000e+00 : f32
    %798 = vector.broadcast %cst_379 : f32 to vector<8x32xf32>
    %799 = arith.addf %798, %797 : vector<8x32xf32>
    %800 = arith.divf %798, %799 : vector<8x32xf32>
    %c0_380 = arith.constant 0 : index
    %c0_381 = arith.constant 0 : index
    %801 = vector.load %arg16[%c0_380, %c0_381] : memref<8x32xf32, #tpu.memory_space<vmem>>, vector<8x32xf32>
    %802 = arith.mulf %792, %801 : vector<8x32xf32>
    %803 = arith.mulf %786, %794 : vector<8x32xf32>
    %804 = arith.addf %802, %803 : vector<8x32xf32>
    %c0_382 = arith.constant 0 : index
    %c0_383 = arith.constant 0 : index
    %805 = vector.load %arg16[%c0_382, %c0_383] : memref<8x32xf32, #tpu.memory_space<vmem>>, vector<8x32xf32>
    tpu.vector_store %arg16[%c0_382, %c0_383], %804 {strides = array<i32>} : memref<8x32xf32, #tpu.memory_space<vmem>>, vector<8x32xf32>,
    %806 = math.tanh %804 : vector<8x32xf32>
    %807 = arith.mulf %800, %806 : vector<8x32xf32>
    %c0_384 = arith.constant 0 : index
    %c0_385 = arith.constant 0 : index
    %808 = vector.load %arg15[%c0_384, %c0_385] : memref<8x32xf32, #tpu.memory_space<vmem>>, vector<8x32xf32>
    tpu.vector_store %arg15[%c0_384, %c0_385], %807 {strides = array<i32>} : memref<8x32xf32, #tpu.memory_space<vmem>>, vector<8x32xf32>,
    %c96_386 = arith.constant 96 : index
    %c0_387 = arith.constant 0 : index
    %809 = vector.load %arg17[%c96_386, %c0_387] : memref<128x128xf32, #tpu.memory_space<vmem>>, vector<8x128xf32>
    %c0_388 = arith.constant 0 : index
    %c0_389 = arith.constant 0 : index
    %810 = vector.load %arg13[%c0_388, %c0_389] : memref<8x32xf32, #tpu.memory_space<vmem>>, vector<8x32xf32>
    %c0_390 = arith.constant 0 : index
    %c0_391 = arith.constant 0 : index
    %811 = vector.load %arg7[%c0_390, %c0_391] : memref<32x128xf32, #tpu.memory_space<vmem>>, vector<32x128xf32>
    %cst_392 = arith.constant dense<0.000000e+00> : vector<8x128xf32>
    %812 = tpu.matmul %810, %811, %cst_392 {dimension_numbers = #tpu.dot_dimension_numbers<[1], [0], [0], [1], [0, 0, 1, 1], [], []>} : vector<8x32xf32>, vector<32x128xf32>, vector<8x128xf32> -> vector<8x128xf32>
    %813 = arith.addf %809, %812 : vector<8x128xf32>
    %814 = vector.extract_strided_slice %813 {offsets = [0, 0], sizes = [8, 32], strides = [1, 1]} : vector<8x128xf32> to vector<8x32xf32>
    %815 = arith.negf %814 : vector<8x32xf32>
    %816 = math.exp %815 : vector<8x32xf32>
    %cst_393 = arith.constant 1.000000e+00 : f32
    %817 = vector.broadcast %cst_393 : f32 to vector<8x32xf32>
    %818 = arith.addf %817, %816 : vector<8x32xf32>
    %819 = arith.divf %817, %818 : vector<8x32xf32>
    %820 = vector.extract_strided_slice %813 {offsets = [0, 32], sizes = [8, 32], strides = [1, 1]} : vector<8x128xf32> to vector<8x32xf32>
    %821 = arith.negf %820 : vector<8x32xf32>
    %822 = math.exp %821 : vector<8x32xf32>
    %cst_394 = arith.constant 1.000000e+00 : f32
    %823 = vector.broadcast %cst_394 : f32 to vector<8x32xf32>
    %824 = arith.addf %823, %822 : vector<8x32xf32>
    %825 = arith.divf %823, %824 : vector<8x32xf32>
    %826 = vector.extract_strided_slice %813 {offsets = [0, 64], sizes = [8, 32], strides = [1, 1]} : vector<8x128xf32> to vector<8x32xf32>
    %827 = math.tanh %826 : vector<8x32xf32>
    %828 = vector.extract_strided_slice %813 {offsets = [0, 96], sizes = [8, 32], strides = [1, 1]} : vector<8x128xf32> to vector<8x32xf32>
    %829 = arith.negf %828 : vector<8x32xf32>
    %830 = math.exp %829 : vector<8x32xf32>
    %cst_395 = arith.constant 1.000000e+00 : f32
    %831 = vector.broadcast %cst_395 : f32 to vector<8x32xf32>
    %832 = arith.addf %831, %830 : vector<8x32xf32>
    %833 = arith.divf %831, %832 : vector<8x32xf32>
    %c0_396 = arith.constant 0 : index
    %c0_397 = arith.constant 0 : index
    %834 = vector.load %arg14[%c0_396, %c0_397] : memref<8x32xf32, #tpu.memory_space<vmem>>, vector<8x32xf32>
    %835 = arith.mulf %825, %834 : vector<8x32xf32>
    %836 = arith.mulf %819, %827 : vector<8x32xf32>
    %837 = arith.addf %835, %836 : vector<8x32xf32>
    %c0_398 = arith.constant 0 : index
    %c0_399 = arith.constant 0 : index
    %838 = vector.load %arg14[%c0_398, %c0_399] : memref<8x32xf32, #tpu.memory_space<vmem>>, vector<8x32xf32>
    tpu.vector_store %arg14[%c0_398, %c0_399], %837 {strides = array<i32>} : memref<8x32xf32, #tpu.memory_space<vmem>>, vector<8x32xf32>,
    %839 = math.tanh %837 : vector<8x32xf32>
    %840 = arith.mulf %833, %839 : vector<8x32xf32>
    %c0_400 = arith.constant 0 : index
    %c0_401 = arith.constant 0 : index
    %841 = vector.load %arg13[%c0_400, %c0_401] : memref<8x32xf32, #tpu.memory_space<vmem>>, vector<8x32xf32>
    tpu.vector_store %arg13[%c0_400, %c0_401], %840 {strides = array<i32>} : memref<8x32xf32, #tpu.memory_space<vmem>>, vector<8x32xf32>,
    %c24_402 = arith.constant 24 : index
    %c0_403 = arith.constant 0 : index
    %842 = vector.load %arg18[%c24_402, %c0_403] : memref<128x128xf32, #tpu.memory_space<vmem>>, vector<8x128xf32>
    %c0_404 = arith.constant 0 : index
    %c0_405 = arith.constant 0 : index
    %843 = vector.load %arg15[%c0_404, %c0_405] : memref<8x32xf32, #tpu.memory_space<vmem>>, vector<8x32xf32>
    %c0_406 = arith.constant 0 : index
    %c0_407 = arith.constant 0 : index
    %844 = vector.load %arg8[%c0_406, %c0_407] : memref<32x128xf32, #tpu.memory_space<vmem>>, vector<32x128xf32>
    %cst_408 = arith.constant dense<0.000000e+00> : vector<8x128xf32>
    %845 = tpu.matmul %843, %844, %cst_408 {dimension_numbers = #tpu.dot_dimension_numbers<[1], [0], [0], [1], [0, 0, 1, 1], [], []>} : vector<8x32xf32>, vector<32x128xf32>, vector<8x128xf32> -> vector<8x128xf32>
    %846 = arith.addf %842, %845 : vector<8x128xf32>
    %847 = vector.extract_strided_slice %846 {offsets = [0, 0], sizes = [8, 32], strides = [1, 1]} : vector<8x128xf32> to vector<8x32xf32>
    %848 = arith.negf %847 : vector<8x32xf32>
    %849 = math.exp %848 : vector<8x32xf32>
    %cst_409 = arith.constant 1.000000e+00 : f32
    %850 = vector.broadcast %cst_409 : f32 to vector<8x32xf32>
    %851 = arith.addf %850, %849 : vector<8x32xf32>
    %852 = arith.divf %850, %851 : vector<8x32xf32>
    %853 = vector.extract_strided_slice %846 {offsets = [0, 32], sizes = [8, 32], strides = [1, 1]} : vector<8x128xf32> to vector<8x32xf32>
    %854 = arith.negf %853 : vector<8x32xf32>
    %855 = math.exp %854 : vector<8x32xf32>
    %cst_410 = arith.constant 1.000000e+00 : f32
    %856 = vector.broadcast %cst_410 : f32 to vector<8x32xf32>
    %857 = arith.addf %856, %855 : vector<8x32xf32>
    %858 = arith.divf %856, %857 : vector<8x32xf32>
    %859 = vector.extract_strided_slice %846 {offsets = [0, 64], sizes = [8, 32], strides = [1, 1]} : vector<8x128xf32> to vector<8x32xf32>
    %860 = math.tanh %859 : vector<8x32xf32>
    %861 = vector.extract_strided_slice %846 {offsets = [0, 96], sizes = [8, 32], strides = [1, 1]} : vector<8x128xf32> to vector<8x32xf32>
    %862 = arith.negf %861 : vector<8x32xf32>
    %863 = math.exp %862 : vector<8x32xf32>
    %cst_411 = arith.constant 1.000000e+00 : f32
    %864 = vector.broadcast %cst_411 : f32 to vector<8x32xf32>
    %865 = arith.addf %864, %863 : vector<8x32xf32>
    %866 = arith.divf %864, %865 : vector<8x32xf32>
    %c0_412 = arith.constant 0 : index
    %c0_413 = arith.constant 0 : index
    %867 = vector.load %arg16[%c0_412, %c0_413] : memref<8x32xf32, #tpu.memory_space<vmem>>, vector<8x32xf32>
    %868 = arith.mulf %858, %867 : vector<8x32xf32>
    %869 = arith.mulf %852, %860 : vector<8x32xf32>
    %870 = arith.addf %868, %869 : vector<8x32xf32>
    %c0_414 = arith.constant 0 : index
    %c0_415 = arith.constant 0 : index
    %871 = vector.load %arg16[%c0_414, %c0_415] : memref<8x32xf32, #tpu.memory_space<vmem>>, vector<8x32xf32>
    tpu.vector_store %arg16[%c0_414, %c0_415], %870 {strides = array<i32>} : memref<8x32xf32, #tpu.memory_space<vmem>>, vector<8x32xf32>,
    %872 = math.tanh %870 : vector<8x32xf32>
    %873 = arith.mulf %866, %872 : vector<8x32xf32>
    %c0_416 = arith.constant 0 : index
    %c0_417 = arith.constant 0 : index
    %874 = vector.load %arg15[%c0_416, %c0_417] : memref<8x32xf32, #tpu.memory_space<vmem>>, vector<8x32xf32>
    tpu.vector_store %arg15[%c0_416, %c0_417], %873 {strides = array<i32>} : memref<8x32xf32, #tpu.memory_space<vmem>>, vector<8x32xf32>,
    %c104_418 = arith.constant 104 : index
    %c0_419 = arith.constant 0 : index
    %875 = vector.load %arg17[%c104_418, %c0_419] : memref<128x128xf32, #tpu.memory_space<vmem>>, vector<8x128xf32>
    %c0_420 = arith.constant 0 : index
    %c0_421 = arith.constant 0 : index
    %876 = vector.load %arg13[%c0_420, %c0_421] : memref<8x32xf32, #tpu.memory_space<vmem>>, vector<8x32xf32>
    %c0_422 = arith.constant 0 : index
    %c0_423 = arith.constant 0 : index
    %877 = vector.load %arg7[%c0_422, %c0_423] : memref<32x128xf32, #tpu.memory_space<vmem>>, vector<32x128xf32>
    %cst_424 = arith.constant dense<0.000000e+00> : vector<8x128xf32>
    %878 = tpu.matmul %876, %877, %cst_424 {dimension_numbers = #tpu.dot_dimension_numbers<[1], [0], [0], [1], [0, 0, 1, 1], [], []>} : vector<8x32xf32>, vector<32x128xf32>, vector<8x128xf32> -> vector<8x128xf32>
    %879 = arith.addf %875, %878 : vector<8x128xf32>
    %880 = vector.extract_strided_slice %879 {offsets = [0, 0], sizes = [8, 32], strides = [1, 1]} : vector<8x128xf32> to vector<8x32xf32>
    %881 = arith.negf %880 : vector<8x32xf32>
    %882 = math.exp %881 : vector<8x32xf32>
    %cst_425 = arith.constant 1.000000e+00 : f32
    %883 = vector.broadcast %cst_425 : f32 to vector<8x32xf32>
    %884 = arith.addf %883, %882 : vector<8x32xf32>
    %885 = arith.divf %883, %884 : vector<8x32xf32>
    %886 = vector.extract_strided_slice %879 {offsets = [0, 32], sizes = [8, 32], strides = [1, 1]} : vector<8x128xf32> to vector<8x32xf32>
    %887 = arith.negf %886 : vector<8x32xf32>
    %888 = math.exp %887 : vector<8x32xf32>
    %cst_426 = arith.constant 1.000000e+00 : f32
    %889 = vector.broadcast %cst_426 : f32 to vector<8x32xf32>
    %890 = arith.addf %889, %888 : vector<8x32xf32>
    %891 = arith.divf %889, %890 : vector<8x32xf32>
    %892 = vector.extract_strided_slice %879 {offsets = [0, 64], sizes = [8, 32], strides = [1, 1]} : vector<8x128xf32> to vector<8x32xf32>
    %893 = math.tanh %892 : vector<8x32xf32>
    %894 = vector.extract_strided_slice %879 {offsets = [0, 96], sizes = [8, 32], strides = [1, 1]} : vector<8x128xf32> to vector<8x32xf32>
    %895 = arith.negf %894 : vector<8x32xf32>
    %896 = math.exp %895 : vector<8x32xf32>
    %cst_427 = arith.constant 1.000000e+00 : f32
    %897 = vector.broadcast %cst_427 : f32 to vector<8x32xf32>
    %898 = arith.addf %897, %896 : vector<8x32xf32>
    %899 = arith.divf %897, %898 : vector<8x32xf32>
    %c0_428 = arith.constant 0 : index
    %c0_429 = arith.constant 0 : index
    %900 = vector.load %arg14[%c0_428, %c0_429] : memref<8x32xf32, #tpu.memory_space<vmem>>, vector<8x32xf32>
    %901 = arith.mulf %891, %900 : vector<8x32xf32>
    %902 = arith.mulf %885, %893 : vector<8x32xf32>
    %903 = arith.addf %901, %902 : vector<8x32xf32>
    %c0_430 = arith.constant 0 : index
    %c0_431 = arith.constant 0 : index
    %904 = vector.load %arg14[%c0_430, %c0_431] : memref<8x32xf32, #tpu.memory_space<vmem>>, vector<8x32xf32>
    tpu.vector_store %arg14[%c0_430, %c0_431], %903 {strides = array<i32>} : memref<8x32xf32, #tpu.memory_space<vmem>>, vector<8x32xf32>,
    %905 = math.tanh %903 : vector<8x32xf32>
    %906 = arith.mulf %899, %905 : vector<8x32xf32>
    %c0_432 = arith.constant 0 : index
    %c0_433 = arith.constant 0 : index
    %907 = vector.load %arg13[%c0_432, %c0_433] : memref<8x32xf32, #tpu.memory_space<vmem>>, vector<8x32xf32>
    tpu.vector_store %arg13[%c0_432, %c0_433], %906 {strides = array<i32>} : memref<8x32xf32, #tpu.memory_space<vmem>>, vector<8x32xf32>,
    %c16_434 = arith.constant 16 : index
    %c0_435 = arith.constant 0 : index
    %908 = vector.load %arg18[%c16_434, %c0_435] : memref<128x128xf32, #tpu.memory_space<vmem>>, vector<8x128xf32>
    %c0_436 = arith.constant 0 : index
    %c0_437 = arith.constant 0 : index
    %909 = vector.load %arg15[%c0_436, %c0_437] : memref<8x32xf32, #tpu.memory_space<vmem>>, vector<8x32xf32>
    %c0_438 = arith.constant 0 : index
    %c0_439 = arith.constant 0 : index
    %910 = vector.load %arg8[%c0_438, %c0_439] : memref<32x128xf32, #tpu.memory_space<vmem>>, vector<32x128xf32>
    %cst_440 = arith.constant dense<0.000000e+00> : vector<8x128xf32>
    %911 = tpu.matmul %909, %910, %cst_440 {dimension_numbers = #tpu.dot_dimension_numbers<[1], [0], [0], [1], [0, 0, 1, 1], [], []>} : vector<8x32xf32>, vector<32x128xf32>, vector<8x128xf32> -> vector<8x128xf32>
    %912 = arith.addf %908, %911 : vector<8x128xf32>
    %913 = vector.extract_strided_slice %912 {offsets = [0, 0], sizes = [8, 32], strides = [1, 1]} : vector<8x128xf32> to vector<8x32xf32>
    %914 = arith.negf %913 : vector<8x32xf32>
    %915 = math.exp %914 : vector<8x32xf32>
    %cst_441 = arith.constant 1.000000e+00 : f32
    %916 = vector.broadcast %cst_441 : f32 to vector<8x32xf32>
    %917 = arith.addf %916, %915 : vector<8x32xf32>
    %918 = arith.divf %916, %917 : vector<8x32xf32>
    %919 = vector.extract_strided_slice %912 {offsets = [0, 32], sizes = [8, 32], strides = [1, 1]} : vector<8x128xf32> to vector<8x32xf32>
    %920 = arith.negf %919 : vector<8x32xf32>
    %921 = math.exp %920 : vector<8x32xf32>
    %cst_442 = arith.constant 1.000000e+00 : f32
    %922 = vector.broadcast %cst_442 : f32 to vector<8x32xf32>
    %923 = arith.addf %922, %921 : vector<8x32xf32>
    %924 = arith.divf %922, %923 : vector<8x32xf32>
    %925 = vector.extract_strided_slice %912 {offsets = [0, 64], sizes = [8, 32], strides = [1, 1]} : vector<8x128xf32> to vector<8x32xf32>
    %926 = math.tanh %925 : vector<8x32xf32>
    %927 = vector.extract_strided_slice %912 {offsets = [0, 96], sizes = [8, 32], strides = [1, 1]} : vector<8x128xf32> to vector<8x32xf32>
    %928 = arith.negf %927 : vector<8x32xf32>
    %929 = math.exp %928 : vector<8x32xf32>
    %cst_443 = arith.constant 1.000000e+00 : f32
    %930 = vector.broadcast %cst_443 : f32 to vector<8x32xf32>
    %931 = arith.addf %930, %929 : vector<8x32xf32>
    %932 = arith.divf %930, %931 : vector<8x32xf32>
    %c0_444 = arith.constant 0 : index
    %c0_445 = arith.constant 0 : index
    %933 = vector.load %arg16[%c0_444, %c0_445] : memref<8x32xf32, #tpu.memory_space<vmem>>, vector<8x32xf32>
    %934 = arith.mulf %924, %933 : vector<8x32xf32>
    %935 = arith.mulf %918, %926 : vector<8x32xf32>
    %936 = arith.addf %934, %935 : vector<8x32xf32>
    %c0_446 = arith.constant 0 : index
    %c0_447 = arith.constant 0 : index
    %937 = vector.load %arg16[%c0_446, %c0_447] : memref<8x32xf32, #tpu.memory_space<vmem>>, vector<8x32xf32>
    tpu.vector_store %arg16[%c0_446, %c0_447], %936 {strides = array<i32>} : memref<8x32xf32, #tpu.memory_space<vmem>>, vector<8x32xf32>,
    %938 = math.tanh %936 : vector<8x32xf32>
    %939 = arith.mulf %932, %938 : vector<8x32xf32>
    %c0_448 = arith.constant 0 : index
    %c0_449 = arith.constant 0 : index
    %940 = vector.load %arg15[%c0_448, %c0_449] : memref<8x32xf32, #tpu.memory_space<vmem>>, vector<8x32xf32>
    tpu.vector_store %arg15[%c0_448, %c0_449], %939 {strides = array<i32>} : memref<8x32xf32, #tpu.memory_space<vmem>>, vector<8x32xf32>,
    %c112_450 = arith.constant 112 : index
    %c0_451 = arith.constant 0 : index
    %941 = vector.load %arg17[%c112_450, %c0_451] : memref<128x128xf32, #tpu.memory_space<vmem>>, vector<8x128xf32>
    %c0_452 = arith.constant 0 : index
    %c0_453 = arith.constant 0 : index
    %942 = vector.load %arg13[%c0_452, %c0_453] : memref<8x32xf32, #tpu.memory_space<vmem>>, vector<8x32xf32>
    %c0_454 = arith.constant 0 : index
    %c0_455 = arith.constant 0 : index
    %943 = vector.load %arg7[%c0_454, %c0_455] : memref<32x128xf32, #tpu.memory_space<vmem>>, vector<32x128xf32>
    %cst_456 = arith.constant dense<0.000000e+00> : vector<8x128xf32>
    %944 = tpu.matmul %942, %943, %cst_456 {dimension_numbers = #tpu.dot_dimension_numbers<[1], [0], [0], [1], [0, 0, 1, 1], [], []>} : vector<8x32xf32>, vector<32x128xf32>, vector<8x128xf32> -> vector<8x128xf32>
    %945 = arith.addf %941, %944 : vector<8x128xf32>
    %946 = vector.extract_strided_slice %945 {offsets = [0, 0], sizes = [8, 32], strides = [1, 1]} : vector<8x128xf32> to vector<8x32xf32>
    %947 = arith.negf %946 : vector<8x32xf32>
    %948 = math.exp %947 : vector<8x32xf32>
    %cst_457 = arith.constant 1.000000e+00 : f32
    %949 = vector.broadcast %cst_457 : f32 to vector<8x32xf32>
    %950 = arith.addf %949, %948 : vector<8x32xf32>
    %951 = arith.divf %949, %950 : vector<8x32xf32>
    %952 = vector.extract_strided_slice %945 {offsets = [0, 32], sizes = [8, 32], strides = [1, 1]} : vector<8x128xf32> to vector<8x32xf32>
    %953 = arith.negf %952 : vector<8x32xf32>
    %954 = math.exp %953 : vector<8x32xf32>
    %cst_458 = arith.constant 1.000000e+00 : f32
    %955 = vector.broadcast %cst_458 : f32 to vector<8x32xf32>
    %956 = arith.addf %955, %954 : vector<8x32xf32>
    %957 = arith.divf %955, %956 : vector<8x32xf32>
    %958 = vector.extract_strided_slice %945 {offsets = [0, 64], sizes = [8, 32], strides = [1, 1]} : vector<8x128xf32> to vector<8x32xf32>
    %959 = math.tanh %958 : vector<8x32xf32>
    %960 = vector.extract_strided_slice %945 {offsets = [0, 96], sizes = [8, 32], strides = [1, 1]} : vector<8x128xf32> to vector<8x32xf32>
    %961 = arith.negf %960 : vector<8x32xf32>
    %962 = math.exp %961 : vector<8x32xf32>
    %cst_459 = arith.constant 1.000000e+00 : f32
    %963 = vector.broadcast %cst_459 : f32 to vector<8x32xf32>
    %964 = arith.addf %963, %962 : vector<8x32xf32>
    %965 = arith.divf %963, %964 : vector<8x32xf32>
    %c0_460 = arith.constant 0 : index
    %c0_461 = arith.constant 0 : index
    %966 = vector.load %arg14[%c0_460, %c0_461] : memref<8x32xf32, #tpu.memory_space<vmem>>, vector<8x32xf32>
    %967 = arith.mulf %957, %966 : vector<8x32xf32>
    %968 = arith.mulf %951, %959 : vector<8x32xf32>
    %969 = arith.addf %967, %968 : vector<8x32xf32>
    %c0_462 = arith.constant 0 : index
    %c0_463 = arith.constant 0 : index
    %970 = vector.load %arg14[%c0_462, %c0_463] : memref<8x32xf32, #tpu.memory_space<vmem>>, vector<8x32xf32>
    tpu.vector_store %arg14[%c0_462, %c0_463], %969 {strides = array<i32>} : memref<8x32xf32, #tpu.memory_space<vmem>>, vector<8x32xf32>,
    %971 = math.tanh %969 : vector<8x32xf32>
    %972 = arith.mulf %965, %971 : vector<8x32xf32>
    %c0_464 = arith.constant 0 : index
    %c0_465 = arith.constant 0 : index
    %973 = vector.load %arg13[%c0_464, %c0_465] : memref<8x32xf32, #tpu.memory_space<vmem>>, vector<8x32xf32>
    tpu.vector_store %arg13[%c0_464, %c0_465], %972 {strides = array<i32>} : memref<8x32xf32, #tpu.memory_space<vmem>>, vector<8x32xf32>,
    %c8_466 = arith.constant 8 : index
    %c0_467 = arith.constant 0 : index
    %974 = vector.load %arg18[%c8_466, %c0_467] : memref<128x128xf32, #tpu.memory_space<vmem>>, vector<8x128xf32>
    %c0_468 = arith.constant 0 : index
    %c0_469 = arith.constant 0 : index
    %975 = vector.load %arg15[%c0_468, %c0_469] : memref<8x32xf32, #tpu.memory_space<vmem>>, vector<8x32xf32>
    %c0_470 = arith.constant 0 : index
    %c0_471 = arith.constant 0 : index
    %976 = vector.load %arg8[%c0_470, %c0_471] : memref<32x128xf32, #tpu.memory_space<vmem>>, vector<32x128xf32>
    %cst_472 = arith.constant dense<0.000000e+00> : vector<8x128xf32>
    %977 = tpu.matmul %975, %976, %cst_472 {dimension_numbers = #tpu.dot_dimension_numbers<[1], [0], [0], [1], [0, 0, 1, 1], [], []>} : vector<8x32xf32>, vector<32x128xf32>, vector<8x128xf32> -> vector<8x128xf32>
    %978 = arith.addf %974, %977 : vector<8x128xf32>
    %979 = vector.extract_strided_slice %978 {offsets = [0, 0], sizes = [8, 32], strides = [1, 1]} : vector<8x128xf32> to vector<8x32xf32>
    %980 = arith.negf %979 : vector<8x32xf32>
    %981 = math.exp %980 : vector<8x32xf32>
    %cst_473 = arith.constant 1.000000e+00 : f32
    %982 = vector.broadcast %cst_473 : f32 to vector<8x32xf32>
    %983 = arith.addf %982, %981 : vector<8x32xf32>
    %984 = arith.divf %982, %983 : vector<8x32xf32>
    %985 = vector.extract_strided_slice %978 {offsets = [0, 32], sizes = [8, 32], strides = [1, 1]} : vector<8x128xf32> to vector<8x32xf32>
    %986 = arith.negf %985 : vector<8x32xf32>
    %987 = math.exp %986 : vector<8x32xf32>
    %cst_474 = arith.constant 1.000000e+00 : f32
    %988 = vector.broadcast %cst_474 : f32 to vector<8x32xf32>
    %989 = arith.addf %988, %987 : vector<8x32xf32>
    %990 = arith.divf %988, %989 : vector<8x32xf32>
    %991 = vector.extract_strided_slice %978 {offsets = [0, 64], sizes = [8, 32], strides = [1, 1]} : vector<8x128xf32> to vector<8x32xf32>
    %992 = math.tanh %991 : vector<8x32xf32>
    %993 = vector.extract_strided_slice %978 {offsets = [0, 96], sizes = [8, 32], strides = [1, 1]} : vector<8x128xf32> to vector<8x32xf32>
    %994 = arith.negf %993 : vector<8x32xf32>
    %995 = math.exp %994 : vector<8x32xf32>
    %cst_475 = arith.constant 1.000000e+00 : f32
    %996 = vector.broadcast %cst_475 : f32 to vector<8x32xf32>
    %997 = arith.addf %996, %995 : vector<8x32xf32>
    %998 = arith.divf %996, %997 : vector<8x32xf32>
    %c0_476 = arith.constant 0 : index
    %c0_477 = arith.constant 0 : index
    %999 = vector.load %arg16[%c0_476, %c0_477] : memref<8x32xf32, #tpu.memory_space<vmem>>, vector<8x32xf32>
    %1000 = arith.mulf %990, %999 : vector<8x32xf32>
    %1001 = arith.mulf %984, %992 : vector<8x32xf32>
    %1002 = arith.addf %1000, %1001 : vector<8x32xf32>
    %c0_478 = arith.constant 0 : index
    %c0_479 = arith.constant 0 : index
    %1003 = vector.load %arg16[%c0_478, %c0_479] : memref<8x32xf32, #tpu.memory_space<vmem>>, vector<8x32xf32>
    tpu.vector_store %arg16[%c0_478, %c0_479], %1002 {strides = array<i32>} : memref<8x32xf32, #tpu.memory_space<vmem>>, vector<8x32xf32>,
    %1004 = math.tanh %1002 : vector<8x32xf32>
    %1005 = arith.mulf %998, %1004 : vector<8x32xf32>
    %c0_480 = arith.constant 0 : index
    %c0_481 = arith.constant 0 : index
    %1006 = vector.load %arg15[%c0_480, %c0_481] : memref<8x32xf32, #tpu.memory_space<vmem>>, vector<8x32xf32>
    tpu.vector_store %arg15[%c0_480, %c0_481], %1005 {strides = array<i32>} : memref<8x32xf32, #tpu.memory_space<vmem>>, vector<8x32xf32>,
    %c120_482 = arith.constant 120 : index
    %c0_483 = arith.constant 0 : index
    %1007 = vector.load %arg17[%c120_482, %c0_483] : memref<128x128xf32, #tpu.memory_space<vmem>>, vector<8x128xf32>
    %c0_484 = arith.constant 0 : index
    %c0_485 = arith.constant 0 : index
    %1008 = vector.load %arg13[%c0_484, %c0_485] : memref<8x32xf32, #tpu.memory_space<vmem>>, vector<8x32xf32>
    %c0_486 = arith.constant 0 : index
    %c0_487 = arith.constant 0 : index
    %1009 = vector.load %arg7[%c0_486, %c0_487] : memref<32x128xf32, #tpu.memory_space<vmem>>, vector<32x128xf32>
    %cst_488 = arith.constant dense<0.000000e+00> : vector<8x128xf32>
    %1010 = tpu.matmul %1008, %1009, %cst_488 {dimension_numbers = #tpu.dot_dimension_numbers<[1], [0], [0], [1], [0, 0, 1, 1], [], []>} : vector<8x32xf32>, vector<32x128xf32>, vector<8x128xf32> -> vector<8x128xf32>
    %1011 = arith.addf %1007, %1010 : vector<8x128xf32>
    %1012 = vector.extract_strided_slice %1011 {offsets = [0, 0], sizes = [8, 32], strides = [1, 1]} : vector<8x128xf32> to vector<8x32xf32>
    %1013 = arith.negf %1012 : vector<8x32xf32>
    %1014 = math.exp %1013 : vector<8x32xf32>
    %cst_489 = arith.constant 1.000000e+00 : f32
    %1015 = vector.broadcast %cst_489 : f32 to vector<8x32xf32>
    %1016 = arith.addf %1015, %1014 : vector<8x32xf32>
    %1017 = arith.divf %1015, %1016 : vector<8x32xf32>
    %1018 = vector.extract_strided_slice %1011 {offsets = [0, 32], sizes = [8, 32], strides = [1, 1]} : vector<8x128xf32> to vector<8x32xf32>
    %1019 = arith.negf %1018 : vector<8x32xf32>
    %1020 = math.exp %1019 : vector<8x32xf32>
    %cst_490 = arith.constant 1.000000e+00 : f32
    %1021 = vector.broadcast %cst_490 : f32 to vector<8x32xf32>
    %1022 = arith.addf %1021, %1020 : vector<8x32xf32>
    %1023 = arith.divf %1021, %1022 : vector<8x32xf32>
    %1024 = vector.extract_strided_slice %1011 {offsets = [0, 64], sizes = [8, 32], strides = [1, 1]} : vector<8x128xf32> to vector<8x32xf32>
    %1025 = math.tanh %1024 : vector<8x32xf32>
    %1026 = vector.extract_strided_slice %1011 {offsets = [0, 96], sizes = [8, 32], strides = [1, 1]} : vector<8x128xf32> to vector<8x32xf32>
    %1027 = arith.negf %1026 : vector<8x32xf32>
    %1028 = math.exp %1027 : vector<8x32xf32>
    %cst_491 = arith.constant 1.000000e+00 : f32
    %1029 = vector.broadcast %cst_491 : f32 to vector<8x32xf32>
    %1030 = arith.addf %1029, %1028 : vector<8x32xf32>
    %1031 = arith.divf %1029, %1030 : vector<8x32xf32>
    %c0_492 = arith.constant 0 : index
    %c0_493 = arith.constant 0 : index
    %1032 = vector.load %arg14[%c0_492, %c0_493] : memref<8x32xf32, #tpu.memory_space<vmem>>, vector<8x32xf32>
    %1033 = arith.mulf %1023, %1032 : vector<8x32xf32>
    %1034 = arith.mulf %1017, %1025 : vector<8x32xf32>
    %1035 = arith.addf %1033, %1034 : vector<8x32xf32>
    %c0_494 = arith.constant 0 : index
    %c0_495 = arith.constant 0 : index
    %1036 = vector.load %arg14[%c0_494, %c0_495] : memref<8x32xf32, #tpu.memory_space<vmem>>, vector<8x32xf32>
    tpu.vector_store %arg14[%c0_494, %c0_495], %1035 {strides = array<i32>} : memref<8x32xf32, #tpu.memory_space<vmem>>, vector<8x32xf32>,
    %1037 = math.tanh %1035 : vector<8x32xf32>
    %1038 = arith.mulf %1031, %1037 : vector<8x32xf32>
    %c0_496 = arith.constant 0 : index
    %c0_497 = arith.constant 0 : index
    %1039 = vector.load %arg13[%c0_496, %c0_497] : memref<8x32xf32, #tpu.memory_space<vmem>>, vector<8x32xf32>
    tpu.vector_store %arg13[%c0_496, %c0_497], %1038 {strides = array<i32>} : memref<8x32xf32, #tpu.memory_space<vmem>>, vector<8x32xf32>,
    %c0_498 = arith.constant 0 : index
    %c0_499 = arith.constant 0 : index
    %1040 = vector.load %arg18[%c0_498, %c0_499] : memref<128x128xf32, #tpu.memory_space<vmem>>, vector<8x128xf32>
    %c0_500 = arith.constant 0 : index
    %c0_501 = arith.constant 0 : index
    %1041 = vector.load %arg15[%c0_500, %c0_501] : memref<8x32xf32, #tpu.memory_space<vmem>>, vector<8x32xf32>
    %c0_502 = arith.constant 0 : index
    %c0_503 = arith.constant 0 : index
    %1042 = vector.load %arg8[%c0_502, %c0_503] : memref<32x128xf32, #tpu.memory_space<vmem>>, vector<32x128xf32>
    %cst_504 = arith.constant dense<0.000000e+00> : vector<8x128xf32>
    %1043 = tpu.matmul %1041, %1042, %cst_504 {dimension_numbers = #tpu.dot_dimension_numbers<[1], [0], [0], [1], [0, 0, 1, 1], [], []>} : vector<8x32xf32>, vector<32x128xf32>, vector<8x128xf32> -> vector<8x128xf32>
    %1044 = arith.addf %1040, %1043 : vector<8x128xf32>
    %1045 = vector.extract_strided_slice %1044 {offsets = [0, 0], sizes = [8, 32], strides = [1, 1]} : vector<8x128xf32> to vector<8x32xf32>
    %1046 = arith.negf %1045 : vector<8x32xf32>
    %1047 = math.exp %1046 : vector<8x32xf32>
    %cst_505 = arith.constant 1.000000e+00 : f32
    %1048 = vector.broadcast %cst_505 : f32 to vector<8x32xf32>
    %1049 = arith.addf %1048, %1047 : vector<8x32xf32>
    %1050 = arith.divf %1048, %1049 : vector<8x32xf32>
    %1051 = vector.extract_strided_slice %1044 {offsets = [0, 32], sizes = [8, 32], strides = [1, 1]} : vector<8x128xf32> to vector<8x32xf32>
    %1052 = arith.negf %1051 : vector<8x32xf32>
    %1053 = math.exp %1052 : vector<8x32xf32>
    %cst_506 = arith.constant 1.000000e+00 : f32
    %1054 = vector.broadcast %cst_506 : f32 to vector<8x32xf32>
    %1055 = arith.addf %1054, %1053 : vector<8x32xf32>
    %1056 = arith.divf %1054, %1055 : vector<8x32xf32>
    %1057 = vector.extract_strided_slice %1044 {offsets = [0, 64], sizes = [8, 32], strides = [1, 1]} : vector<8x128xf32> to vector<8x32xf32>
    %1058 = math.tanh %1057 : vector<8x32xf32>
    %1059 = vector.extract_strided_slice %1044 {offsets = [0, 96], sizes = [8, 32], strides = [1, 1]} : vector<8x128xf32> to vector<8x32xf32>
    %1060 = arith.negf %1059 : vector<8x32xf32>
    %1061 = math.exp %1060 : vector<8x32xf32>
    %cst_507 = arith.constant 1.000000e+00 : f32
    %1062 = vector.broadcast %cst_507 : f32 to vector<8x32xf32>
    %1063 = arith.addf %1062, %1061 : vector<8x32xf32>
    %1064 = arith.divf %1062, %1063 : vector<8x32xf32>
    %c0_508 = arith.constant 0 : index
    %c0_509 = arith.constant 0 : index
    %1065 = vector.load %arg16[%c0_508, %c0_509] : memref<8x32xf32, #tpu.memory_space<vmem>>, vector<8x32xf32>
    %1066 = arith.mulf %1056, %1065 : vector<8x32xf32>
    %1067 = arith.mulf %1050, %1058 : vector<8x32xf32>
    %1068 = arith.addf %1066, %1067 : vector<8x32xf32>
    %c0_510 = arith.constant 0 : index
    %c0_511 = arith.constant 0 : index
    %1069 = vector.load %arg16[%c0_510, %c0_511] : memref<8x32xf32, #tpu.memory_space<vmem>>, vector<8x32xf32>
    tpu.vector_store %arg16[%c0_510, %c0_511], %1068 {strides = array<i32>} : memref<8x32xf32, #tpu.memory_space<vmem>>, vector<8x32xf32>,
    %1070 = math.tanh %1068 : vector<8x32xf32>
    %1071 = arith.mulf %1064, %1070 : vector<8x32xf32>
    %c0_512 = arith.constant 0 : index
    %c0_513 = arith.constant 0 : index
    %1072 = vector.load %arg15[%c0_512, %c0_513] : memref<8x32xf32, #tpu.memory_space<vmem>>, vector<8x32xf32>
    tpu.vector_store %arg15[%c0_512, %c0_513], %1071 {strides = array<i32>} : memref<8x32xf32, #tpu.memory_space<vmem>>, vector<8x32xf32>,
    %c0_i32_514 = arith.constant 0 : i32
    %1073 = arith.cmpi eq, %arg0, %c0_i32_514 : i32
    %1074 = arith.extui %1073 : i1 to i32
    %c0_i32_515 = arith.constant 0 : i32
    %1075 = arith.cmpi ne, %1074, %c0_i32_515 : i32
    scf.if %1075 {
      %c0_516 = arith.constant 0 : index
      %c0_517 = arith.constant 0 : index
      %1076 = vector.load %arg15[%c0_516, %c0_517] : memref<8x32xf32, #tpu.memory_space<vmem>>, vector<8x32xf32>
      %c0_518 = arith.constant 0 : index
      %c0_519 = arith.constant 0 : index
      %1077 = vector.load %arg9[%c0_518, %c0_519] : memref<32x4xf32, #tpu.memory_space<vmem>>, vector<32x4xf32>
      %cst_520 = arith.constant dense<0.000000e+00> : vector<8x4xf32>
      %1078 = tpu.matmul %1076, %1077, %cst_520 {dimension_numbers = #tpu.dot_dimension_numbers<[1], [0], [0], [1], [0, 0, 1, 1], [], []>} : vector<8x32xf32>, vector<32x4xf32>, vector<8x4xf32> -> vector<8x4xf32>
      %c0_521 = arith.constant 0 : index
      %c0_522 = arith.constant 0 : index
      %1079 = vector.load %arg13[%c0_521, %c0_522] : memref<8x32xf32, #tpu.memory_space<vmem>>, vector<8x32xf32>
      %c0_523 = arith.constant 0 : index
      %c0_524 = arith.constant 0 : index
      %1080 = vector.load %arg10[%c0_523, %c0_524] : memref<32x4xf32, #tpu.memory_space<vmem>>, vector<32x4xf32>
      %cst_525 = arith.constant dense<0.000000e+00> : vector<8x4xf32>
      %1081 = tpu.matmul %1079, %1080, %cst_525 {dimension_numbers = #tpu.dot_dimension_numbers<[1], [0], [0], [1], [0, 0, 1, 1], [], []>} : vector<8x32xf32>, vector<32x4xf32>, vector<8x4xf32> -> vector<8x4xf32>
      %1082 = arith.addf %1078, %1081 : vector<8x4xf32>
      %c0_526 = arith.constant 0 : index
      %c0_527 = arith.constant 0 : index
      %1083 = vector.load %arg11[%c0_526, %c0_527] : memref<1x4xf32, #tpu.memory_space<vmem>>, vector<1x4xf32>
      %1084 = vector.broadcast %1083 : vector<1x4xf32> to vector<8x4xf32>
      %1085 = arith.addf %1082, %1084 : vector<8x4xf32>
      %c0_528 = arith.constant 0 : index
      %c0_529 = arith.constant 0 : index
      %1086 = vector.load %arg12[%c0_528, %c0_529] : memref<8x4xf32, #tpu.memory_space<vmem>>, vector<8x4xf32>
      tpu.vector_store %arg12[%c0_528, %c0_529], %1085 {strides = array<i32>} : memref<8x4xf32, #tpu.memory_space<vmem>>, vector<8x4xf32>,
    } else {
    }
    return
  }
  func.func @transform_0(%arg0: i32) -> (i32, i32) {
    %c0_i32 = arith.constant 0 : i32
    %c0_i32_0 = arith.constant 0 : i32
    return %arg0, %c0_i32 : i32, i32
  }
  func.func @transform_1(%arg0: i32) -> (i32, i32) {
    %c0_i32 = arith.constant 0 : i32
    %0 = arith.subi %c0_i32, %arg0 : i32
    %c0_i32_0 = arith.constant 0 : i32
    %c0_i32_1 = arith.constant 0 : i32
    return %0, %c0_i32_0 : i32, i32
  }
  func.func @transform_2(%arg0: i32) -> (i32, i32) {
    %c0_i32 = arith.constant 0 : i32
    %c0_i32_0 = arith.constant 0 : i32
    %c0_i32_1 = arith.constant 0 : i32
    return %c0_i32, %c0_i32_0 : i32, i32
  }
  func.func @transform_3(%arg0: i32) -> (i32, i32) {
    %c0_i32 = arith.constant 0 : i32
    %c0_i32_0 = arith.constant 0 : i32
    %c0_i32_1 = arith.constant 0 : i32
    return %c0_i32, %c0_i32_0 : i32, i32
  }
  func.func @transform_4(%arg0: i32) -> (i32, i32) {
    %c0_i32 = arith.constant 0 : i32
    %c0_i32_0 = arith.constant 0 : i32
    %c0_i32_1 = arith.constant 0 : i32
    return %c0_i32, %c0_i32_0 : i32, i32
  }
  func.func @transform_5(%arg0: i32) -> (i32, i32) {
    %c0_i32 = arith.constant 0 : i32
    %c0_i32_0 = arith.constant 0 : i32
    %c0_i32_1 = arith.constant 0 : i32
    return %c0_i32, %c0_i32_0 : i32, i32
  }
  func.func @transform_6(%arg0: i32) -> (i32, i32) {
    %c0_i32 = arith.constant 0 : i32
    %c0_i32_0 = arith.constant 0 : i32
    %c0_i32_1 = arith.constant 0 : i32
    return %c0_i32, %c0_i32_0 : i32, i32
  }
  func.func @transform_7(%arg0: i32) -> (i32, i32) {
    %c0_i32 = arith.constant 0 : i32
    %c0_i32_0 = arith.constant 0 : i32
    %c0_i32_1 = arith.constant 0 : i32
    return %c0_i32, %c0_i32_0 : i32, i32
  }
  func.func @transform_8(%arg0: i32) -> (i32, i32) {
    %c0_i32 = arith.constant 0 : i32
    %c0_i32_0 = arith.constant 0 : i32
    %c0_i32_1 = arith.constant 0 : i32
    return %c0_i32, %c0_i32_0 : i32, i32
  }
  func.func @transform_9(%arg0: i32) -> (i32, i32) {
    %c0_i32 = arith.constant 0 : i32
    %c0_i32_0 = arith.constant 0 : i32
    %c0_i32_1 = arith.constant 0 : i32
    return %c0_i32, %c0_i32_0 : i32, i32
  }
  func.func @transform_10(%arg0: i32) -> (i32, i32) {
    %c0_i32 = arith.constant 0 : i32
    %c0_i32_0 = arith.constant 0 : i32
    %c0_i32_1 = arith.constant 0 : i32
    return %c0_i32, %c0_i32_0 : i32, i32
  }
  func.func @transform_11(%arg0: i32) -> (i32, i32) {
    %c0_i32 = arith.constant 0 : i32
    %c0_i32_0 = arith.constant 0 : i32
    %c0_i32_1 = arith.constant 0 : i32
    return %c0_i32, %c0_i32_0 : i32, i32
  }
}

</mosaic_0001>

<bundles_post_ra>
// kernel: tpu_custom_call.1
= control target key start
LH: loop header
LB: loop body
LE: loop exit
PB: predicated region body
PF: predicated region fallthrough
CT: control target
= control target key end

     0   :  { %vm94_vm0 = vcmask 130048   ;;  %vm64_vm1 = vcmask 261120   ;;  %v5737_v6 = vmov 0.0   ;;  %v5738_v15 = vmov 0.0|0.0   ;;  %s5739_s28 = smov 32   ;;  %s6681_s2 = inlined_call_operand.vmem [shape: f32[16,128], index: 2, kind: input, shape index: {}]   ;;  %s6682_s0 = inlined_call_operand.vmem [shape: f32[128,16], index: 0, kind: input, shape index: {}]   ;;  %s6683_s4 = inlined_call_operand.vmem [shape: f32[16,128], index: 4, kind: input, shape index: {}]   ;;  %s6684_s6 = inlined_call_operand.vmem [shape: f32[32,128], index: 6, kind: input, shape index: {}]   ;;  %s6685_s1 = inlined_call_operand.vmem [shape: f32[128,16], index: 1, kind: input, shape index: {}]   ;;  %s6686_s7 = inlined_call_operand.vmem [shape: f32[32,128], index: 7, kind: input, shape index: {}]   ;;  %s6687_s3 = inlined_call_operand.vmem [shape: f32[1,128], index: 3, kind: input, shape index: {}]   ;;  %s6688_s5 = inlined_call_operand.vmem [shape: f32[1,128], index: 5, kind: input, shape index: {}]   ;;  %s6689_s9 = inlined_call_operand.vmem [shape: f32[32,4], index: 9, kind: input, shape index: {}]   ;;  %s6690_s8 = inlined_call_operand.vmem [shape: f32[32,4], index: 8, kind: input, shape index: {}]   ;;  %s6691_s10 = inlined_call_operand.vmem [shape: f32[1,4], index: 10, kind: input, shape index: {}]   ;;  %s6692_s11 = inlined_call_operand.vmem [shape: f32[8,4], index: 11, kind: output, shape index: {}]  }
   0x1   :  { %v85_v0 = vld [vmem:[%s6681_s2] sm:$0xff]  ;;  %v86_v1 = vld [vmem:[%s6681_s2 + $0x8] sm:$0xff]  ;;  %65 = vst.msk [vmem:[#allocation2] sm:$0xff] %vm64_vm1, %v5737_v6  ;;  %66 = vst.msk [vmem:[#allocation3] sm:$0xff] %vm64_vm1, %v5737_v6  ;;  %vm5740_vm2 = vmmov 0   ;;  %vm4514_vm3 = vcmask 31744  }
   0x2   :  { %v69_v2 = vld [vmem:[%s6682_s0] sm:$0xff]  ;;  %v5263_v3 = vpack.c.bf16 %v86_v1, %v85_v0  ;;  %v321_v5 = vld [vmem:[%s6683_s4 + $0x8] sm:$0xff]  ;;  %67 = vst.msk [vmem:[#allocation4] sm:$0xff] %vm64_vm1, %v5737_v6  ;;  %68 = vst.msk [vmem:[#allocation5] sm:$0xff] %vm64_vm1, %v5737_v6 }
   0x3   :  { %4837 = vmatprep.mubr.msk.f32.mxu0 %vm94_vm0, %v69_v2  ;;  %v320_v4 = vld [vmem:[%s6683_s4] sm:$0xff]  ;;  %v541_v9 = vld [vmem:[%s6684_s6 + $0x8] sm:$0xff]  ;;  %v71_v16 = vld [vmem:[%s6682_s0 + $0x10] sm:$0xff] }
   0x4   :  { %v5267_v7 = vpack.c.bf16 %v321_v5, %v320_v4  ;;  %v540_v8 = vld [vmem:[%s6684_s6] sm:$0xff]  ;;  %5264 = vmatprep.subr.bf16.mxu0 %v5263_v3  ;;  %v70_v11 = vld [vmem:[%s6682_s0 + $0x8] sm:$0xff]  ;;  %v306_v19 = vld [vmem:[%s6685_s1 + $0x10] sm:$0xff] }
   0x5   :  { %v304_v10 = vld [vmem:[%s6685_s1] sm:$0xff]  ;;  %5266 = vmatpush3.bf16.msra.mxu0 %v5263_v3  ;;  %v5840_v12 = vpack.c.bf16 %v541_v9, %v540_v8  ;;  %v661_v14 = vld [vmem:[%s6686_s7 + $0x8] sm:$0xff]  ;;  %v72_v20 = vld [vmem:[%s6682_s0 + $0x18] sm:$0xff] }
   0x6   :  { %4865 = vmatprep.mubr.msk.f32.mxu1 %vm94_vm0, %v304_v10  ;;  %5268 = vmatprep.subr.bf16.mxu1 %v5267_v7  ;;  %v660_v13 = vld [vmem:[%s6686_s7] sm:$0xff]  ;;  %v305_v17 = vld [vmem:[%s6685_s1 + $0x8] sm:$0xff]  ;;  %v542_v21 = vld [vmem:[%s6684_s6 + $0x10] sm:$0xff] }
   0x7   :  { %5270 = vmatpush3.bf16.msra.mxu1 %v5267_v7  ;;  %5271 = vmatprep.subr.bf16.mxu0 %v5738_v15  ;;  %v5856_v18 = vpack.c.bf16 %v661_v14, %v660_v13  ;;  %v73_v22 = vld [vmem:[%s6682_s0 + $0x20] sm:$0xff]  ;;  %v543_v23 = vld [vmem:[%s6684_s6 + $0x18] sm:$0xff]  ;;  %v662_v26 = vld [vmem:[%s6686_s7 + $0x10] sm:$0xff] }
   0x8   :  { %5277 = vmatprep.subr.bf16.mxu1 %v5738_v15  ;;  %4838 = vmatmul.mubr.msk.f32.vlgmr.msra.gmra.mrb[0].mxu0 %vm94_vm0, %v70_v11  ;;  %v307_v24 = vld [vmem:[%s6685_s1 + $0x18] sm:$0xff]  ;;  %v5883_v25 = vpack.c.bf16 %v543_v23, %v542_v21  ;;  %v308_v27 = vld [vmem:[%s6685_s1 + $0x20] sm:$0xff]  ;;  %v74_v29 = vld [vmem:[%s6682_s0 + $0x28] sm:$0xff] }
   0x9   :  { %5273 = vmatpush3.bf16.msra.mxu0 %v5840_v12  ;;  %4840 = vmatprep.mubr.msk.f32.mxu0 %vm94_vm0, %v71_v16  ;;  %v663_v28 = vld [vmem:[%s6686_s7 + $0x18] sm:$0xff]  ;;  %v75_v31 = vld [vmem:[%s6682_s0 + $0x30] sm:$0xff]  ;;  %v309_v32 = vld [vmem:[%s6685_s1 + $0x28] sm:$0xff] }
   0xa   :  { %4866 = vmatmul.mubr.msk.f32.vlgmr.msra.gmra.mrb[0].mxu1 %vm94_vm0, %v305_v17  ;;  %5274 = vmatprep.subr.bf16.mxu0 %v5738_v15  ;;  %v5901_v30 = vpack.c.bf16 %v663_v28, %v662_v26  ;;  %v310_v33 = vld [vmem:[%s6685_s1 + $0x30] sm:$0xff]  ;;  %v626_v34 = vld [vmem:[#allocation3] sm:$0xff]  ;;  %v76_v35 = vld [vmem:[%s6682_s0 + $0x38] sm:$0xff] }
   0xb   :  { %5279 = vmatpush3.bf16.msra.mxu1 %v5856_v18  ;;  %4868 = vmatprep.mubr.msk.f32.mxu1 %vm94_vm0, %v306_v19  ;;  %v77_v36 = vld [vmem:[%s6682_s0 + $0x40] sm:$0xff]  ;;  %v745_v37 = vld [vmem:[#allocation5] sm:$0xff]  ;;  %v78_v40 = vld [vmem:[%s6682_s0 + $0x48] sm:$0xff] }
   0xc   :  { %4841 = vmatmul.mubr.msk.f32.gmra.mrb[2].mxu0 %vm94_vm0, %v72_v20  ;;  %5280 = vmatprep.subr.bf16.mxu1 %v5738_v15  ;;  %v311_v38 = vld [vmem:[%s6685_s1 + $0x38] sm:$0xff]  ;;  %v312_v39 = vld [vmem:[%s6685_s1 + $0x40] sm:$0xff]  ;;  %v79_v41 = vld [vmem:[%s6682_s0 + $0x50] sm:$0xff] }
   0xd   :  { %4843 = vmatprep.mubr.msk.f32.mxu0 %vm94_vm0, %v73_v22  ;;  %5276 = vmatpush3.bf16.msra.mxu0 %v5883_v25  ;;  %v313_v42 = vld [vmem:[%s6685_s1 + $0x48] sm:$0xff]  ;;  %v314_v43 = vld [vmem:[%s6685_s1 + $0x50] sm:$0xff]  ;;  %v80_v44 = vld [vmem:[%s6682_s0 + $0x58] sm:$0xff] }
   0xe   :  { %4869 = vmatmul.mubr.msk.f32.gmra.mrb[2].mxu1 %vm94_vm0, %v307_v24  ;;  %5283 = vmatprep.subr.bf16.mxu0 %v5738_v15  ;;  %v81_v45 = vld [vmem:[%s6682_s0 + $0x60] sm:$0xff]  ;;  %v315_v46 = vld [vmem:[%s6685_s1 + $0x58] sm:$0xff]  ;;  %v82_v48 = vld [vmem:[%s6682_s0 + $0x68] sm:$0xff] }
   0xf   :  { %4871 = vmatprep.mubr.msk.f32.mxu1 %vm94_vm0, %v308_v27  ;;  %5282 = vmatpush3.bf16.msra.mxu1 %v5901_v30  ;;  %v316_v47 = vld [vmem:[%s6685_s1 + $0x60] sm:$0xff]  ;;  %v83_v49 = vld [vmem:[%s6682_s0 + $0x70] sm:$0xff]  ;;  %v317_v50 = vld [vmem:[%s6685_s1 + $0x68] sm:$0xff] }
  0x10   :  { %4844 = vmatmul.mubr.msk.f32.gmra.mrb[4].mxu0 %vm94_vm0, %v74_v29  ;;  %5289 = vmatprep.subr.bf16.mxu1 %v5738_v15  ;;  %v318_v51 = vld [vmem:[%s6685_s1 + $0x70] sm:$0xff]  ;;  %v84_v52 = vld [vmem:[%s6682_s0 + $0x78] sm:$0xff]  ;;  %v539_v54 = vld [vmem:[#allocation2] sm:$0xff] }
  0x11   :  { %4846 = vmatprep.mubr.msk.f32.mxu0 %vm94_vm0, %v75_v31  ;;  %628 = vrot.lane.b32.xlu1 %v626_v34, %s5739_s28  ;;  %v319_v53 = vld [vmem:[%s6685_s1 + $0x78] sm:$0xff]  ;;  %v659_v55 = vld [vmem:[#allocation4] sm:$0xff]  ;;  %v4526_v56 = vld [vmem:[%s6687_s3] ss:$0 sm:$0xff]  ;;  %s5741_s3 = smov 64  }
  0x12   :  { %4872 = vmatmul.mubr.msk.f32.gmra.mrb[4].mxu1 %vm94_vm0, %v309_v32  ;;  %v6019_v58 = vld [vmem:[%s6688_s5] ss:$0 sm:$0xff]  ;;  %s5742_s5 = smov 96  }
  0x13   :  { %4874 = vmatprep.mubr.msk.f32.mxu1 %vm94_vm0, %v310_v33 }
  0x14   :  { %4847 = vmatmul.mubr.msk.f32.gmra.mrb[6].mxu0 %vm94_vm0, %v76_v35 }
  0x15   :  { %4849 = vmatprep.mubr.msk.f32.mxu0 %vm94_vm0, %v77_v36  ;;  %747 = vrot.lane.b32.xlu1 %v745_v37, %s5739_s28 }
  0x16   :  { %4875 = vmatmul.mubr.msk.f32.gmra.mrb[6].mxu1 %vm94_vm0, %v311_v38 }
  0x17   :  { %4877 = vmatprep.mubr.msk.f32.mxu1 %vm94_vm0, %v312_v39 }
  0x18   :  { %4850 = vmatmul.mubr.msk.f32.gmra.mrb[8].mxu0 %vm94_vm0, %v78_v40 }
  0x19   :  { %4852 = vmatprep.mubr.msk.f32.mxu0 %vm94_vm0, %v79_v41 }
  0x1a   :  { %4878 = vmatmul.mubr.msk.f32.gmra.mrb[8].mxu1 %vm94_vm0, %v313_v42 }
  0x1b   :  { %4880 = vmatprep.mubr.msk.f32.mxu1 %vm94_vm0, %v314_v43 }
  0x1c   :  { %4853 = vmatmul.mubr.msk.f32.gmra.mrb[10].mxu0 %vm94_vm0, %v80_v44 }
  0x1d   :  { %4855 = vmatprep.mubr.msk.f32.mxu0 %vm94_vm0, %v81_v45 }
  0x1e   :  { %4881 = vmatmul.mubr.msk.f32.gmra.mrb[10].mxu1 %vm94_vm0, %v315_v46 }
  0x1f   :  { %4883 = vmatprep.mubr.msk.f32.mxu1 %vm94_vm0, %v316_v47 }
  0x20   :  { %4856 = vmatmul.mubr.msk.f32.gmra.mrb[12].mxu0 %vm94_vm0, %v82_v48 }
  0x21   :  { %4858 = vmatprep.mubr.msk.f32.mxu0 %vm94_vm0, %v83_v49 }
  0x22   :  { %4884 = vmatmul.mubr.msk.f32.gmra.mrb[12].mxu1 %vm94_vm0, %v317_v50 }
  0x23   :  { %4886 = vmatprep.mubr.msk.f32.mxu1 %vm94_vm0, %v318_v51 }
  0x24   :  { %4859 = vmatmul.mubr.msk.f32.gmra.mrb[14].mxu0 %vm94_vm0, %v84_v52 }
  0x25   :  { %4897 = vmatprep.mubr.msk.f32.mxu0 %vm5740_vm2, %v5737_v6 }
  0x26   :  { %4887 = vmatmul.mubr.msk.f32.gmra.mrb[14].mxu1 %vm94_vm0, %v319_v53 }
  0x27   :  { %4908 = vmatprep.mubr.msk.f32.mxu1 %vm5740_vm2, %v5737_v6 }
  0x28   :  { %4898 = vmatmul.mubr.msk.f32.vlgmr.msra.gmra.mrb[16].mxu0 %vm64_vm1, %v539_v54 }
  0x29   :  { %5285 = vmatpush3.bf16.msra.mxu0 %v5840_v12  ;;  %4919 = vmatprep.mubr.msk.f32.mxu0 %vm5740_vm2, %v5737_v6 }
  0x2a   :  { %4909 = vmatmul.mubr.msk.f32.vlgmr.msra.gmra.mrb[16].mxu1 %vm64_vm1, %v659_v55  ;;  %5286 = vmatprep.subr.bf16.mxu0 %v5738_v15 }
  0x2b   :  { %5291 = vmatpush3.bf16.msra.mxu1 %v5856_v18  ;;  %4930 = vmatprep.mubr.msk.f32.mxu1 %vm5740_vm2, %v5737_v6 }
  0x2c   :  { %5292 = vmatprep.subr.bf16.mxu1 %v5738_v15 }
  0x2d   :  { %5288 = vmatpush3.bf16.msra.mxu0 %v5883_v25 }
  0x2e   :  { %5295 = vmatprep.subr.bf16.mxu0 %v5738_v15 }
  0x2f   :  { %5294 = vmatpush3.bf16.msra.mxu1 %v5901_v30 }
  0x30   :  { %5301 = vmatprep.subr.bf16.mxu1 %v5738_v15 }
  0xdb   :  { %v4839_v57 = vpop.f32.mrb[0].mxu0 }
  0xdc   :  { %v6021_v59 = vadd.f32 %v4839_v57, %v4526_v56  ;;  %v209_v60 = vpop.f32.mrb[1].mxu0 }
  0xdd   :  { %v4867_v61 = vpop.f32.mrb[0].mxu1 }
  0xde   :  { %v6024_v62 = vadd.f32 %v4867_v61, %v6019_v58  ;;  %v443_v63 = vpop.f32.mrb[1].mxu1 }
  0xdf   :  { %v4842_v0 = vpop.f32.mrb[2].mxu0  ;;  %v6027_v1 = vadd.f32 %v6019_v58, %v443_v63 }
  0xe0   :  { %v6029_v2 = vadd.f32 %v4842_v0, %v4526_v56  ;;  %v219_v3 = vpop.f32.mrb[3].mxu0 }
  0xe1   :  { %v6031_v4 = vadd.f32 %v4526_v56, %v219_v3  ;;  %v4870_v5 = vpop.f32.mrb[2].mxu1  ;;  %v210_v3 = vadd.f32 %v4526_v56, %v209_v60 }
  0xe2   :  { %v6034_v7 = vadd.f32 %v4870_v5, %v6019_v58  ;;  %v453_v8 = vpop.f32.mrb[3].mxu1 }
  0xe3   :  { %v4845_v9 = vpop.f32.mrb[4].mxu0  ;;  %v6037_v10 = vadd.f32 %v6019_v58, %v453_v8 }
  0xe4   :  { %v6039_v11 = vadd.f32 %v4845_v9, %v4526_v56  ;;  %v229_v13 = vpop.f32.mrb[5].mxu0 }
  0xe5   :  { %v6041_v14 = vadd.f32 %v4526_v56, %v229_v13  ;;  %v4873_v16 = vpop.f32.mrb[4].mxu1 }
  0xe6   :  { %v6044_v17 = vadd.f32 %v4873_v16, %v6019_v58  ;;  %v463_v19 = vpop.f32.mrb[5].mxu1 }
  0xe7   :  { %v4848_v20 = vpop.f32.mrb[6].mxu0  ;;  %v6047_v21 = vadd.f32 %v6019_v58, %v463_v19 }
  0xe8   :  { %v6049_v22 = vadd.f32 %v4848_v20, %v4526_v56  ;;  %v239_v23 = vpop.f32.mrb[7].mxu0 }
  0xe9   :  { %v6051_v24 = vadd.f32 %v4526_v56, %v239_v23  ;;  %v4876_v26 = vpop.f32.mrb[6].mxu1 }
  0xea   :  { %v6054_v27 = vadd.f32 %v4876_v26, %v6019_v58  ;;  %v473_v28 = vpop.f32.mrb[7].mxu1 }
  0xeb   :  { %v4851_v29 = vpop.f32.mrb[8].mxu0  ;;  %v6057_v31 = vadd.f32 %v6019_v58, %v473_v28 }
  0xec   :  { %v6059_v32 = vadd.f32 %v4851_v29, %v4526_v56  ;;  %v249_v33 = vpop.f32.mrb[9].mxu0 }
  0xed   :  { %v6061_v34 = vadd.f32 %v4526_v56, %v249_v33  ;;  %v4879_v35 = vpop.f32.mrb[8].mxu1 }
  0xee   :  { %v6064_v36 = vadd.f32 %v4879_v35, %v6019_v58  ;;  %v483_v37 = vpop.f32.mrb[9].mxu1 }
  0xef   :  { %v4854_v38 = vpop.f32.mrb[10].mxu0  ;;  %v6067_v39 = vadd.f32 %v6019_v58, %v483_v37 }
  0xf0   :  { %v6069_v40 = vadd.f32 %v4854_v38, %v4526_v56  ;;  %v259_v41 = vpop.f32.mrb[11].mxu0 }
  0xf1   :  { %v6071_v42 = vadd.f32 %v4526_v56, %v259_v41  ;;  %v4882_v43 = vpop.f32.mrb[10].mxu1 }
  0xf2   :  { %v6074_v44 = vadd.f32 %v4882_v43, %v6019_v58  ;;  %v493_v45 = vpop.f32.mrb[11].mxu1 }
  0xf3   :  { %v4857_v46 = vpop.f32.mrb[12].mxu0  ;;  %v6077_v47 = vadd.f32 %v6019_v58, %v493_v45 }
  0xf4   :  { %v6079_v48 = vadd.f32 %v4857_v46, %v4526_v56  ;;  %v269_v49 = vpop.f32.mrb[13].mxu0 }
  0xf5   :  { %v6081_v50 = vadd.f32 %v4526_v56, %v269_v49  ;;  %v4885_v51 = vpop.f32.mrb[12].mxu1 }
  0xf6   :  { %v6084_v52 = vadd.f32 %v4885_v51, %v6019_v58  ;;  %v503_v53 = vpop.f32.mrb[13].mxu1  ;;  %v629_v51 = vpop.permute.xlu1 %628 }
  0xf7   :  { %v4860_v54 = vpop.f32.mrb[14].mxu0  ;;  %v6087_v55 = vadd.f32 %v6019_v58, %v503_v53 }
  0xf8   :  { %v6089_v57 = vadd.f32 %v4860_v54, %v4526_v56  ;;  %v279_v61 = vpop.f32.mrb[15].mxu0 }
  0xf9   :  { %v6091_v63 = vadd.f32 %v4526_v56, %v279_v61  ;;  %v4888_v0 = vpop.f32.mrb[14].mxu1 }
  0xfa   :  { %v519_v5 = vadd.f32 %v4888_v0, %v6019_v58  ;;  %v513_v8 = vpop.f32.mrb[15].mxu1  ;;  %v748_v54 = vpop.permute.xlu1 %747 }
  0xfb   :  { %v614_v9 = vpop.f32.mrb[16].mxu0  ;;  %v6095_v13 = vadd.f32 %v6019_v58, %v513_v8 }
  0xfc   :  { %v618_v16 = vadd.f32 %v614_v9, %v210_v3  ;;  %v4899_v19 = vpop.f32.mrb[17].mxu0 }
  0xfd   :  { %v733_v20 = vpop.f32.mrb[16].mxu1 }
  0xfe   :  { %5481 = vtanh.f32 %v618_v16  ;;  %v737_v23 = vadd.f32 %v733_v20, %v519_v5  ;;  %v4910_v26 = vpop.f32.mrb[17].mxu1  ;;  %v4561_v56 = vmul.f32 -1.442695, %v618_v16 }
 0x100   :  { %5483 = vtanh.f32 %v737_v23  ;;  %v4563_v60 = vmul.f32 -1.442695, %v737_v23 }
 0x101   :  { %5485 = vpow2.f32 %v4561_v56 }
 0x102   :  { %5487 = vpow2.f32 %v4563_v60 }
 0x108   :  { %v5482_v28 = vpop.eup %5481 }
 0x109   :  { %633 = vrot.lane.b32.xlu0 %v5482_v28, %s5741_s3 }
 0x10a   :  { %v5484_v29 = vpop.eup %5483 }
 0x10b   :  { %v5486_v58 = vpop.eup %5485 }
 0x10c   :  { %v622_v33 = vadd.f32 1.0, %v5486_v58  ;;  %v5488_v35 = vpop.eup %5487 }
 0x10d   :  { %752 = vrot.lane.b32.xlu0 %v5484_v29, %s5741_s3  ;;  %v741_v37 = vadd.f32 1.0, %v5488_v35 }
 0x10e   :  { %5489 = vrcp.f32 %v622_v33 }
 0x10f   :  { %5491 = vrcp.f32 %v741_v37 }
 0x118   :  { %v5490_v38 = vpop.eup %5489 }
 0x119   :  { %v5492_v45 = vpop.eup %5491  ;;  %v631_v53 = vmul.f32 %v5490_v38, %v629_v51 }
 0x11a   :  { %v750_v3 = vmul.f32 %v5492_v45, %v748_v54 }
 0x17b   :  { %v634_v41 = vpop.permute.xlu0 %633 }
 0x17c   :  { %v636_v43 = vmul.f32 %v5490_v38, %v634_v41 }
 0x17e   :  { %638 = vrot.lane.b32.xlu0 %v636_v43, %s5739_s28 }
 0x17f   :  { %v753_v46 = vpop.permute.xlu0 %752 }
 0x180   :  { %v755_v49 = vmul.f32 %v5492_v45, %v753_v46 }
 0x182   :  { %757 = vrot.lane.b32.xlu1 %v755_v49, %s5739_s28 }
 0x1f0   :  { %v639_v61 = vpop.permute.xlu0 %638 }
 0x1f1   :  { %v641_v0 = vadd.f32 %v639_v61, %v631_v53 }
 0x1f3   :  { %5493 = vtanh.f32 %v641_v0 }
 0x1f4   :  { %v758_v5 = vpop.permute.xlu1 %757 }
 0x1f5   :  { %v760_v8 = vadd.f32 %v758_v5, %v750_v3 }
 0x1f7   :  { %5495 = vtanh.f32 %v760_v8 }
 0x1fd   :  { %v5494_v9 = vpop.eup %5493 }
 0x1fe   :  { %649 = vrot.lane.b32.xlu0 %v5494_v9, %s5741_s3 }
 0x201   :  { %v5496_v16 = vpop.eup %5495 }
 0x202   :  { %768 = vrot.lane.b32.xlu1 %v5496_v16, %s5741_s3 }
 0x270   :  { %v650_v19 = vpop.permute.xlu0 %649 }
 0x271   :  { %v652_v20 = vmul.f32 %v5490_v38, %v650_v19 }
 0x273   :  { %654 = vrot.lane.b32.xlu0 %v652_v20, %s5739_s28 }
 0x274   :  { %v769_v23 = vpop.permute.xlu1 %768 }
 0x275   :  { %v771_v26 = vmul.f32 %v5492_v45, %v769_v23 }
 0x277   :  { %773 = vrot.lane.b32.xlu1 %v771_v26, %s5739_s28  ;;  %643 = vrot.lane.b32.xlu0 %v641_v0, %s5742_s5 }
 0x27b   :  { %762 = vrot.lane.b32.xlu1 %v760_v8, %s5742_s5 }
 0x2e5   :  { %v655_v28 = vpop.permute.xlu0 %654 }
 0x2e6   :  { %657 = vst.msk [vmem:[#allocation2] sm:$0xff] %vm64_vm1, %v655_v28 }
 0x2e9   :  { %v774_v29 = vpop.permute.xlu1 %773  ;;  %v644_v56 = vpop.permute.xlu0 %643 }
 0x2ea   :  { %776 = vst.msk [vmem:[#allocation4] sm:$0xff] %vm64_vm1, %v774_v29  ;;  %646 = vst.msk [vmem:[#allocation3] sm:$0xff] %vm64_vm1, %v644_v56 }
 0x2ed   :  { %v763_v60 = vpop.permute.xlu1 %762  ;;  %v778_v58 = vld [vmem:[#allocation2] sm:$0xff] }
 0x2ee   :  { %765 = vst.msk [vmem:[#allocation5] sm:$0xff] %vm64_vm1, %v763_v60  ;;  %4920 = vmatmul.mubr.msk.f32.vlgmr.msra.gmra.mrb[18].mxu0 %vm64_vm1, %v778_v58 }
 0x2ef   :  { %5297 = vmatpush3.bf16.msra.mxu0 %v5840_v12  ;;  %4941 = vmatprep.mubr.msk.f32.mxu0 %vm5740_vm2, %v5737_v6 }
 0x2f0   :  { %5298 = vmatprep.subr.bf16.mxu0 %v5738_v15 }
 0x2f1   :  { %v897_v33 = vld [vmem:[#allocation4] sm:$0xff]  ;;  %v864_v51 = vld [vmem:[#allocation3] sm:$0xff] }
 0x2f2   :  { %4931 = vmatmul.mubr.msk.f32.vlgmr.msra.gmra.mrb[18].mxu1 %vm64_vm1, %v897_v33 }
 0x2f3   :  { %5300 = vmatpush3.bf16.msra.mxu0 %v5883_v25  ;;  %5303 = vmatpush3.bf16.msra.mxu1 %v5856_v18 }
 0x2f4   :  { %5304 = vmatprep.subr.bf16.mxu1 %v5738_v15  ;;  %4952 = vmatprep.mubr.msk.f32.mxu1 %vm5740_vm2, %v5737_v6 }
 0x2f5   :  { %5307 = vmatprep.subr.bf16.mxu0 %v5738_v15  ;;  %v983_v53 = vld [vmem:[#allocation5] sm:$0xff] }
 0x2f7   :  { %5306 = vmatpush3.bf16.msra.mxu1 %v5901_v30 }
 0x2f8   :  { %5313 = vmatprep.subr.bf16.mxu1 %v5738_v15 }
 0x3c1   :  { %v852_v35 = vpop.f32.mrb[18].mxu0 }
 0x3c2   :  { %v856_v37 = vadd.f32 %v852_v35, %v6021_v59  ;;  %v4921_v38 = vpop.f32.mrb[19].mxu0 }
 0x3c4   :  { %5497 = vtanh.f32 %v856_v37  ;;  %v4565_v59 = vmul.f32 -1.442695, %v856_v37 }
 0x3c5   :  { %v971_v41 = vpop.f32.mrb[18].mxu1 }
 0x3c6   :  { %v975_v43 = vadd.f32 %v971_v41, %v6095_v13  ;;  %v4932_v45 = vpop.f32.mrb[19].mxu1 }
 0x3c8   :  { %5499 = vtanh.f32 %v975_v43  ;;  %v4567_v54 = vmul.f32 -1.442695, %v975_v43 }
 0x3c9   :  { %5501 = vpow2.f32 %v4565_v59 }
 0x3ca   :  { %5503 = vpow2.f32 %v4567_v54 }
 0x3ce   :  { %v5498_v46 = vpop.eup %5497 }
 0x3cf   :  { %871 = vrot.lane.b32.xlu0 %v5498_v46, %s5741_s3 }
 0x3d2   :  { %v5500_v49 = vpop.eup %5499 }
 0x3d3   :  { %990 = vrot.lane.b32.xlu1 %v5500_v49, %s5741_s3  ;;  %866 = vrot.lane.b32.xlu0 %v864_v51, %s5739_s28  ;;  %v5502_v61 = vpop.eup %5501 }
 0x3d4   :  { %v860_v13 = vadd.f32 1.0, %v5502_v61  ;;  %v5504_v0 = vpop.eup %5503 }
 0x3d5   :  { %v979_v3 = vadd.f32 1.0, %v5504_v0 }
 0x3d6   :  { %5505 = vrcp.f32 %v860_v13 }
 0x3d7   :  { %985 = vrot.lane.b32.xlu1 %v983_v53, %s5739_s28  ;;  %5507 = vrcp.f32 %v979_v3 }
 0x3e0   :  { %v5506_v5 = vpop.eup %5505 }
 0x3e1   :  { %v5508_v16 = vpop.eup %5507 }
 0x441   :  { %v872_v8 = vpop.permute.xlu0 %871 }
 0x442   :  { %v874_v9 = vmul.f32 %v5506_v5, %v872_v8 }
 0x444   :  { %876 = vrot.lane.b32.xlu0 %v874_v9, %s5739_s28 }
 0x445   :  { %v991_v19 = vpop.permute.xlu1 %990  ;;  %v867_v23 = vpop.permute.xlu0 %866 }
 0x446   :  { %v993_v20 = vmul.f32 %v5508_v16, %v991_v19  ;;  %v869_v26 = vmul.f32 %v5506_v5, %v867_v23 }
 0x448   :  { %995 = vrot.lane.b32.xlu1 %v993_v20, %s5739_s28 }
 0x449   :  { %v986_v28 = vpop.permute.xlu1 %985 }
 0x44a   :  { %v988_v60 = vmul.f32 %v5508_v16, %v986_v28 }
 0x4b6   :  { %v877_v29 = vpop.permute.xlu0 %876 }
 0x4b7   :  { %v879_v56 = vadd.f32 %v877_v29, %v869_v26 }
 0x4b9   :  { %5509 = vtanh.f32 %v879_v56 }
 0x4ba   :  { %v996_v58 = vpop.permute.xlu1 %995 }
 0x4bb   :  { %v998_v33 = vadd.f32 %v996_v58, %v988_v60 }
 0x4bd   :  { %5511 = vtanh.f32 %v998_v33 }
 0x4c3   :  { %v5510_v35 = vpop.eup %5509 }
 0x4c4   :  { %887 = vrot.lane.b32.xlu0 %v5510_v35, %s5741_s3 }
 0x4c7   :  { %v5512_v37 = vpop.eup %5511 }
 0x4c8   :  { %1006 = vrot.lane.b32.xlu1 %v5512_v37, %s5741_s3 }
 0x536   :  { %v888_v38 = vpop.permute.xlu0 %887 }
 0x537   :  { %v890_v41 = vmul.f32 %v5506_v5, %v888_v38 }
 0x539   :  { %892 = vrot.lane.b32.xlu0 %v890_v41, %s5739_s28 }
 0x53a   :  { %v1007_v43 = vpop.permute.xlu1 %1006 }
 0x53b   :  { %v1009_v45 = vmul.f32 %v5508_v16, %v1007_v43 }
 0x53d   :  { %1011 = vrot.lane.b32.xlu1 %v1009_v45, %s5739_s28  ;;  %881 = vrot.lane.b32.xlu0 %v879_v56, %s5742_s5 }
 0x541   :  { %1000 = vrot.lane.b32.xlu1 %v998_v33, %s5742_s5 }
 0x5ab   :  { %v893_v46 = vpop.permute.xlu0 %892 }
 0x5ac   :  { %895 = vst.msk [vmem:[#allocation2] sm:$0xff] %vm64_vm1, %v893_v46 }
 0x5af   :  { %v1012_v49 = vpop.permute.xlu1 %1011  ;;  %v882_v51 = vpop.permute.xlu0 %881 }
 0x5b0   :  { %1014 = vst.msk [vmem:[#allocation4] sm:$0xff] %vm64_vm1, %v1012_v49  ;;  %884 = vst.msk [vmem:[#allocation3] sm:$0xff] %vm64_vm1, %v882_v51 }
 0x5b3   :  { %v1001_v53 = vpop.permute.xlu1 %1000  ;;  %v1016_v59 = vld [vmem:[#allocation2] sm:$0xff] }
 0x5b4   :  { %1003 = vst.msk [vmem:[#allocation5] sm:$0xff] %vm64_vm1, %v1001_v53  ;;  %4942 = vmatmul.mubr.msk.f32.vlgmr.msra.gmra.mrb[20].mxu0 %vm64_vm1, %v1016_v59 }
 0x5b5   :  { %5309 = vmatpush3.bf16.msra.mxu0 %v5840_v12  ;;  %4963 = vmatprep.mubr.msk.f32.mxu0 %vm5740_vm2, %v5737_v6 }
 0x5b6   :  { %5310 = vmatprep.subr.bf16.mxu0 %v5738_v15 }
 0x5b7   :  { %v1135_v54 = vld [vmem:[#allocation4] sm:$0xff]  ;;  %v1102_v19 = vld [vmem:[#allocation3] sm:$0xff] }
 0x5b8   :  { %4953 = vmatmul.mubr.msk.f32.vlgmr.msra.gmra.mrb[20].mxu1 %vm64_vm1, %v1135_v54 }
 0x5b9   :  { %5312 = vmatpush3.bf16.msra.mxu0 %v5883_v25  ;;  %5315 = vmatpush3.bf16.msra.mxu1 %v5856_v18 }
 0x5ba   :  { %5316 = vmatprep.subr.bf16.mxu1 %v5738_v15  ;;  %4974 = vmatprep.mubr.msk.f32.mxu1 %vm5740_vm2, %v5737_v6 }
 0x5bb   :  { %5319 = vmatprep.subr.bf16.mxu0 %v5738_v15  ;;  %v1221_v20 = vld [vmem:[#allocation5] sm:$0xff] }
 0x5bd   :  { %5318 = vmatpush3.bf16.msra.mxu1 %v5901_v30 }
 0x5be   :  { %5325 = vmatprep.subr.bf16.mxu1 %v5738_v15 }
 0x687   :  { %v1090_v61 = vpop.f32.mrb[20].mxu0 }
 0x688   :  { %v1094_v13 = vadd.f32 %v1090_v61, %v6031_v4  ;;  %v4943_v0 = vpop.f32.mrb[21].mxu0 }
 0x68a   :  { %5513 = vtanh.f32 %v1094_v13  ;;  %v4569_v4 = vmul.f32 -1.442695, %v1094_v13 }
 0x68b   :  { %v1209_v3 = vpop.f32.mrb[20].mxu1 }
 0x68c   :  { %v1213_v5 = vadd.f32 %v1209_v3, %v6084_v52  ;;  %v4954_v8 = vpop.f32.mrb[21].mxu1 }
 0x68e   :  { %5515 = vtanh.f32 %v1213_v5  ;;  %v4571_v23 = vmul.f32 -1.442695, %v1213_v5 }
 0x68f   :  { %5517 = vpow2.f32 %v4569_v4 }
 0x690   :  { %5519 = vpow2.f32 %v4571_v23 }
 0x694   :  { %v5514_v9 = vpop.eup %5513 }
 0x695   :  { %1109 = vrot.lane.b32.xlu0 %v5514_v9, %s5741_s3 }
 0x698   :  { %v5516_v16 = vpop.eup %5515 }
 0x699   :  { %1228 = vrot.lane.b32.xlu1 %v5516_v16, %s5741_s3  ;;  %1104 = vrot.lane.b32.xlu0 %v1102_v19, %s5739_s28  ;;  %v5518_v26 = vpop.eup %5517 }
 0x69a   :  { %v1098_v52 = vadd.f32 1.0, %v5518_v26  ;;  %v5520_v28 = vpop.eup %5519 }
 0x69b   :  { %v1217_v29 = vadd.f32 1.0, %v5520_v28 }
 0x69c   :  { %5521 = vrcp.f32 %v1098_v52 }
 0x69d   :  { %1223 = vrot.lane.b32.xlu1 %v1221_v20, %s5739_s28  ;;  %5523 = vrcp.f32 %v1217_v29 }
 0x6a6   :  { %v5522_v56 = vpop.eup %5521 }
 0x6a7   :  { %v5524_v33 = vpop.eup %5523 }
 0x707   :  { %v1110_v60 = vpop.permute.xlu0 %1109 }
 0x708   :  { %v1112_v58 = vmul.f32 %v5522_v56, %v1110_v60 }
 0x70a   :  { %1114 = vrot.lane.b32.xlu0 %v1112_v58, %s5739_s28 }
 0x70b   :  { %v1229_v35 = vpop.permute.xlu1 %1228  ;;  %v1105_v38 = vpop.permute.xlu0 %1104 }
 0x70c   :  { %v1231_v37 = vmul.f32 %v5524_v33, %v1229_v35  ;;  %v1107_v41 = vmul.f32 %v5522_v56, %v1105_v38 }
 0x70e   :  { %1233 = vrot.lane.b32.xlu1 %v1231_v37, %s5739_s28 }
 0x70f   :  { %v1224_v43 = vpop.permute.xlu1 %1223 }
 0x710   :  { %v1226_v49 = vmul.f32 %v5524_v33, %v1224_v43 }
 0x77c   :  { %v1115_v45 = vpop.permute.xlu0 %1114 }
 0x77d   :  { %v1117_v46 = vadd.f32 %v1115_v45, %v1107_v41 }
 0x77f   :  { %5525 = vtanh.f32 %v1117_v46 }
 0x780   :  { %v1234_v51 = vpop.permute.xlu1 %1233 }
 0x781   :  { %v1236_v53 = vadd.f32 %v1234_v51, %v1226_v49 }
 0x783   :  { %5527 = vtanh.f32 %v1236_v53 }
 0x789   :  { %v5526_v59 = vpop.eup %5525 }
 0x78a   :  { %1125 = vrot.lane.b32.xlu0 %v5526_v59, %s5741_s3 }
 0x78d   :  { %v5528_v54 = vpop.eup %5527 }
 0x78e   :  { %1244 = vrot.lane.b32.xlu1 %v5528_v54, %s5741_s3 }
 0x7fc   :  { %v1126_v61 = vpop.permute.xlu0 %1125 }
 0x7fd   :  { %v1128_v13 = vmul.f32 %v5522_v56, %v1126_v61 }
 0x7ff   :  { %1130 = vrot.lane.b32.xlu0 %v1128_v13, %s5739_s28 }
 0x800   :  { %v1245_v0 = vpop.permute.xlu1 %1244 }
 0x801   :  { %v1247_v3 = vmul.f32 %v5524_v33, %v1245_v0 }
 0x803   :  { %1249 = vrot.lane.b32.xlu1 %v1247_v3, %s5739_s28  ;;  %1119 = vrot.lane.b32.xlu0 %v1117_v46, %s5742_s5 }
 0x807   :  { %1238 = vrot.lane.b32.xlu1 %v1236_v53, %s5742_s5 }
 0x871   :  { %v1131_v5 = vpop.permute.xlu0 %1130 }
 0x872   :  { %1133 = vst.msk [vmem:[#allocation2] sm:$0xff] %vm64_vm1, %v1131_v5 }
 0x875   :  { %v1250_v8 = vpop.permute.xlu1 %1249  ;;  %v1120_v9 = vpop.permute.xlu0 %1119 }
 0x876   :  { %1252 = vst.msk [vmem:[#allocation4] sm:$0xff] %vm64_vm1, %v1250_v8  ;;  %1122 = vst.msk [vmem:[#allocation3] sm:$0xff] %vm64_vm1, %v1120_v9 }
 0x879   :  { %v1239_v16 = vpop.permute.xlu1 %1238  ;;  %v1254_v19 = vld [vmem:[#allocation2] sm:$0xff] }
 0x87a   :  { %1241 = vst.msk [vmem:[#allocation5] sm:$0xff] %vm64_vm1, %v1239_v16  ;;  %4964 = vmatmul.mubr.msk.f32.vlgmr.msra.gmra.mrb[22].mxu0 %vm64_vm1, %v1254_v19 }
 0x87b   :  { %5321 = vmatpush3.bf16.msra.mxu0 %v5840_v12  ;;  %4985 = vmatprep.mubr.msk.f32.mxu0 %vm5740_vm2, %v5737_v6 }
 0x87c   :  { %5322 = vmatprep.subr.bf16.mxu0 %v5738_v15 }
 0x87d   :  { %v1373_v20 = vld [vmem:[#allocation4] sm:$0xff]  ;;  %v1340_v56 = vld [vmem:[#allocation3] sm:$0xff] }
 0x87e   :  { %4975 = vmatmul.mubr.msk.f32.vlgmr.msra.gmra.mrb[22].mxu1 %vm64_vm1, %v1373_v20 }
 0x87f   :  { %5324 = vmatpush3.bf16.msra.mxu0 %v5883_v25  ;;  %5327 = vmatpush3.bf16.msra.mxu1 %v5856_v18 }
 0x880   :  { %5328 = vmatprep.subr.bf16.mxu1 %v5738_v15  ;;  %4996 = vmatprep.mubr.msk.f32.mxu1 %vm5740_vm2, %v5737_v6 }
 0x881   :  { %5331 = vmatprep.subr.bf16.mxu0 %v5738_v15  ;;  %v1459_v60 = vld [vmem:[#allocation5] sm:$0xff] }
 0x883   :  { %5330 = vmatpush3.bf16.msra.mxu1 %v5901_v30 }
 0x884   :  { %5337 = vmatprep.subr.bf16.mxu1 %v5738_v15 }
 0x94d   :  { %v1328_v12 = vpop.f32.mrb[22].mxu0 }
 0x94e   :  { %v1332_v4 = vadd.f32 %v1328_v12, %v6029_v2  ;;  %v4965_v23 = vpop.f32.mrb[23].mxu0 }
 0x950   :  { %5529 = vtanh.f32 %v1332_v4  ;;  %v4573_v2 = vmul.f32 -1.442695, %v1332_v4 }
 0x951   :  { %v1447_v26 = vpop.f32.mrb[22].mxu1 }
 0x952   :  { %v1451_v52 = vadd.f32 %v1447_v26, %v6087_v55  ;;  %v4976_v18 = vpop.f32.mrb[23].mxu1 }
 0x954   :  { %5531 = vtanh.f32 %v1451_v52  ;;  %v4575_v58 = vmul.f32 -1.442695, %v1451_v52 }
 0x955   :  { %5533 = vpow2.f32 %v4573_v2 }
 0x956   :  { %5535 = vpow2.f32 %v4575_v58 }
 0x95a   :  { %v5530_v28 = vpop.eup %5529 }
 0x95b   :  { %1347 = vrot.lane.b32.xlu0 %v5530_v28, %s5741_s3 }
 0x95e   :  { %v5532_v29 = vpop.eup %5531 }
 0x95f   :  { %1466 = vrot.lane.b32.xlu1 %v5532_v29, %s5741_s3  ;;  %1342 = vrot.lane.b32.xlu0 %v1340_v56, %s5739_s28  ;;  %v5534_v33 = vpop.eup %5533 }
 0x960   :  { %v1336_v55 = vadd.f32 1.0, %v5534_v33  ;;  %v5536_v35 = vpop.eup %5535 }
 0x961   :  { %v1455_v37 = vadd.f32 1.0, %v5536_v35 }
 0x962   :  { %5537 = vrcp.f32 %v1336_v55 }
 0x963   :  { %1461 = vrot.lane.b32.xlu1 %v1459_v60, %s5739_s28  ;;  %5539 = vrcp.f32 %v1455_v37 }
 0x96c   :  { %v5538_v38 = vpop.eup %5537 }
 0x96d   :  { %v5540_v45 = vpop.eup %5539 }
 0x9cd   :  { %v1348_v41 = vpop.permute.xlu0 %1347 }
 0x9ce   :  { %v1350_v43 = vmul.f32 %v5538_v38, %v1348_v41 }
 0x9d0   :  { %1352 = vrot.lane.b32.xlu0 %v1350_v43, %s5739_s28 }
 0x9d1   :  { %v1467_v46 = vpop.permute.xlu1 %1466  ;;  %v1343_v51 = vpop.permute.xlu0 %1342 }
 0x9d2   :  { %v1469_v49 = vmul.f32 %v5540_v45, %v1467_v46  ;;  %v1345_v53 = vmul.f32 %v5538_v38, %v1343_v51 }
 0x9d4   :  { %1471 = vrot.lane.b32.xlu1 %v1469_v49, %s5739_s28 }
 0x9d5   :  { %v1462_v59 = vpop.permute.xlu1 %1461 }
 0x9d6   :  { %v1464_v13 = vmul.f32 %v5540_v45, %v1462_v59 }
 0xa42   :  { %v1353_v54 = vpop.permute.xlu0 %1352 }
 0xa43   :  { %v1355_v61 = vadd.f32 %v1353_v54, %v1345_v53 }
 0xa45   :  { %5541 = vtanh.f32 %v1355_v61 }
 0xa46   :  { %v1472_v0 = vpop.permute.xlu1 %1471 }
 0xa47   :  { %v1474_v3 = vadd.f32 %v1472_v0, %v1464_v13 }
 0xa49   :  { %5543 = vtanh.f32 %v1474_v3 }
 0xa4f   :  { %v5542_v5 = vpop.eup %5541 }
 0xa50   :  { %1363 = vrot.lane.b32.xlu0 %v5542_v5, %s5741_s3 }
 0xa53   :  { %v5544_v8 = vpop.eup %5543 }
 0xa54   :  { %1482 = vrot.lane.b32.xlu1 %v5544_v8, %s5741_s3 }
 0xac2   :  { %v1364_v9 = vpop.permute.xlu0 %1363 }
 0xac3   :  { %v1366_v16 = vmul.f32 %v5538_v38, %v1364_v9 }
 0xac5   :  { %1368 = vrot.lane.b32.xlu0 %v1366_v16, %s5739_s28 }
 0xac6   :  { %v1483_v19 = vpop.permute.xlu1 %1482 }
 0xac7   :  { %v1485_v20 = vmul.f32 %v5540_v45, %v1483_v19 }
 0xac9   :  { %1487 = vrot.lane.b32.xlu1 %v1485_v20, %s5739_s28  ;;  %1357 = vrot.lane.b32.xlu0 %v1355_v61, %s5742_s5 }
 0xacd   :  { %1476 = vrot.lane.b32.xlu1 %v1474_v3, %s5742_s5 }
 0xb37   :  { %v1369_v12 = vpop.permute.xlu0 %1368 }
 0xb38   :  { %1371 = vst.msk [vmem:[#allocation2] sm:$0xff] %vm64_vm1, %v1369_v12  ;;  %v1731_v12 = vld [vmem:[%s6684_s6] sm:$0xff] }
 0xb3b   :  { %v1488_v4 = vpop.permute.xlu1 %1487  ;;  %v1358_v23 = vpop.permute.xlu0 %1357 }
 0xb3c   :  { %1490 = vst.msk [vmem:[#allocation4] sm:$0xff] %vm64_vm1, %v1488_v4  ;;  %1360 = vst.msk [vmem:[#allocation3] sm:$0xff] %vm64_vm1, %v1358_v23  ;;  %v1732_v4 = vld [vmem:[%s6684_s6 + $0x8] sm:$0xff] }
 0xb3d   :  { %v6229_v23 = vpack.c.bf16 %v1732_v4, %v1731_v12 }
 0xb3f   :  { %v1477_v26 = vpop.permute.xlu1 %1476  ;;  %v1492_v52 = vld [vmem:[#allocation2] sm:$0xff] }
 0xb40   :  { %1479 = vst.msk [vmem:[#allocation5] sm:$0xff] %vm64_vm1, %v1477_v26  ;;  %4986 = vmatmul.mubr.msk.f32.vlgmr.msra.gmra.mrb[24].mxu0 %vm64_vm1, %v1492_v52  ;;  %v1850_v26 = vld [vmem:[%s6686_s7] sm:$0xff]  ;;  %v1851_v52 = vld [vmem:[%s6686_s7 + $0x8] sm:$0xff] }
 0xb41   :  { %5007 = vmatprep.mubr.msk.f32.mxu0 %vm5740_vm2, %v5737_v6  ;;  %5333 = vmatpush3.bf16.msra.mxu0 %v6229_v23 }
 0xb42   :  { %5334 = vmatprep.subr.bf16.mxu0 %v5738_v15 }
 0xb43   :  { %v1611_v18 = vld [vmem:[#allocation4] sm:$0xff]  ;;  %v1578_v35 = vld [vmem:[#allocation3] sm:$0xff] }
 0xb44   :  { %4997 = vmatmul.mubr.msk.f32.vlgmr.msra.gmra.mrb[24].mxu1 %vm64_vm1, %v1611_v18  ;;  %v6239_v18 = vpack.c.bf16 %v1851_v52, %v1850_v26 }
 0xb45   :  { %5018 = vmatprep.mubr.msk.f32.mxu1 %vm5740_vm2, %v5737_v6  ;;  %5336 = vmatpush3.bf16.msra.mxu0 %v5883_v25 }
 0xb46   :  { %5339 = vmatpush3.bf16.msra.mxu1 %v6239_v18  ;;  %5343 = vmatprep.subr.bf16.mxu0 %v5738_v15 }
 0xb47   :  { %v1697_v37 = vld [vmem:[#allocation5] sm:$0xff]  ;;  %5340 = vmatprep.subr.bf16.mxu1 %v5738_v15 }
 0xb4a   :  { %5342 = vmatpush3.bf16.msra.mxu1 %v5901_v30 }
 0xb4b   :  { %5349 = vmatprep.subr.bf16.mxu1 %v5738_v15 }
 0xc13   :  { %v1566_v28 = vpop.f32.mrb[24].mxu0 }
 0xc14   :  { %v1570_v29 = vadd.f32 %v1566_v28, %v6041_v14  ;;  %v4987_v56 = vpop.f32.mrb[25].mxu0 }
 0xc16   :  { %5545 = vtanh.f32 %v1570_v29  ;;  %v4577_v14 = vmul.f32 -1.442695, %v1570_v29 }
 0xc17   :  { %v1685_v60 = vpop.f32.mrb[24].mxu1 }
 0xc18   :  { %v1689_v2 = vadd.f32 %v1685_v60, %v6074_v44  ;;  %v4998_v58 = vpop.f32.mrb[25].mxu1 }
 0xc1a   :  { %5547 = vtanh.f32 %v1689_v2  ;;  %v4579_v38 = vmul.f32 -1.442695, %v1689_v2 }
 0xc1b   :  { %5549 = vpow2.f32 %v4577_v14 }
 0xc1c   :  { %5551 = vpow2.f32 %v4579_v38 }
 0xc20   :  { %v5546_v33 = vpop.eup %5545 }
 0xc21   :  { %1585 = vrot.lane.b32.xlu0 %v5546_v33, %s5741_s3 }
 0xc24   :  { %v5548_v55 = vpop.eup %5547 }
 0xc25   :  { %1704 = vrot.lane.b32.xlu1 %v5548_v55, %s5741_s3  ;;  %1580 = vrot.lane.b32.xlu0 %v1578_v35, %s5739_s28  ;;  %v5550_v41 = vpop.eup %5549 }
 0xc26   :  { %v1574_v44 = vadd.f32 1.0, %v5550_v41  ;;  %v5552_v43 = vpop.eup %5551 }
 0xc27   :  { %v1693_v45 = vadd.f32 1.0, %v5552_v43 }
 0xc28   :  { %5553 = vrcp.f32 %v1574_v44 }
 0xc29   :  { %1699 = vrot.lane.b32.xlu1 %v1697_v37, %s5739_s28  ;;  %5555 = vrcp.f32 %v1693_v45 }
 0xc32   :  { %v5554_v46 = vpop.eup %5553 }
 0xc33   :  { %v5556_v53 = vpop.eup %5555 }
 0xc93   :  { %v1586_v49 = vpop.permute.xlu0 %1585 }
 0xc94   :  { %v1588_v51 = vmul.f32 %v5554_v46, %v1586_v49 }
 0xc96   :  { %1590 = vrot.lane.b32.xlu0 %v1588_v51, %s5739_s28 }
 0xc97   :  { %v1705_v59 = vpop.permute.xlu1 %1704  ;;  %v1581_v61 = vpop.permute.xlu0 %1580 }
 0xc98   :  { %v1707_v54 = vmul.f32 %v5556_v53, %v1705_v59  ;;  %v1583_v13 = vmul.f32 %v5554_v46, %v1581_v61 }
 0xc9a   :  { %1709 = vrot.lane.b32.xlu1 %v1707_v54, %s5739_s28 }
 0xc9b   :  { %v1700_v0 = vpop.permute.xlu1 %1699 }
 0xc9c   :  { %v1702_v8 = vmul.f32 %v5556_v53, %v1700_v0 }
 0xd08   :  { %v1591_v3 = vpop.permute.xlu0 %1590 }
 0xd09   :  { %v1593_v5 = vadd.f32 %v1591_v3, %v1583_v13 }
 0xd0b   :  { %5557 = vtanh.f32 %v1593_v5 }
 0xd0c   :  { %v1710_v9 = vpop.permute.xlu1 %1709 }
 0xd0d   :  { %v1712_v16 = vadd.f32 %v1710_v9, %v1702_v8 }
 0xd0f   :  { %5559 = vtanh.f32 %v1712_v16 }
 0xd15   :  { %v5558_v19 = vpop.eup %5557 }
 0xd16   :  { %1601 = vrot.lane.b32.xlu0 %v5558_v19, %s5741_s3 }
 0xd19   :  { %v5560_v20 = vpop.eup %5559 }
 0xd1a   :  { %1720 = vrot.lane.b32.xlu1 %v5560_v20, %s5741_s3 }
 0xd88   :  { %v1602_v28 = vpop.permute.xlu0 %1601 }
 0xd89   :  { %v1604_v29 = vmul.f32 %v5554_v46, %v1602_v28 }
 0xd8b   :  { %1606 = vrot.lane.b32.xlu0 %v1604_v29, %s5739_s28 }
 0xd8c   :  { %v1721_v56 = vpop.permute.xlu1 %1720 }
 0xd8d   :  { %v1723_v60 = vmul.f32 %v5556_v53, %v1721_v56  ;;  %v1971_v56 = vld [vmem:[%s6684_s6 + $0x10] sm:$0xff] }
 0xd8f   :  { %1725 = vrot.lane.b32.xlu1 %v1723_v60, %s5739_s28  ;;  %1595 = vrot.lane.b32.xlu0 %v1593_v5, %s5742_s5  ;;  %v1972_v60 = vld [vmem:[%s6684_s6 + $0x18] sm:$0xff] }
 0xd93   :  { %1714 = vrot.lane.b32.xlu1 %v1712_v16, %s5742_s5 }
 0xdfd   :  { %v1607_v25 = vpop.permute.xlu0 %1606 }
 0xdfe   :  { %1609 = vst.msk [vmem:[#allocation2] sm:$0xff] %vm64_vm1, %v1607_v25  ;;  %v6281_v25 = vpack.c.bf16 %v1972_v60, %v1971_v56 }
 0xe01   :  { %v1726_v2 = vpop.permute.xlu1 %1725  ;;  %v1596_v58 = vpop.permute.xlu0 %1595 }
 0xe02   :  { %1728 = vst.msk [vmem:[#allocation4] sm:$0xff] %vm64_vm1, %v1726_v2  ;;  %1598 = vst.msk [vmem:[#allocation3] sm:$0xff] %vm64_vm1, %v1596_v58  ;;  %v2090_v2 = vld [vmem:[%s6686_s7 + $0x10] sm:$0xff]  ;;  %v2091_v58 = vld [vmem:[%s6686_s7 + $0x18] sm:$0xff] }
 0xe05   :  { %v1715_v30 = vpop.permute.xlu1 %1714  ;;  %v1730_v33 = vld [vmem:[#allocation2] sm:$0xff] }
 0xe06   :  { %1717 = vst.msk [vmem:[#allocation5] sm:$0xff] %vm64_vm1, %v1715_v30  ;;  %5008 = vmatmul.mubr.msk.f32.vlgmr.msra.gmra.mrb[26].mxu0 %vm64_vm1, %v1730_v33  ;;  %v6291_v30 = vpack.c.bf16 %v2091_v58, %v2090_v2 }
 0xe07   :  { %5345 = vmatpush3.bf16.msra.mxu0 %v6229_v23  ;;  %5029 = vmatprep.mubr.msk.f32.mxu0 %vm5740_vm2, %v5737_v6 }
 0xe08   :  { %5346 = vmatprep.subr.bf16.mxu0 %v5738_v15 }
 0xe09   :  { %v1849_v55 = vld [vmem:[#allocation4] sm:$0xff]  ;;  %v1816_v46 = vld [vmem:[#allocation3] sm:$0xff] }
 0xe0a   :  { %5019 = vmatmul.mubr.msk.f32.vlgmr.msra.gmra.mrb[26].mxu1 %vm64_vm1, %v1849_v55 }
 0xe0b   :  { %5351 = vmatpush3.bf16.msra.mxu1 %v6239_v18  ;;  %5040 = vmatprep.mubr.msk.f32.mxu1 %vm5740_vm2, %v5737_v6 }
 0xe0c   :  { %5352 = vmatprep.subr.bf16.mxu1 %v5738_v15  ;;  %5348 = vmatpush3.bf16.msra.mxu0 %v6281_v25 }
 0xe0d   :  { %v1935_v49 = vld [vmem:[#allocation5] sm:$0xff]  ;;  %5355 = vmatprep.subr.bf16.mxu0 %v5738_v15 }
 0xe0f   :  { %5354 = vmatpush3.bf16.msra.mxu1 %v6291_v30 }
 0xe10   :  { %5361 = vmatprep.subr.bf16.mxu1 %v5738_v15 }
 0xed9   :  { %v1804_v35 = vpop.f32.mrb[26].mxu0 }
 0xeda   :  { %v1808_v37 = vadd.f32 %v1804_v35, %v6039_v11  ;;  %v5009_v14 = vpop.f32.mrb[27].mxu0 }
 0xedc   :  { %5561 = vtanh.f32 %v1808_v37  ;;  %v4581_v11 = vmul.f32 -1.442695, %v1808_v37 }
 0xedd   :  { %v1923_v38 = vpop.f32.mrb[26].mxu1 }
 0xede   :  { %v1927_v41 = vadd.f32 %v1923_v38, %v6077_v47  ;;  %v5020_v44 = vpop.f32.mrb[27].mxu1 }
 0xee0   :  { %5563 = vtanh.f32 %v1927_v41  ;;  %v4583_v51 = vmul.f32 -1.442695, %v1927_v41 }
 0xee1   :  { %5565 = vpow2.f32 %v4581_v11 }
 0xee2   :  { %5567 = vpow2.f32 %v4583_v51 }
 0xee6   :  { %v5562_v43 = vpop.eup %5561 }
 0xee7   :  { %1823 = vrot.lane.b32.xlu0 %v5562_v43, %s5741_s3 }
 0xeea   :  { %v5564_v45 = vpop.eup %5563 }
 0xeeb   :  { %1942 = vrot.lane.b32.xlu1 %v5564_v45, %s5741_s3  ;;  %1818 = vrot.lane.b32.xlu0 %v1816_v46, %s5739_s28  ;;  %v5566_v53 = vpop.eup %5565 }
 0xeec   :  { %v1812_v47 = vadd.f32 1.0, %v5566_v53  ;;  %v5568_v59 = vpop.eup %5567 }
 0xeed   :  { %v1931_v54 = vadd.f32 1.0, %v5568_v59 }
 0xeee   :  { %5569 = vrcp.f32 %v1812_v47 }
 0xeef   :  { %1937 = vrot.lane.b32.xlu1 %v1935_v49, %s5739_s28  ;;  %5571 = vrcp.f32 %v1931_v54 }
 0xef8   :  { %v5570_v61 = vpop.eup %5569 }
 0xef9   :  { %v5572_v3 = vpop.eup %5571 }
 0xf59   :  { %v1824_v13 = vpop.permute.xlu0 %1823 }
 0xf5a   :  { %v1826_v0 = vmul.f32 %v5570_v61, %v1824_v13 }
 0xf5c   :  { %1828 = vrot.lane.b32.xlu0 %v1826_v0, %s5739_s28 }
 0xf5d   :  { %v1943_v5 = vpop.permute.xlu1 %1942  ;;  %v1819_v9 = vpop.permute.xlu0 %1818 }
 0xf5e   :  { %v1945_v8 = vmul.f32 %v5572_v3, %v1943_v5  ;;  %v1821_v16 = vmul.f32 %v5570_v61, %v1819_v9 }
 0xf60   :  { %1947 = vrot.lane.b32.xlu1 %v1945_v8, %s5739_s28 }
 0xf61   :  { %v1938_v19 = vpop.permute.xlu1 %1937 }
 0xf62   :  { %v1940_v4 = vmul.f32 %v5572_v3, %v1938_v19 }
 0xfce   :  { %v1829_v20 = vpop.permute.xlu0 %1828 }
 0xfcf   :  { %v1831_v12 = vadd.f32 %v1829_v20, %v1821_v16 }
 0xfd1   :  { %5573 = vtanh.f32 %v1831_v12 }
 0xfd2   :  { %v1948_v26 = vpop.permute.xlu1 %1947 }
 0xfd3   :  { %v1950_v52 = vadd.f32 %v1948_v26, %v1940_v4 }
 0xfd5   :  { %5575 = vtanh.f32 %v1950_v52 }
 0xfdb   :  { %v5574_v28 = vpop.eup %5573 }
 0xfdc   :  { %1839 = vrot.lane.b32.xlu0 %v5574_v28, %s5741_s3 }
 0xfdf   :  { %v5576_v29 = vpop.eup %5575 }
 0xfe0   :  { %1958 = vrot.lane.b32.xlu1 %v5576_v29, %s5741_s3 }
0x104e   :  { %v1840_v33 = vpop.permute.xlu0 %1839 }
0x104f   :  { %v1842_v55 = vmul.f32 %v5570_v61, %v1840_v33 }
0x1051   :  { %1844 = vrot.lane.b32.xlu0 %v1842_v55, %s5739_s28 }
0x1052   :  { %v1959_v35 = vpop.permute.xlu1 %1958 }
0x1053   :  { %v1961_v37 = vmul.f32 %v5572_v3, %v1959_v35 }
0x1055   :  { %1963 = vrot.lane.b32.xlu1 %v1961_v37, %s5739_s28  ;;  %1833 = vrot.lane.b32.xlu0 %v1831_v12, %s5742_s5 }
0x1059   :  { %1952 = vrot.lane.b32.xlu1 %v1950_v52, %s5742_s5 }
0x10c3   :  { %v1845_v14 = vpop.permute.xlu0 %1844 }
0x10c4   :  { %1847 = vst.msk [vmem:[#allocation2] sm:$0xff] %vm64_vm1, %v1845_v14 }
0x10c7   :  { %v1964_v38 = vpop.permute.xlu1 %1963  ;;  %v1834_v41 = vpop.permute.xlu0 %1833 }
0x10c8   :  { %1966 = vst.msk [vmem:[#allocation4] sm:$0xff] %vm64_vm1, %v1964_v38  ;;  %1836 = vst.msk [vmem:[#allocation3] sm:$0xff] %vm64_vm1, %v1834_v41 }
0x10cb   :  { %v1953_v44 = vpop.permute.xlu1 %1952  ;;  %v1968_v43 = vld [vmem:[#allocation2] sm:$0xff] }
0x10cc   :  { %1955 = vst.msk [vmem:[#allocation5] sm:$0xff] %vm64_vm1, %v1953_v44  ;;  %5030 = vmatmul.mubr.msk.f32.vlgmr.msra.gmra.mrb[28].mxu0 %vm64_vm1, %v1968_v43 }
0x10cd   :  { %5357 = vmatpush3.bf16.msra.mxu0 %v6229_v23  ;;  %5051 = vmatprep.mubr.msk.f32.mxu0 %vm5740_vm2, %v5737_v6 }
0x10ce   :  { %5358 = vmatprep.subr.bf16.mxu0 %v5738_v15 }
0x10cf   :  { %v2087_v45 = vld [vmem:[#allocation4] sm:$0xff]  ;;  %v2054_v61 = vld [vmem:[#allocation3] sm:$0xff] }
0x10d0   :  { %5041 = vmatmul.mubr.msk.f32.vlgmr.msra.gmra.mrb[28].mxu1 %vm64_vm1, %v2087_v45 }
0x10d1   :  { %5360 = vmatpush3.bf16.msra.mxu0 %v6281_v25  ;;  %5363 = vmatpush3.bf16.msra.mxu1 %v6239_v18 }
0x10d2   :  { %5364 = vmatprep.subr.bf16.mxu1 %v5738_v15  ;;  %5062 = vmatprep.mubr.msk.f32.mxu1 %vm5740_vm2, %v5737_v6 }
0x10d3   :  { %5367 = vmatprep.subr.bf16.mxu0 %v5738_v15  ;;  %v2173_v13 = vld [vmem:[#allocation5] sm:$0xff] }
0x10d5   :  { %5366 = vmatpush3.bf16.msra.mxu1 %v6291_v30 }
0x10d6   :  { %5373 = vmatprep.subr.bf16.mxu1 %v5738_v15 }
0x119f   :  { %v2042_v46 = vpop.f32.mrb[28].mxu0 }
0x11a0   :  { %v2046_v49 = vadd.f32 %v2042_v46, %v6051_v24  ;;  %v5031_v11 = vpop.f32.mrb[29].mxu0 }
0x11a2   :  { %5577 = vtanh.f32 %v2046_v49  ;;  %v4585_v24 = vmul.f32 -1.442695, %v2046_v49 }
0x11a3   :  { %v2161_v51 = vpop.f32.mrb[28].mxu1 }
0x11a4   :  { %v2165_v53 = vadd.f32 %v2161_v51, %v6064_v36  ;;  %v5042_v47 = vpop.f32.mrb[29].mxu1 }
0x11a6   :  { %5579 = vtanh.f32 %v2165_v53  ;;  %v4587_v0 = vmul.f32 -1.442695, %v2165_v53 }
0x11a7   :  { %5581 = vpow2.f32 %v4585_v24 }
0x11a8   :  { %5583 = vpow2.f32 %v4587_v0 }
0x11ac   :  { %v5578_v59 = vpop.eup %5577 }
0x11ad   :  { %2061 = vrot.lane.b32.xlu0 %v5578_v59, %s5741_s3 }
0x11b0   :  { %v5580_v54 = vpop.eup %5579 }
0x11b1   :  { %2180 = vrot.lane.b32.xlu1 %v5580_v54, %s5741_s3  ;;  %2056 = vrot.lane.b32.xlu0 %v2054_v61, %s5739_s28  ;;  %v5582_v3 = vpop.eup %5581 }
0x11b2   :  { %v2050_v36 = vadd.f32 1.0, %v5582_v3  ;;  %v5584_v5 = vpop.eup %5583 }
0x11b3   :  { %v2169_v8 = vadd.f32 1.0, %v5584_v5 }
0x11b4   :  { %5585 = vrcp.f32 %v2050_v36 }
0x11b5   :  { %2175 = vrot.lane.b32.xlu1 %v2173_v13, %s5739_s28  ;;  %5587 = vrcp.f32 %v2169_v8 }
0x11be   :  { %v5586_v9 = vpop.eup %5585 }
0x11bf   :  { %v5588_v20 = vpop.eup %5587 }
0x121f   :  { %v2062_v16 = vpop.permute.xlu0 %2061 }
0x1220   :  { %v2064_v19 = vmul.f32 %v5586_v9, %v2062_v16 }
0x1222   :  { %2066 = vrot.lane.b32.xlu0 %v2064_v19, %s5739_s28 }
0x1223   :  { %v2181_v12 = vpop.permute.xlu1 %2180  ;;  %v2057_v26 = vpop.permute.xlu0 %2056 }
0x1224   :  { %v2183_v4 = vmul.f32 %v5588_v20, %v2181_v12  ;;  %v2059_v52 = vmul.f32 %v5586_v9, %v2057_v26 }
0x1226   :  { %2185 = vrot.lane.b32.xlu1 %v2183_v4, %s5739_s28 }
0x1227   :  { %v2176_v28 = vpop.permute.xlu1 %2175 }
0x1228   :  { %v2178_v60 = vmul.f32 %v5588_v20, %v2176_v28 }
0x1294   :  { %v2067_v29 = vpop.permute.xlu0 %2066 }
0x1295   :  { %v2069_v56 = vadd.f32 %v2067_v29, %v2059_v52 }
0x1297   :  { %5589 = vtanh.f32 %v2069_v56 }
0x1298   :  { %v2186_v2 = vpop.permute.xlu1 %2185 }
0x1299   :  { %v2188_v58 = vadd.f32 %v2186_v2, %v2178_v60 }
0x129b   :  { %5591 = vtanh.f32 %v2188_v58 }
0x12a1   :  { %v5590_v33 = vpop.eup %5589 }
0x12a2   :  { %2077 = vrot.lane.b32.xlu0 %v5590_v33, %s5741_s3 }
0x12a5   :  { %v5592_v55 = vpop.eup %5591 }
0x12a6   :  { %2196 = vrot.lane.b32.xlu1 %v5592_v55, %s5741_s3 }
0x1314   :  { %v2078_v35 = vpop.permute.xlu0 %2077 }
0x1315   :  { %v2080_v37 = vmul.f32 %v5586_v9, %v2078_v35 }
0x1317   :  { %2082 = vrot.lane.b32.xlu0 %v2080_v37, %s5739_s28 }
0x1318   :  { %v2197_v14 = vpop.permute.xlu1 %2196 }
0x1319   :  { %v2199_v38 = vmul.f32 %v5588_v20, %v2197_v14 }
0x131b   :  { %2201 = vrot.lane.b32.xlu1 %v2199_v38, %s5739_s28  ;;  %2071 = vrot.lane.b32.xlu0 %v2069_v56, %s5742_s5 }
0x131f   :  { %2190 = vrot.lane.b32.xlu1 %v2188_v58, %s5742_s5 }
0x1389   :  { %v2083_v41 = vpop.permute.xlu0 %2082 }
0x138a   :  { %2085 = vst.msk [vmem:[#allocation2] sm:$0xff] %vm64_vm1, %v2083_v41 }
0x138d   :  { %v2202_v44 = vpop.permute.xlu1 %2201  ;;  %v2072_v43 = vpop.permute.xlu0 %2071 }
0x138e   :  { %2204 = vst.msk [vmem:[#allocation4] sm:$0xff] %vm64_vm1, %v2202_v44  ;;  %2074 = vst.msk [vmem:[#allocation3] sm:$0xff] %vm64_vm1, %v2072_v43 }
0x1391   :  { %v2191_v45 = vpop.permute.xlu1 %2190  ;;  %v2206_v46 = vld [vmem:[#allocation2] sm:$0xff] }
0x1392   :  { %2193 = vst.msk [vmem:[#allocation5] sm:$0xff] %vm64_vm1, %v2191_v45  ;;  %5052 = vmatmul.mubr.msk.f32.vlgmr.msra.gmra.mrb[30].mxu0 %vm64_vm1, %v2206_v46 }
0x1393   :  { %5369 = vmatpush3.bf16.msra.mxu0 %v6229_v23  ;;  %5073 = vmatprep.mubr.msk.f32.mxu0 %vm5740_vm2, %v5737_v6 }
0x1394   :  { %5370 = vmatprep.subr.bf16.mxu0 %v5738_v15 }
0x1395   :  { %v2325_v49 = vld [vmem:[#allocation4] sm:$0xff]  ;;  %v2292_v24 = vld [vmem:[#allocation3] sm:$0xff] }
0x1396   :  { %5063 = vmatmul.mubr.msk.f32.vlgmr.msra.gmra.mrb[30].mxu1 %vm64_vm1, %v2325_v49 }
0x1397   :  { %5372 = vmatpush3.bf16.msra.mxu0 %v6281_v25  ;;  %5375 = vmatpush3.bf16.msra.mxu1 %v6239_v18 }
0x1398   :  { %5376 = vmatprep.subr.bf16.mxu1 %v5738_v15  ;;  %5084 = vmatprep.mubr.msk.f32.mxu1 %vm5740_vm2, %v5737_v6 }
0x1399   :  { %5379 = vmatprep.subr.bf16.mxu0 %v5738_v15  ;;  %v2411_v0 = vld [vmem:[#allocation5] sm:$0xff] }
0x139b   :  { %5378 = vmatpush3.bf16.msra.mxu1 %v6291_v30 }
0x139c   :  { %5385 = vmatprep.subr.bf16.mxu1 %v5738_v15 }
0x1465   :  { %v2280_v11 = vpop.f32.mrb[30].mxu0 }
0x1466   :  { %v2284_v51 = vadd.f32 %v2280_v11, %v6049_v22  ;;  %v5053_v53 = vpop.f32.mrb[31].mxu0 }
0x1468   :  { %5593 = vtanh.f32 %v2284_v51  ;;  %v4589_v22 = vmul.f32 -1.442695, %v2284_v51 }
0x1469   :  { %v2399_v47 = vpop.f32.mrb[30].mxu1 }
0x146a   :  { %v2403_v59 = vadd.f32 %v2399_v47, %v6067_v39  ;;  %v5064_v54 = vpop.f32.mrb[31].mxu1 }
0x146c   :  { %5595 = vtanh.f32 %v2403_v59  ;;  %v4591_v3 = vmul.f32 -1.442695, %v2403_v59 }
0x146d   :  { %5597 = vpow2.f32 %v4589_v22 }
0x146e   :  { %5599 = vpow2.f32 %v4591_v3 }
0x1472   :  { %v5594_v61 = vpop.eup %5593 }
0x1473   :  { %2299 = vrot.lane.b32.xlu0 %v5594_v61, %s5741_s3 }
0x1476   :  { %v5596_v13 = vpop.eup %5595 }
0x1477   :  { %2418 = vrot.lane.b32.xlu1 %v5596_v13, %s5741_s3  ;;  %2294 = vrot.lane.b32.xlu0 %v2292_v24, %s5739_s28  ;;  %v5598_v36 = vpop.eup %5597 }
0x1478   :  { %v2288_v39 = vadd.f32 1.0, %v5598_v36  ;;  %v5600_v5 = vpop.eup %5599 }
0x1479   :  { %v2407_v8 = vadd.f32 1.0, %v5600_v5 }
0x147a   :  { %5601 = vrcp.f32 %v2288_v39 }
0x147b   :  { %2413 = vrot.lane.b32.xlu1 %v2411_v0, %s5739_s28  ;;  %5603 = vrcp.f32 %v2407_v8 }
0x1484   :  { %v5602_v9 = vpop.eup %5601 }
0x1485   :  { %v5604_v20 = vpop.eup %5603 }
0x14e5   :  { %v2300_v16 = vpop.permute.xlu0 %2299 }
0x14e6   :  { %v2302_v19 = vmul.f32 %v5602_v9, %v2300_v16 }
0x14e8   :  { %2304 = vrot.lane.b32.xlu0 %v2302_v19, %s5739_s28 }
0x14e9   :  { %v2419_v12 = vpop.permute.xlu1 %2418  ;;  %v2295_v26 = vpop.permute.xlu0 %2294 }
0x14ea   :  { %v2421_v4 = vmul.f32 %v5604_v20, %v2419_v12  ;;  %v2297_v52 = vmul.f32 %v5602_v9, %v2295_v26 }
0x14ec   :  { %2423 = vrot.lane.b32.xlu1 %v2421_v4, %s5739_s28 }
0x14ed   :  { %v2414_v28 = vpop.permute.xlu1 %2413 }
0x14ee   :  { %v2416_v60 = vmul.f32 %v5604_v20, %v2414_v28 }
0x155a   :  { %v2305_v29 = vpop.permute.xlu0 %2304 }
0x155b   :  { %v2307_v56 = vadd.f32 %v2305_v29, %v2297_v52 }
0x155d   :  { %5605 = vtanh.f32 %v2307_v56 }
0x155e   :  { %v2424_v2 = vpop.permute.xlu1 %2423 }
0x155f   :  { %v2426_v58 = vadd.f32 %v2424_v2, %v2416_v60 }
0x1561   :  { %5607 = vtanh.f32 %v2426_v58 }
0x1567   :  { %v5606_v33 = vpop.eup %5605 }
0x1568   :  { %2315 = vrot.lane.b32.xlu0 %v5606_v33, %s5741_s3 }
0x156b   :  { %v5608_v55 = vpop.eup %5607 }
0x156c   :  { %2434 = vrot.lane.b32.xlu1 %v5608_v55, %s5741_s3 }
0x15da   :  { %v2316_v35 = vpop.permute.xlu0 %2315 }
0x15db   :  { %v2318_v37 = vmul.f32 %v5602_v9, %v2316_v35 }
0x15dd   :  { %2320 = vrot.lane.b32.xlu0 %v2318_v37, %s5739_s28 }
0x15de   :  { %v2435_v14 = vpop.permute.xlu1 %2434 }
0x15df   :  { %v2437_v38 = vmul.f32 %v5604_v20, %v2435_v14 }
0x15e1   :  { %2439 = vrot.lane.b32.xlu1 %v2437_v38, %s5739_s28  ;;  %2309 = vrot.lane.b32.xlu0 %v2307_v56, %s5742_s5 }
0x15e5   :  { %2428 = vrot.lane.b32.xlu1 %v2426_v58, %s5742_s5 }
0x164f   :  { %v2321_v41 = vpop.permute.xlu0 %2320 }
0x1650   :  { %2323 = vst.msk [vmem:[#allocation2] sm:$0xff] %vm64_vm1, %v2321_v41 }
0x1653   :  { %v2440_v44 = vpop.permute.xlu1 %2439  ;;  %v2310_v43 = vpop.permute.xlu0 %2309 }
0x1654   :  { %2442 = vst.msk [vmem:[#allocation4] sm:$0xff] %vm64_vm1, %v2440_v44  ;;  %2312 = vst.msk [vmem:[#allocation3] sm:$0xff] %vm64_vm1, %v2310_v43 }
0x1657   :  { %v2429_v45 = vpop.permute.xlu1 %2428  ;;  %v2444_v46 = vld [vmem:[#allocation2] sm:$0xff] }
0x1658   :  { %2431 = vst.msk [vmem:[#allocation5] sm:$0xff] %vm64_vm1, %v2429_v45  ;;  %5074 = vmatmul.mubr.msk.f32.vlgmr.msra.gmra.mrb[32].mxu0 %vm64_vm1, %v2444_v46 }
0x1659   :  { %5381 = vmatpush3.bf16.msra.mxu0 %v6229_v23  ;;  %5095 = vmatprep.mubr.msk.f32.mxu0 %vm5740_vm2, %v5737_v6 }
0x165a   :  { %5382 = vmatprep.subr.bf16.mxu0 %v5738_v15 }
0x165b   :  { %v2563_v49 = vld [vmem:[#allocation4] sm:$0xff]  ;;  %v2530_v24 = vld [vmem:[#allocation3] sm:$0xff] }
0x165c   :  { %5085 = vmatmul.mubr.msk.f32.vlgmr.msra.gmra.mrb[32].mxu1 %vm64_vm1, %v2563_v49 }
0x165d   :  { %5384 = vmatpush3.bf16.msra.mxu0 %v6281_v25  ;;  %5387 = vmatpush3.bf16.msra.mxu1 %v6239_v18 }
0x165e   :  { %5388 = vmatprep.subr.bf16.mxu1 %v5738_v15  ;;  %5106 = vmatprep.mubr.msk.f32.mxu1 %vm5740_vm2, %v5737_v6 }
0x165f   :  { %5391 = vmatprep.subr.bf16.mxu0 %v5738_v15  ;;  %v2649_v0 = vld [vmem:[#allocation5] sm:$0xff] }
0x1661   :  { %5390 = vmatpush3.bf16.msra.mxu1 %v6291_v30 }
0x1662   :  { %5397 = vmatprep.subr.bf16.mxu1 %v5738_v15 }
0x172b   :  { %v2518_v11 = vpop.f32.mrb[32].mxu0 }
0x172c   :  { %v2522_v51 = vadd.f32 %v2518_v11, %v6061_v34  ;;  %v5075_v53 = vpop.f32.mrb[33].mxu0 }
0x172e   :  { %5609 = vtanh.f32 %v2522_v51  ;;  %v4593_v34 = vmul.f32 -1.442695, %v2522_v51 }
0x172f   :  { %v2637_v47 = vpop.f32.mrb[32].mxu1 }
0x1730   :  { %v2641_v59 = vadd.f32 %v2637_v47, %v6054_v27  ;;  %v5086_v54 = vpop.f32.mrb[33].mxu1 }
0x1732   :  { %5611 = vtanh.f32 %v2641_v59  ;;  %v4595_v22 = vmul.f32 -1.442695, %v2641_v59 }
0x1733   :  { %5613 = vpow2.f32 %v4593_v34 }
0x1734   :  { %5615 = vpow2.f32 %v4595_v22 }
0x1738   :  { %v5610_v61 = vpop.eup %5609 }
0x1739   :  { %2537 = vrot.lane.b32.xlu0 %v5610_v61, %s5741_s3 }
0x173c   :  { %v5612_v13 = vpop.eup %5611 }
0x173d   :  { %2656 = vrot.lane.b32.xlu1 %v5612_v13, %s5741_s3  ;;  %2532 = vrot.lane.b32.xlu0 %v2530_v24, %s5739_s28  ;;  %v5614_v3 = vpop.eup %5613 }
0x173e   :  { %v2526_v27 = vadd.f32 1.0, %v5614_v3  ;;  %v5616_v36 = vpop.eup %5615 }
0x173f   :  { %v2645_v39 = vadd.f32 1.0, %v5616_v36 }
0x1740   :  { %5617 = vrcp.f32 %v2526_v27 }
0x1741   :  { %2651 = vrot.lane.b32.xlu1 %v2649_v0, %s5739_s28  ;;  %5619 = vrcp.f32 %v2645_v39 }
0x174a   :  { %v5618_v5 = vpop.eup %5617 }
0x174b   :  { %v5620_v16 = vpop.eup %5619 }
0x17ab   :  { %v2538_v8 = vpop.permute.xlu0 %2537 }
0x17ac   :  { %v2540_v9 = vmul.f32 %v5618_v5, %v2538_v8 }
0x17ae   :  { %2542 = vrot.lane.b32.xlu0 %v2540_v9, %s5739_s28 }
0x17af   :  { %v2657_v19 = vpop.permute.xlu1 %2656  ;;  %v2533_v12 = vpop.permute.xlu0 %2532 }
0x17b0   :  { %v2659_v20 = vmul.f32 %v5620_v16, %v2657_v19  ;;  %v2535_v4 = vmul.f32 %v5618_v5, %v2533_v12 }
0x17b2   :  { %2661 = vrot.lane.b32.xlu1 %v2659_v20, %s5739_s28 }
0x17b3   :  { %v2652_v26 = vpop.permute.xlu1 %2651 }
0x17b4   :  { %v2654_v29 = vmul.f32 %v5620_v16, %v2652_v26 }
0x1820   :  { %v2543_v52 = vpop.permute.xlu0 %2542 }
0x1821   :  { %v2545_v28 = vadd.f32 %v2543_v52, %v2535_v4 }
0x1823   :  { %5621 = vtanh.f32 %v2545_v28 }
0x1824   :  { %v2662_v56 = vpop.permute.xlu1 %2661 }
0x1825   :  { %v2664_v60 = vadd.f32 %v2662_v56, %v2654_v29 }
0x1827   :  { %5623 = vtanh.f32 %v2664_v60 }
0x182d   :  { %v5622_v2 = vpop.eup %5621 }
0x182e   :  { %2553 = vrot.lane.b32.xlu0 %v5622_v2, %s5741_s3 }
0x1831   :  { %v5624_v58 = vpop.eup %5623 }
0x1832   :  { %2672 = vrot.lane.b32.xlu1 %v5624_v58, %s5741_s3 }
0x18a0   :  { %v2554_v33 = vpop.permute.xlu0 %2553 }
0x18a1   :  { %v2556_v55 = vmul.f32 %v5618_v5, %v2554_v33 }
0x18a3   :  { %2558 = vrot.lane.b32.xlu0 %v2556_v55, %s5739_s28 }
0x18a4   :  { %v2673_v35 = vpop.permute.xlu1 %2672 }
0x18a5   :  { %v2675_v37 = vmul.f32 %v5620_v16, %v2673_v35 }
0x18a7   :  { %2677 = vrot.lane.b32.xlu1 %v2675_v37, %s5739_s28  ;;  %2547 = vrot.lane.b32.xlu0 %v2545_v28, %s5742_s5 }
0x18ab   :  { %2666 = vrot.lane.b32.xlu1 %v2664_v60, %s5742_s5 }
0x1915   :  { %v2559_v14 = vpop.permute.xlu0 %2558 }
0x1916   :  { %2561 = vst.msk [vmem:[#allocation2] sm:$0xff] %vm64_vm1, %v2559_v14 }
0x1919   :  { %v2678_v38 = vpop.permute.xlu1 %2677  ;;  %v2548_v41 = vpop.permute.xlu0 %2547 }
0x191a   :  { %2680 = vst.msk [vmem:[#allocation4] sm:$0xff] %vm64_vm1, %v2678_v38  ;;  %2550 = vst.msk [vmem:[#allocation3] sm:$0xff] %vm64_vm1, %v2548_v41 }
0x191d   :  { %v2667_v44 = vpop.permute.xlu1 %2666  ;;  %v2682_v43 = vld [vmem:[#allocation2] sm:$0xff] }
0x191e   :  { %2669 = vst.msk [vmem:[#allocation5] sm:$0xff] %vm64_vm1, %v2667_v44  ;;  %5096 = vmatmul.mubr.msk.f32.vlgmr.msra.gmra.mrb[34].mxu0 %vm64_vm1, %v2682_v43 }
0x191f   :  { %5393 = vmatpush3.bf16.msra.mxu0 %v6229_v23  ;;  %5117 = vmatprep.mubr.msk.f32.mxu0 %vm5740_vm2, %v5737_v6 }
0x1920   :  { %5394 = vmatprep.subr.bf16.mxu0 %v5738_v15 }
0x1921   :  { %v2801_v45 = vld [vmem:[#allocation4] sm:$0xff]  ;;  %v2768_v61 = vld [vmem:[#allocation3] sm:$0xff] }
0x1922   :  { %5107 = vmatmul.mubr.msk.f32.vlgmr.msra.gmra.mrb[34].mxu1 %vm64_vm1, %v2801_v45 }
0x1923   :  { %5396 = vmatpush3.bf16.msra.mxu0 %v6281_v25  ;;  %5399 = vmatpush3.bf16.msra.mxu1 %v6239_v18 }
0x1924   :  { %5400 = vmatprep.subr.bf16.mxu1 %v5738_v15  ;;  %5128 = vmatprep.mubr.msk.f32.mxu1 %vm5740_vm2, %v5737_v6 }
0x1925   :  { %5403 = vmatprep.subr.bf16.mxu0 %v5738_v15  ;;  %v2887_v13 = vld [vmem:[#allocation5] sm:$0xff] }
0x1927   :  { %5402 = vmatpush3.bf16.msra.mxu1 %v6291_v30 }
0x1928   :  { %5409 = vmatprep.subr.bf16.mxu1 %v5738_v15 }
0x19f1   :  { %v2756_v46 = vpop.f32.mrb[34].mxu0 }
0x19f2   :  { %v2760_v49 = vadd.f32 %v2756_v46, %v6059_v32  ;;  %v5097_v11 = vpop.f32.mrb[35].mxu0 }
0x19f4   :  { %5625 = vtanh.f32 %v2760_v49  ;;  %v4597_v32 = vmul.f32 -1.442695, %v2760_v49 }
0x19f5   :  { %v2875_v51 = vpop.f32.mrb[34].mxu1 }
0x19f6   :  { %v2879_v53 = vadd.f32 %v2875_v51, %v6057_v31  ;;  %v5108_v47 = vpop.f32.mrb[35].mxu1 }
0x19f8   :  { %5627 = vtanh.f32 %v2879_v53  ;;  %v4599_v24 = vmul.f32 -1.442695, %v2879_v53 }
0x19f9   :  { %5629 = vpow2.f32 %v4597_v32 }
0x19fa   :  { %5631 = vpow2.f32 %v4599_v24 }
0x19fe   :  { %v5626_v59 = vpop.eup %5625 }
0x19ff   :  { %2775 = vrot.lane.b32.xlu0 %v5626_v59, %s5741_s3 }
0x1a02   :  { %v5628_v54 = vpop.eup %5627 }
0x1a03   :  { %2894 = vrot.lane.b32.xlu1 %v5628_v54, %s5741_s3  ;;  %2770 = vrot.lane.b32.xlu0 %v2768_v61, %s5739_s28  ;;  %v5630_v0 = vpop.eup %5629 }
0x1a04   :  { %v2764_v31 = vadd.f32 1.0, %v5630_v0  ;;  %v5632_v34 = vpop.eup %5631 }
0x1a05   :  { %v2883_v22 = vadd.f32 1.0, %v5632_v34 }
0x1a06   :  { %5633 = vrcp.f32 %v2764_v31 }
0x1a07   :  { %2889 = vrot.lane.b32.xlu1 %v2887_v13, %s5739_s28  ;;  %5635 = vrcp.f32 %v2883_v22 }
0x1a10   :  { %v5634_v3 = vpop.eup %5633 }
0x1a11   :  { %v5636_v39 = vpop.eup %5635 }
0x1a71   :  { %v2776_v27 = vpop.permute.xlu0 %2775 }
0x1a72   :  { %v2778_v36 = vmul.f32 %v5634_v3, %v2776_v27 }
0x1a74   :  { %2780 = vrot.lane.b32.xlu0 %v2778_v36, %s5739_s28 }
0x1a75   :  { %v2895_v5 = vpop.permute.xlu1 %2894  ;;  %v2771_v9 = vpop.permute.xlu0 %2770 }
0x1a76   :  { %v2897_v8 = vmul.f32 %v5636_v39, %v2895_v5  ;;  %v2773_v16 = vmul.f32 %v5634_v3, %v2771_v9 }
0x1a78   :  { %2899 = vrot.lane.b32.xlu1 %v2897_v8, %s5739_s28 }
0x1a79   :  { %v2890_v19 = vpop.permute.xlu1 %2889 }
0x1a7a   :  { %v2892_v4 = vmul.f32 %v5636_v39, %v2890_v19 }
0x1ae6   :  { %v2781_v20 = vpop.permute.xlu0 %2780 }
0x1ae7   :  { %v2783_v12 = vadd.f32 %v2781_v20, %v2773_v16 }
0x1ae9   :  { %5637 = vtanh.f32 %v2783_v12 }
0x1aea   :  { %v2900_v26 = vpop.permute.xlu1 %2899 }
0x1aeb   :  { %v2902_v52 = vadd.f32 %v2900_v26, %v2892_v4 }
0x1aed   :  { %5639 = vtanh.f32 %v2902_v52 }
0x1af3   :  { %v5638_v28 = vpop.eup %5637 }
0x1af4   :  { %2791 = vrot.lane.b32.xlu0 %v5638_v28, %s5741_s3 }
0x1af7   :  { %v5640_v29 = vpop.eup %5639 }
0x1af8   :  { %2910 = vrot.lane.b32.xlu1 %v5640_v29, %s5741_s3 }
0x1b66   :  { %v2792_v56 = vpop.permute.xlu0 %2791 }
0x1b67   :  { %v2794_v60 = vmul.f32 %v5634_v3, %v2792_v56 }
0x1b69   :  { %2796 = vrot.lane.b32.xlu0 %v2794_v60, %s5739_s28 }
0x1b6a   :  { %v2911_v2 = vpop.permute.xlu1 %2910 }
0x1b6b   :  { %v2913_v58 = vmul.f32 %v5636_v39, %v2911_v2 }
0x1b6d   :  { %2915 = vrot.lane.b32.xlu1 %v2913_v58, %s5739_s28  ;;  %2785 = vrot.lane.b32.xlu0 %v2783_v12, %s5742_s5 }
0x1b71   :  { %2904 = vrot.lane.b32.xlu1 %v2902_v52, %s5742_s5 }
0x1bdb   :  { %v2797_v33 = vpop.permute.xlu0 %2796 }
0x1bdc   :  { %2799 = vst.msk [vmem:[#allocation2] sm:$0xff] %vm64_vm1, %v2797_v33 }
0x1bdf   :  { %v2916_v55 = vpop.permute.xlu1 %2915  ;;  %v2786_v35 = vpop.permute.xlu0 %2785 }
0x1be0   :  { %2918 = vst.msk [vmem:[#allocation4] sm:$0xff] %vm64_vm1, %v2916_v55  ;;  %2788 = vst.msk [vmem:[#allocation3] sm:$0xff] %vm64_vm1, %v2786_v35 }
0x1be3   :  { %v2905_v37 = vpop.permute.xlu1 %2904  ;;  %v2920_v14 = vld [vmem:[#allocation2] sm:$0xff] }
0x1be4   :  { %2907 = vst.msk [vmem:[#allocation5] sm:$0xff] %vm64_vm1, %v2905_v37  ;;  %5118 = vmatmul.mubr.msk.f32.vlgmr.msra.gmra.mrb[36].mxu0 %vm64_vm1, %v2920_v14 }
0x1be5   :  { %5405 = vmatpush3.bf16.msra.mxu0 %v6229_v23  ;;  %5139 = vmatprep.mubr.msk.f32.mxu0 %vm5740_vm2, %v5737_v6 }
0x1be6   :  { %5406 = vmatprep.subr.bf16.mxu0 %v5738_v15 }
0x1be7   :  { %v3039_v38 = vld [vmem:[#allocation4] sm:$0xff]  ;;  %v3006_v11 = vld [vmem:[#allocation3] sm:$0xff] }
0x1be8   :  { %5129 = vmatmul.mubr.msk.f32.vlgmr.msra.gmra.mrb[36].mxu1 %vm64_vm1, %v3039_v38 }
0x1be9   :  { %5408 = vmatpush3.bf16.msra.mxu0 %v6281_v25  ;;  %5411 = vmatpush3.bf16.msra.mxu1 %v6239_v18 }
0x1bea   :  { %5412 = vmatprep.subr.bf16.mxu1 %v5738_v15  ;;  %5150 = vmatprep.mubr.msk.f32.mxu1 %vm5740_vm2, %v5737_v6 }
0x1beb   :  { %5415 = vmatprep.subr.bf16.mxu0 %v5738_v15  ;;  %v3125_v51 = vld [vmem:[#allocation5] sm:$0xff] }
0x1bed   :  { %5414 = vmatpush3.bf16.msra.mxu1 %v6291_v30 }
0x1bee   :  { %5421 = vmatprep.subr.bf16.mxu1 %v5738_v15 }
0x1cb7   :  { %v2994_v23 = vpop.f32.mrb[36].mxu0 }
0x1cb8   :  { %v2998_v41 = vadd.f32 %v2994_v23, %v6071_v42  ;;  %v5119_v44 = vpop.f32.mrb[37].mxu0 }
0x1cba   :  { %5641 = vtanh.f32 %v2998_v41  ;;  %v4601_v42 = vmul.f32 -1.442695, %v2998_v41 }
0x1cbb   :  { %v3113_v43 = vpop.f32.mrb[36].mxu1 }
0x1cbc   :  { %v3117_v45 = vadd.f32 %v3113_v43, %v6044_v17  ;;  %v5130_v18 = vpop.f32.mrb[37].mxu1 }
0x1cbe   :  { %5643 = vtanh.f32 %v3117_v45  ;;  %v4603_v53 = vmul.f32 -1.442695, %v3117_v45 }
0x1cbf   :  { %5645 = vpow2.f32 %v4601_v42 }
0x1cc0   :  { %5647 = vpow2.f32 %v4603_v53 }
0x1cc4   :  { %v5642_v46 = vpop.eup %5641 }
0x1cc5   :  { %3013 = vrot.lane.b32.xlu0 %v5642_v46, %s5741_s3 }
0x1cc8   :  { %v5644_v49 = vpop.eup %5643 }
0x1cc9   :  { %3132 = vrot.lane.b32.xlu1 %v5644_v49, %s5741_s3  ;;  %3008 = vrot.lane.b32.xlu0 %v3006_v11, %s5739_s28  ;;  %v5646_v47 = vpop.eup %5645 }
0x1cca   :  { %v3002_v17 = vadd.f32 1.0, %v5646_v47  ;;  %v5648_v59 = vpop.eup %5647 }
0x1ccb   :  { %v3121_v54 = vadd.f32 1.0, %v5648_v59 }
0x1ccc   :  { %5649 = vrcp.f32 %v3002_v17 }
0x1ccd   :  { %3127 = vrot.lane.b32.xlu1 %v3125_v51, %s5739_s28  ;;  %5651 = vrcp.f32 %v3121_v54 }
0x1cd6   :  { %v5650_v61 = vpop.eup %5649 }
0x1cd7   :  { %v5652_v24 = vpop.eup %5651 }
0x1d37   :  { %v3014_v13 = vpop.permute.xlu0 %3013 }
0x1d38   :  { %v3016_v32 = vmul.f32 %v5650_v61, %v3014_v13 }
0x1d3a   :  { %3018 = vrot.lane.b32.xlu0 %v3016_v32, %s5739_s28 }
0x1d3b   :  { %v3133_v0 = vpop.permute.xlu1 %3132  ;;  %v3009_v34 = vpop.permute.xlu0 %3008 }
0x1d3c   :  { %v3135_v31 = vmul.f32 %v5652_v24, %v3133_v0  ;;  %v3011_v22 = vmul.f32 %v5650_v61, %v3009_v34  ;;  %v3397_v34 = vld [vmem:[%s6684_s6] sm:$0xff] }
0x1d3e   :  { %3137 = vrot.lane.b32.xlu1 %v3135_v31, %s5739_s28 }
0x1d3f   :  { %v3128_v3 = vpop.permute.xlu1 %3127 }
0x1d40   :  { %v3130_v39 = vmul.f32 %v5652_v24, %v3128_v3 }
0x1dac   :  { %v3019_v27 = vpop.permute.xlu0 %3018 }
0x1dad   :  { %v3021_v36 = vadd.f32 %v3019_v27, %v3011_v22  ;;  %v3398_v22 = vld [vmem:[%s6684_s6 + $0x8] sm:$0xff]  ;;  %v3516_v27 = vld [vmem:[%s6686_s7] sm:$0xff] }
0x1dae   :  { %v6485_v3 = vpack.c.bf16 %v3398_v22, %v3397_v34 }
0x1daf   :  { %5653 = vtanh.f32 %v3021_v36 }
0x1db0   :  { %v3138_v5 = vpop.permute.xlu1 %3137 }
0x1db1   :  { %v3140_v8 = vadd.f32 %v3138_v5, %v3130_v39 }
0x1db3   :  { %5655 = vtanh.f32 %v3140_v8 }
0x1db9   :  { %v5654_v9 = vpop.eup %5653 }
0x1dba   :  { %3029 = vrot.lane.b32.xlu0 %v5654_v9, %s5741_s3 }
0x1dbd   :  { %v5656_v16 = vpop.eup %5655 }
0x1dbe   :  { %3148 = vrot.lane.b32.xlu1 %v5656_v16, %s5741_s3 }
0x1e2c   :  { %v3030_v19 = vpop.permute.xlu0 %3029 }
0x1e2d   :  { %v3032_v20 = vmul.f32 %v5650_v61, %v3030_v19 }
0x1e2f   :  { %3034 = vrot.lane.b32.xlu0 %v3032_v20, %s5739_s28 }
0x1e30   :  { %v3149_v12 = vpop.permute.xlu1 %3148 }
0x1e31   :  { %v3151_v4 = vmul.f32 %v5652_v24, %v3149_v12 }
0x1e33   :  { %3153 = vrot.lane.b32.xlu1 %v3151_v4, %s5739_s28  ;;  %3023 = vrot.lane.b32.xlu0 %v3021_v36, %s5742_s5  ;;  %v3517_v36 = vld [vmem:[%s6686_s7 + $0x8] sm:$0xff] }
0x1e34   :  { %v6495_v39 = vpack.c.bf16 %v3517_v36, %v3516_v27 }
0x1e37   :  { %3142 = vrot.lane.b32.xlu1 %v3140_v8, %s5742_s5 }
0x1ea1   :  { %v3035_v26 = vpop.permute.xlu0 %3034 }
0x1ea2   :  { %3037 = vst.msk [vmem:[#allocation2] sm:$0xff] %vm64_vm1, %v3035_v26 }
0x1ea5   :  { %v3154_v52 = vpop.permute.xlu1 %3153  ;;  %v3024_v28 = vpop.permute.xlu0 %3023 }
0x1ea6   :  { %3156 = vst.msk [vmem:[#allocation4] sm:$0xff] %vm64_vm1, %v3154_v52  ;;  %3026 = vst.msk [vmem:[#allocation3] sm:$0xff] %vm64_vm1, %v3024_v28 }
0x1ea9   :  { %v3143_v29 = vpop.permute.xlu1 %3142  ;;  %v3158_v56 = vld [vmem:[#allocation2] sm:$0xff] }
0x1eaa   :  { %3145 = vst.msk [vmem:[#allocation5] sm:$0xff] %vm64_vm1, %v3143_v29  ;;  %5140 = vmatmul.mubr.msk.f32.vlgmr.msra.gmra.mrb[38].mxu0 %vm64_vm1, %v3158_v56 }
0x1eab   :  { %5161 = vmatprep.mubr.msk.f32.mxu0 %vm5740_vm2, %v5737_v6  ;;  %5417 = vmatpush3.bf16.msra.mxu0 %v6485_v3 }
0x1eac   :  { %5418 = vmatprep.subr.bf16.mxu0 %v5738_v15 }
0x1ead   :  { %v3277_v60 = vld [vmem:[#allocation4] sm:$0xff]  ;;  %v3244_v23 = vld [vmem:[#allocation3] sm:$0xff] }
0x1eae   :  { %5151 = vmatmul.mubr.msk.f32.vlgmr.msra.gmra.mrb[38].mxu1 %vm64_vm1, %v3277_v60 }
0x1eaf   :  { %5172 = vmatprep.mubr.msk.f32.mxu1 %vm5740_vm2, %v5737_v6  ;;  %5420 = vmatpush3.bf16.msra.mxu0 %v6281_v25 }
0x1eb0   :  { %5423 = vmatpush3.bf16.msra.mxu1 %v6495_v39  ;;  %5427 = vmatprep.subr.bf16.mxu0 %v5738_v15 }
0x1eb1   :  { %v3363_v41 = vld [vmem:[#allocation5] sm:$0xff]  ;;  %5424 = vmatprep.subr.bf16.mxu1 %v5738_v15 }
0x1eb4   :  { %5426 = vmatpush3.bf16.msra.mxu1 %v6291_v30 }
0x1eb5   :  { %5433 = vmatprep.subr.bf16.mxu1 %v5738_v15 }
0x1f7d   :  { %v3232_v2 = vpop.f32.mrb[38].mxu0 }
0x1f7e   :  { %v3236_v58 = vadd.f32 %v3232_v2, %v6069_v40  ;;  %v5141_v33 = vpop.f32.mrb[39].mxu0 }
0x1f80   :  { %5657 = vtanh.f32 %v3236_v58  ;;  %v4605_v40 = vmul.f32 -1.442695, %v3236_v58 }
0x1f81   :  { %v3351_v55 = vpop.f32.mrb[38].mxu1 }
0x1f82   :  { %v3355_v35 = vadd.f32 %v3351_v55, %v6047_v21  ;;  %v5152_v37 = vpop.f32.mrb[39].mxu1 }
0x1f84   :  { %5659 = vtanh.f32 %v3355_v35  ;;  %v4607_v44 = vmul.f32 -1.442695, %v3355_v35 }
0x1f85   :  { %5661 = vpow2.f32 %v4605_v40 }
0x1f86   :  { %5663 = vpow2.f32 %v4607_v44 }
0x1f8a   :  { %v5658_v14 = vpop.eup %5657 }
0x1f8b   :  { %3251 = vrot.lane.b32.xlu0 %v5658_v14, %s5741_s3 }
0x1f8e   :  { %v5660_v38 = vpop.eup %5659 }
0x1f8f   :  { %3370 = vrot.lane.b32.xlu1 %v5660_v38, %s5741_s3  ;;  %3246 = vrot.lane.b32.xlu0 %v3244_v23, %s5739_s28  ;;  %v5662_v43 = vpop.eup %5661 }
0x1f90   :  { %v3240_v21 = vadd.f32 1.0, %v5662_v43  ;;  %v5664_v45 = vpop.eup %5663 }
0x1f91   :  { %v3359_v18 = vadd.f32 1.0, %v5664_v45 }
0x1f92   :  { %5665 = vrcp.f32 %v3240_v21 }
0x1f93   :  { %3365 = vrot.lane.b32.xlu1 %v3363_v41, %s5739_s28  ;;  %5667 = vrcp.f32 %v3359_v18 }
0x1f9c   :  { %v5666_v46 = vpop.eup %5665 }
0x1f9d   :  { %v5668_v51 = vpop.eup %5667 }
0x1ffd   :  { %v3252_v49 = vpop.permute.xlu0 %3251 }
0x1ffe   :  { %v3254_v11 = vmul.f32 %v5666_v46, %v3252_v49 }
0x2000   :  { %3256 = vrot.lane.b32.xlu0 %v3254_v11, %s5739_s28 }
0x2001   :  { %v3371_v42 = vpop.permute.xlu1 %3370  ;;  %v3247_v47 = vpop.permute.xlu0 %3246 }
0x2002   :  { %v3373_v53 = vmul.f32 %v5668_v51, %v3371_v42  ;;  %v3249_v17 = vmul.f32 %v5666_v46, %v3247_v47 }
0x2004   :  { %3375 = vrot.lane.b32.xlu1 %v3373_v53, %s5739_s28 }
0x2005   :  { %v3366_v59 = vpop.permute.xlu1 %3365 }
0x2006   :  { %v3368_v13 = vmul.f32 %v5668_v51, %v3366_v59  ;;  %v3637_v59 = vld [vmem:[%s6684_s6 + $0x10] sm:$0xff] }
0x2072   :  { %v3257_v54 = vpop.permute.xlu0 %3256 }
0x2073   :  { %v3259_v61 = vadd.f32 %v3257_v54, %v3249_v17  ;;  %v3638_v54 = vld [vmem:[%s6684_s6 + $0x18] sm:$0xff] }
0x2075   :  { %5669 = vtanh.f32 %v3259_v61 }
0x2076   :  { %v3376_v32 = vpop.permute.xlu1 %3375 }
0x2077   :  { %v3378_v24 = vadd.f32 %v3376_v32, %v3368_v13  ;;  %v3756_v13 = vld [vmem:[%s6686_s7 + $0x10] sm:$0xff]  ;;  %v3757_v32 = vld [vmem:[%s6686_s7 + $0x18] sm:$0xff] }
0x2079   :  { %5671 = vtanh.f32 %v3378_v24 }
0x207f   :  { %v5670_v0 = vpop.eup %5669 }
0x2080   :  { %3267 = vrot.lane.b32.xlu0 %v5670_v0, %s5741_s3 }
0x2083   :  { %v5672_v31 = vpop.eup %5671 }
0x2084   :  { %3386 = vrot.lane.b32.xlu1 %v5672_v31, %s5741_s3 }
0x20f2   :  { %v3268_v5 = vpop.permute.xlu0 %3267 }
0x20f3   :  { %v3270_v8 = vmul.f32 %v5666_v46, %v3268_v5 }
0x20f5   :  { %3272 = vrot.lane.b32.xlu0 %v3270_v8, %s5739_s28 }
0x20f6   :  { %v3387_v9 = vpop.permute.xlu1 %3386 }
0x20f7   :  { %v3389_v16 = vmul.f32 %v5668_v51, %v3387_v9 }
0x20f9   :  { %3391 = vrot.lane.b32.xlu1 %v3389_v16, %s5739_s28  ;;  %3261 = vrot.lane.b32.xlu0 %v3259_v61, %s5742_s5  ;;  %v6537_v61 = vpack.c.bf16 %v3638_v54, %v3637_v59 }
0x20fd   :  { %3380 = vrot.lane.b32.xlu1 %v3378_v24, %s5742_s5  ;;  %v6547_v24 = vpack.c.bf16 %v3757_v32, %v3756_v13 }
0x2167   :  { %v3273_v25 = vpop.permute.xlu0 %3272 }
0x2168   :  { %3275 = vst.msk [vmem:[#allocation2] sm:$0xff] %vm64_vm1, %v3273_v25 }
0x216b   :  { %v3392_v19 = vpop.permute.xlu1 %3391  ;;  %v3262_v20 = vpop.permute.xlu0 %3261 }
0x216c   :  { %3394 = vst.msk [vmem:[#allocation4] sm:$0xff] %vm64_vm1, %v3392_v19  ;;  %3264 = vst.msk [vmem:[#allocation3] sm:$0xff] %vm64_vm1, %v3262_v20 }
0x216f   :  { %v3381_v30 = vpop.permute.xlu1 %3380  ;;  %v3396_v12 = vld [vmem:[#allocation2] sm:$0xff] }
0x2170   :  { %3383 = vst.msk [vmem:[#allocation5] sm:$0xff] %vm64_vm1, %v3381_v30  ;;  %5162 = vmatmul.mubr.msk.f32.vlgmr.msra.gmra.mrb[40].mxu0 %vm64_vm1, %v3396_v12 }
0x2171   :  { %5429 = vmatpush3.bf16.msra.mxu0 %v6485_v3  ;;  %5183 = vmatprep.mubr.msk.f32.mxu0 %vm5740_vm2, %v5737_v6 }
0x2172   :  { %5430 = vmatprep.subr.bf16.mxu0 %v5738_v15 }
0x2173   :  { %v3515_v4 = vld [vmem:[#allocation4] sm:$0xff]  ;;  %v3482_v33 = vld [vmem:[#allocation3] sm:$0xff] }
0x2174   :  { %5173 = vmatmul.mubr.msk.f32.vlgmr.msra.gmra.mrb[40].mxu1 %vm64_vm1, %v3515_v4 }
0x2175   :  { %5435 = vmatpush3.bf16.msra.mxu1 %v6495_v39  ;;  %5194 = vmatprep.mubr.msk.f32.mxu1 %vm5740_vm2, %v5737_v6 }
0x2176   :  { %5436 = vmatprep.subr.bf16.mxu1 %v5738_v15  ;;  %5432 = vmatpush3.bf16.msra.mxu0 %v6537_v61 }
0x2177   :  { %v3601_v55 = vld [vmem:[#allocation5] sm:$0xff]  ;;  %5439 = vmatprep.subr.bf16.mxu0 %v5738_v15 }
0x2179   :  { %5438 = vmatpush3.bf16.msra.mxu1 %v6547_v24 }
0x217a   :  { %5445 = vmatprep.subr.bf16.mxu1 %v5738_v15 }
0x2243   :  { %v3470_v26 = vpop.f32.mrb[40].mxu0 }
0x2244   :  { %v3474_v52 = vadd.f32 %v3470_v26, %v6081_v50  ;;  %v5163_v28 = vpop.f32.mrb[41].mxu0 }
0x2246   :  { %5673 = vtanh.f32 %v3474_v52  ;;  %v4609_v50 = vmul.f32 -1.442695, %v3474_v52 }
0x2247   :  { %v3589_v29 = vpop.f32.mrb[40].mxu1 }
0x2248   :  { %v3593_v56 = vadd.f32 %v3589_v29, %v6034_v7  ;;  %v5174_v60 = vpop.f32.mrb[41].mxu1 }
0x224a   :  { %5675 = vtanh.f32 %v3593_v56  ;;  %v4611_v35 = vmul.f32 -1.442695, %v3593_v56 }
0x224b   :  { %5677 = vpow2.f32 %v4609_v50 }
0x224c   :  { %5679 = vpow2.f32 %v4611_v35 }
0x2250   :  { %v5674_v2 = vpop.eup %5673 }
0x2251   :  { %3489 = vrot.lane.b32.xlu0 %v5674_v2, %s5741_s3 }
0x2254   :  { %v5676_v58 = vpop.eup %5675 }
0x2255   :  { %3608 = vrot.lane.b32.xlu1 %v5676_v58, %s5741_s3  ;;  %3484 = vrot.lane.b32.xlu0 %v3482_v33, %s5739_s28  ;;  %v5678_v37 = vpop.eup %5677 }
0x2256   :  { %v3478_v7 = vadd.f32 1.0, %v5678_v37  ;;  %v5680_v14 = vpop.eup %5679 }
0x2257   :  { %v3597_v38 = vadd.f32 1.0, %v5680_v14 }
0x2258   :  { %5681 = vrcp.f32 %v3478_v7 }
0x2259   :  { %3603 = vrot.lane.b32.xlu1 %v3601_v55, %s5739_s28  ;;  %5683 = vrcp.f32 %v3597_v38 }
0x2262   :  { %v5682_v23 = vpop.eup %5681 }
0x2263   :  { %v5684_v44 = vpop.eup %5683 }
0x22c3   :  { %v3490_v41 = vpop.permute.xlu0 %3489 }
0x22c4   :  { %v3492_v40 = vmul.f32 %v5682_v23, %v3490_v41 }
0x22c6   :  { %3494 = vrot.lane.b32.xlu0 %v3492_v40, %s5739_s28 }
0x22c7   :  { %v3609_v43 = vpop.permute.xlu1 %3608  ;;  %v3485_v45 = vpop.permute.xlu0 %3484 }
0x22c8   :  { %v3611_v21 = vmul.f32 %v5684_v44, %v3609_v43  ;;  %v3487_v18 = vmul.f32 %v5682_v23, %v3485_v45 }
0x22ca   :  { %3613 = vrot.lane.b32.xlu1 %v3611_v21, %s5739_s28 }
0x22cb   :  { %v3604_v46 = vpop.permute.xlu1 %3603 }
0x22cc   :  { %v3606_v51 = vmul.f32 %v5684_v44, %v3604_v46 }
0x2338   :  { %v3495_v49 = vpop.permute.xlu0 %3494 }
0x2339   :  { %v3497_v11 = vadd.f32 %v3495_v49, %v3487_v18 }
0x233b   :  { %5685 = vtanh.f32 %v3497_v11 }
0x233c   :  { %v3614_v42 = vpop.permute.xlu1 %3613 }
0x233d   :  { %v3616_v53 = vadd.f32 %v3614_v42, %v3606_v51 }
0x233f   :  { %5687 = vtanh.f32 %v3616_v53 }
0x2345   :  { %v5686_v47 = vpop.eup %5685 }
0x2346   :  { %3505 = vrot.lane.b32.xlu0 %v5686_v47, %s5741_s3 }
0x2349   :  { %v5688_v17 = vpop.eup %5687 }
0x234a   :  { %3624 = vrot.lane.b32.xlu1 %v5688_v17, %s5741_s3 }
0x23b8   :  { %v3506_v0 = vpop.permute.xlu0 %3505 }
0x23b9   :  { %v3508_v31 = vmul.f32 %v5682_v23, %v3506_v0 }
0x23bb   :  { %3510 = vrot.lane.b32.xlu0 %v3508_v31, %s5739_s28 }
0x23bc   :  { %v3625_v34 = vpop.permute.xlu1 %3624 }
0x23bd   :  { %v3627_v22 = vmul.f32 %v5684_v44, %v3625_v34 }
0x23bf   :  { %3629 = vrot.lane.b32.xlu1 %v3627_v22, %s5739_s28  ;;  %3499 = vrot.lane.b32.xlu0 %v3497_v11, %s5742_s5 }
0x23c3   :  { %3618 = vrot.lane.b32.xlu1 %v3616_v53, %s5742_s5 }
0x242d   :  { %v3511_v27 = vpop.permute.xlu0 %3510 }
0x242e   :  { %3513 = vst.msk [vmem:[#allocation2] sm:$0xff] %vm64_vm1, %v3511_v27 }
0x2431   :  { %v3630_v36 = vpop.permute.xlu1 %3629  ;;  %v3500_v5 = vpop.permute.xlu0 %3499 }
0x2432   :  { %3632 = vst.msk [vmem:[#allocation4] sm:$0xff] %vm64_vm1, %v3630_v36  ;;  %3502 = vst.msk [vmem:[#allocation3] sm:$0xff] %vm64_vm1, %v3500_v5 }
0x2435   :  { %v3619_v8 = vpop.permute.xlu1 %3618  ;;  %v3634_v9 = vld [vmem:[#allocation2] sm:$0xff] }
0x2436   :  { %3621 = vst.msk [vmem:[#allocation5] sm:$0xff] %vm64_vm1, %v3619_v8  ;;  %5184 = vmatmul.mubr.msk.f32.vlgmr.msra.gmra.mrb[42].mxu0 %vm64_vm1, %v3634_v9 }
0x2437   :  { %5441 = vmatpush3.bf16.msra.mxu0 %v6485_v3  ;;  %5205 = vmatprep.mubr.msk.f32.mxu0 %vm5740_vm2, %v5737_v6 }
0x2438   :  { %5442 = vmatprep.subr.bf16.mxu0 %v5738_v15 }
0x2439   :  { %v3753_v16 = vld [vmem:[#allocation4] sm:$0xff]  ;;  %v3720_v28 = vld [vmem:[#allocation3] sm:$0xff] }
0x243a   :  { %5195 = vmatmul.mubr.msk.f32.vlgmr.msra.gmra.mrb[42].mxu1 %vm64_vm1, %v3753_v16 }
0x243b   :  { %5444 = vmatpush3.bf16.msra.mxu0 %v6537_v61  ;;  %5447 = vmatpush3.bf16.msra.mxu1 %v6495_v39 }
0x243c   :  { %5448 = vmatprep.subr.bf16.mxu1 %v5738_v15  ;;  %5216 = vmatprep.mubr.msk.f32.mxu1 %vm5740_vm2, %v5737_v6 }
0x243d   :  { %5451 = vmatprep.subr.bf16.mxu0 %v5738_v15  ;;  %v3839_v29 = vld [vmem:[#allocation5] sm:$0xff] }
0x243f   :  { %5450 = vmatpush3.bf16.msra.mxu1 %v6547_v24 }
0x2440   :  { %5457 = vmatprep.subr.bf16.mxu1 %v5738_v15 }
0x2509   :  { %v3708_v25 = vpop.f32.mrb[42].mxu0 }
0x250a   :  { %v3712_v19 = vadd.f32 %v3708_v25, %v6079_v48  ;;  %v5185_v20 = vpop.f32.mrb[43].mxu0 }
0x250c   :  { %5689 = vtanh.f32 %v3712_v19  ;;  %v4613_v48 = vmul.f32 -1.442695, %v3712_v19 }
0x250d   :  { %v3827_v30 = vpop.f32.mrb[42].mxu1 }
0x250e   :  { %v3831_v12 = vadd.f32 %v3827_v30, %v6037_v10  ;;  %v5196_v4 = vpop.f32.mrb[43].mxu1 }
0x2510   :  { %5691 = vtanh.f32 %v3831_v12  ;;  %v4615_v56 = vmul.f32 -1.442695, %v3831_v12 }
0x2511   :  { %5693 = vpow2.f32 %v4613_v48 }
0x2512   :  { %5695 = vpow2.f32 %v4615_v56 }
0x2516   :  { %v5690_v26 = vpop.eup %5689 }
0x2517   :  { %3727 = vrot.lane.b32.xlu0 %v5690_v26, %s5741_s3 }
0x251a   :  { %v5692_v52 = vpop.eup %5691 }
0x251b   :  { %3846 = vrot.lane.b32.xlu1 %v5692_v52, %s5741_s3  ;;  %3722 = vrot.lane.b32.xlu0 %v3720_v28, %s5739_s28  ;;  %v5694_v60 = vpop.eup %5693 }
0x251c   :  { %v3716_v10 = vadd.f32 1.0, %v5694_v60  ;;  %v5696_v2 = vpop.eup %5695 }
0x251d   :  { %v3835_v58 = vadd.f32 1.0, %v5696_v2 }
0x251e   :  { %5697 = vrcp.f32 %v3716_v10 }
0x251f   :  { %3841 = vrot.lane.b32.xlu1 %v3839_v29, %s5739_s28  ;;  %5699 = vrcp.f32 %v3835_v58 }
0x2528   :  { %v5698_v33 = vpop.eup %5697 }
0x2529   :  { %v5700_v35 = vpop.eup %5699 }
0x2589   :  { %v3728_v55 = vpop.permute.xlu0 %3727 }
0x258a   :  { %v3730_v50 = vmul.f32 %v5698_v33, %v3728_v55 }
0x258c   :  { %3732 = vrot.lane.b32.xlu0 %v3730_v50, %s5739_s28 }
0x258d   :  { %v3847_v37 = vpop.permute.xlu1 %3846  ;;  %v3723_v14 = vpop.permute.xlu0 %3722 }
0x258e   :  { %v3849_v7 = vmul.f32 %v5700_v35, %v3847_v37  ;;  %v3725_v38 = vmul.f32 %v5698_v33, %v3723_v14 }
0x2590   :  { %3851 = vrot.lane.b32.xlu1 %v3849_v7, %s5739_s28 }
0x2591   :  { %v3842_v23 = vpop.permute.xlu1 %3841 }
0x2592   :  { %v3844_v44 = vmul.f32 %v5700_v35, %v3842_v23 }
0x25fe   :  { %v3733_v41 = vpop.permute.xlu0 %3732 }
0x25ff   :  { %v3735_v40 = vadd.f32 %v3733_v41, %v3725_v38 }
0x2601   :  { %5701 = vtanh.f32 %v3735_v40 }
0x2602   :  { %v3852_v43 = vpop.permute.xlu1 %3851 }
0x2603   :  { %v3854_v21 = vadd.f32 %v3852_v43, %v3844_v44 }
0x2605   :  { %5703 = vtanh.f32 %v3854_v21 }
0x260b   :  { %v5702_v45 = vpop.eup %5701 }
0x260c   :  { %3743 = vrot.lane.b32.xlu0 %v5702_v45, %s5741_s3 }
0x260f   :  { %v5704_v18 = vpop.eup %5703 }
0x2610   :  { %3862 = vrot.lane.b32.xlu1 %v5704_v18, %s5741_s3 }
0x267e   :  { %v3744_v46 = vpop.permute.xlu0 %3743 }
0x267f   :  { %v3746_v49 = vmul.f32 %v5698_v33, %v3744_v46 }
0x2681   :  { %3748 = vrot.lane.b32.xlu0 %v3746_v49, %s5739_s28 }
0x2682   :  { %v3863_v11 = vpop.permute.xlu1 %3862 }
0x2683   :  { %v3865_v51 = vmul.f32 %v5700_v35, %v3863_v11 }
0x2685   :  { %3867 = vrot.lane.b32.xlu1 %v3865_v51, %s5739_s28  ;;  %3737 = vrot.lane.b32.xlu0 %v3735_v40, %s5742_s5 }
0x2689   :  { %3856 = vrot.lane.b32.xlu1 %v3854_v21, %s5742_s5 }
0x26f3   :  { %v3749_v42 = vpop.permute.xlu0 %3748 }
0x26f4   :  { %3751 = vst.msk [vmem:[#allocation2] sm:$0xff] %vm64_vm1, %v3749_v42 }
0x26f7   :  { %v3868_v53 = vpop.permute.xlu1 %3867  ;;  %v3738_v47 = vpop.permute.xlu0 %3737 }
0x26f8   :  { %3870 = vst.msk [vmem:[#allocation4] sm:$0xff] %vm64_vm1, %v3868_v53  ;;  %3740 = vst.msk [vmem:[#allocation3] sm:$0xff] %vm64_vm1, %v3738_v47 }
0x26fb   :  { %v3857_v17 = vpop.permute.xlu1 %3856  ;;  %v3872_v59 = vld [vmem:[#allocation2] sm:$0xff] }
0x26fc   :  { %3859 = vst.msk [vmem:[#allocation5] sm:$0xff] %vm64_vm1, %v3857_v17  ;;  %5206 = vmatmul.mubr.msk.f32.vlgmr.msra.gmra.mrb[44].mxu0 %vm64_vm1, %v3872_v59 }
0x26fd   :  { %5453 = vmatpush3.bf16.msra.mxu0 %v6485_v3  ;;  %5227 = vmatprep.mubr.msk.f32.mxu0 %vm5740_vm2, %v5737_v6 }
0x26fe   :  { %5454 = vmatprep.subr.bf16.mxu0 %v5738_v15 }
0x26ff   :  { %v3991_v54 = vld [vmem:[#allocation4] sm:$0xff]  ;;  %v3958_v22 = vld [vmem:[#allocation3] sm:$0xff] }
0x2700   :  { %5217 = vmatmul.mubr.msk.f32.vlgmr.msra.gmra.mrb[44].mxu1 %vm64_vm1, %v3991_v54 }
0x2701   :  { %5456 = vmatpush3.bf16.msra.mxu0 %v6537_v61  ;;  %5459 = vmatpush3.bf16.msra.mxu1 %v6495_v39 }
0x2702   :  { %5460 = vmatprep.subr.bf16.mxu1 %v5738_v15  ;;  %5238 = vmatprep.mubr.msk.f32.mxu1 %vm5740_vm2, %v5737_v6 }
0x2703   :  { %5463 = vmatprep.subr.bf16.mxu0 %v5738_v15 }
0x2705   :  { %5462 = vmatpush3.bf16.msra.mxu1 %v6547_v24  ;;  %v4077_v24 = vld [vmem:[#allocation5] sm:$0xff] }
0x2706   :  { %5469 = vmatprep.subr.bf16.mxu1 %v5738_v15 }
0x27cf   :  { %v3946_v3 = vpop.f32.mrb[44].mxu0 }
0x27d0   :  { %v3950_v13 = vadd.f32 %v3946_v3, %v6091_v63  ;;  %v5207_v32 = vpop.f32.mrb[45].mxu0 }
0x27d2   :  { %5705 = vtanh.f32 %v3950_v13  ;;  %v4617_v63 = vmul.f32 -1.442695, %v3950_v13 }
0x27d3   :  { %v4065_v0 = vpop.f32.mrb[44].mxu1 }
0x27d4   :  { %v4069_v61 = vadd.f32 %v4065_v0, %v6024_v62  ;;  %v5218_v39 = vpop.f32.mrb[45].mxu1 }
0x27d6   :  { %5707 = vtanh.f32 %v4069_v61  ;;  %v4619_v27 = vmul.f32 -1.442695, %v4069_v61 }
0x27d7   :  { %5709 = vpow2.f32 %v4617_v63 }
0x27d8   :  { %5711 = vpow2.f32 %v4619_v27  ;;  %v4356_v27 = vld [vmem:[%s6689_s9] sm:$0xff] }
0x27dc   :  { %v5706_v31 = vpop.eup %5705 }
0x27dd   :  { %3965 = vrot.lane.b32.xlu0 %v5706_v31, %s5741_s3 }
0x27e0   :  { %v5708_v34 = vpop.eup %5707 }
0x27e1   :  { %4084 = vrot.lane.b32.xlu1 %v5708_v34, %s5741_s3  ;;  %3960 = vrot.lane.b32.xlu0 %v3958_v22, %s5739_s28  ;;  %v5710_v36 = vpop.eup %5709 }
0x27e2   :  { %v3954_v62 = vadd.f32 1.0, %v5710_v36  ;;  %v5712_v5 = vpop.eup %5711  ;;  %v4357_v36 = vld [vmem:[%s6689_s9 + $0x8] sm:$0xff] }
0x27e3   :  { %v4073_v8 = vadd.f32 1.0, %v5712_v5  ;;  %v4358_v5 = vld [vmem:[%s6689_s9 + $0x10] sm:$0xff] }
0x27e4   :  { %5713 = vrcp.f32 %v3954_v62  ;;  %v5464_v62 = vpack.c.bf16 %v4357_v36, %v4356_v27 }
0x27e5   :  { %4079 = vrot.lane.b32.xlu1 %v4077_v24, %s5739_s28  ;;  %5715 = vrcp.f32 %v4073_v8  ;;  %v4359_v8 = vld [vmem:[%s6689_s9 + $0x18] sm:$0xff] }
0x27ee   :  { %v5714_v9 = vpop.eup %5713 }
0x27ef   :  { %v5716_v19 = vpop.eup %5715 }
0x284f   :  { %v3966_v16 = vpop.permute.xlu0 %3965 }
0x2850   :  { %v3968_v25 = vmul.f32 %v5714_v9, %v3966_v16  ;;  %v5467_v16 = vpack.c.bf16 %v4359_v8, %v4358_v5 }
0x2852   :  { %3970 = vrot.lane.b32.xlu0 %v3968_v25, %s5739_s28  ;;  %v4352_v25 = vld [vmem:[%s6690_s8 + $0x8] sm:$0xff] }
0x2853   :  { %v4085_v20 = vpop.permute.xlu1 %4084  ;;  %v3961_v12 = vpop.permute.xlu0 %3960 }
0x2854   :  { %v4087_v30 = vmul.f32 %v5716_v19, %v4085_v20  ;;  %v3963_v4 = vmul.f32 %v5714_v9, %v3961_v12  ;;  %v4353_v20 = vld [vmem:[%s6690_s8 + $0x10] sm:$0xff] }
0x2856   :  { %4089 = vrot.lane.b32.xlu1 %v4087_v30, %s5739_s28  ;;  %v4354_v30 = vld [vmem:[%s6690_s8 + $0x18] sm:$0xff] }
0x2857   :  { %v4080_v26 = vpop.permute.xlu1 %4079  ;;  %v5473_v12 = vpack.c.bf16 %v4354_v30, %v4353_v20 }
0x2858   :  { %v4082_v29 = vmul.f32 %v5716_v19, %v4080_v26 }
0x28c4   :  { %v3971_v52 = vpop.permute.xlu0 %3970 }
0x28c5   :  { %v3973_v28 = vadd.f32 %v3971_v52, %v3963_v4 }
0x28c7   :  { %5717 = vtanh.f32 %v3973_v28 }
0x28c8   :  { %v4090_v48 = vpop.permute.xlu1 %4089 }
0x28c9   :  { %v4092_v56 = vadd.f32 %v4090_v48, %v4082_v29 }
0x28cb   :  { %5719 = vtanh.f32 %v4092_v56 }
0x28d1   :  { %v5718_v60 = vpop.eup %5717 }
0x28d2   :  { %3981 = vrot.lane.b32.xlu0 %v5718_v60, %s5741_s3 }
0x28d5   :  { %v5720_v10 = vpop.eup %5719 }
0x28d6   :  { %4100 = vrot.lane.b32.xlu1 %v5720_v10, %s5741_s3 }
0x2944   :  { %v3982_v2 = vpop.permute.xlu0 %3981 }
0x2945   :  { %v3984_v58 = vmul.f32 %v5714_v9, %v3982_v2  ;;  %v4351_v9 = vld [vmem:[%s6690_s8] sm:$0xff] }
0x2947   :  { %3986 = vrot.lane.b32.xlu0 %v3984_v58, %s5739_s28 }
0x2948   :  { %v4101_v33 = vpop.permute.xlu1 %4100 }
0x2949   :  { %v4103_v55 = vmul.f32 %v5716_v19, %v4101_v33  ;;  %v5470_v19 = vpack.c.bf16 %v4352_v25, %v4351_v9 }
0x294b   :  { %4105 = vrot.lane.b32.xlu1 %v4103_v55, %s5739_s28  ;;  %3975 = vrot.lane.b32.xlu0 %v3973_v28, %s5742_s5  ;;  %v4626_v55 = vld [vmem:[%s6691_s10] ss:$0 sm:$0xff] }
0x294f   :  { %4094 = vrot.lane.b32.xlu1 %v4092_v56, %s5742_s5 }
0x29b9   :  { %v3987_v50 = vpop.permute.xlu0 %3986 }
0x29ba   :  { %3989 = vst.msk [vmem:[#allocation2] sm:$0xff] %vm64_vm1, %v3987_v50 }
0x29bd   :  { %v4106_v35 = vpop.permute.xlu1 %4105  ;;  %v3976_v37 = vpop.permute.xlu0 %3975 }
0x29be   :  { %4108 = vst.msk [vmem:[#allocation4] sm:$0xff] %vm64_vm1, %v4106_v35  ;;  %3978 = vst.msk [vmem:[#allocation3] sm:$0xff] %vm64_vm1, %v3976_v37 }
0x29c1   :  { %v4095_v7 = vpop.permute.xlu1 %4094  ;;  %v4110_v14 = vld [vmem:[#allocation2] sm:$0xff] }
0x29c2   :  { %4097 = vst.msk [vmem:[#allocation5] sm:$0xff] %vm64_vm1, %v4095_v7  ;;  %5228 = vmatmul.mubr.msk.f32.vlgmr.msra.gmra.mrb[46].mxu0 %vm64_vm1, %v4110_v14 }
0x29c3   :  { %5249 = vmatprep.mubr.msk.f32.mxu0 %vm5740_vm2, %v5737_v6  ;;  %5465 = vmatpush3.bf16.msra.mxu0 %v5464_v62 }
0x29c4   :  { %5466 = vmatprep.subr.bf16.mxu0 %v5738_v15 }
0x29c5   :  { %v4229_v38 = vld [vmem:[#allocation4] sm:$0xff]  ;;  %v4196_v46 = vld [vmem:[#allocation3] sm:$0xff] }
0x29c6   :  { %5239 = vmatmul.mubr.msk.f32.vlgmr.msra.gmra.mrb[46].mxu1 %vm64_vm1, %v4229_v38 }
0x29c7   :  { %5260 = vmatprep.mubr.msk.f32.mxu1 %vm5740_vm2, %v5737_v6  ;;  %5468 = vmatpush3.bf16.msra.mxu0 %v5467_v16 }
0x29c8   :  { %5471 = vmatpush3.bf16.msra.mxu1 %v5470_v19 }
0x29c9   :  { %v4315_v6 = vld [vmem:[#allocation5] sm:$0xff]  ;;  %5472 = vmatprep.subr.bf16.mxu1 %v5738_v15 }
0x29cc   :  { %5474 = vmatpush3.bf16.msra.mxu1 %v5473_v12 }
0x2a95   :  { %v4184_v23 = vpop.f32.mrb[46].mxu0 }
0x2a96   :  { %v4188_v41 = vadd.f32 %v4184_v23, %v6089_v57  ;;  %v5229_v40 = vpop.f32.mrb[47].mxu0 }
0x2a98   :  { %5721 = vtanh.f32 %v4188_v41  ;;  %v4621_v57 = vmul.f32 -1.442695, %v4188_v41 }
0x2a99   :  { %v4303_v44 = vpop.f32.mrb[46].mxu1 }
0x2a9a   :  { %v4307_v43 = vadd.f32 %v4303_v44, %v6027_v1  ;;  %v5240_v21 = vpop.f32.mrb[47].mxu1 }
0x2a9c   :  { %5723 = vtanh.f32 %v4307_v43  ;;  %v4623_v49 = vmul.f32 -1.442695, %v4307_v43 }
0x2a9d   :  { %5725 = vpow2.f32 %v4621_v57 }
0x2a9e   :  { %5727 = vpow2.f32 %v4623_v49 }
0x2aa2   :  { %v5722_v45 = vpop.eup %5721 }
0x2aa3   :  { %4203 = vrot.lane.b32.xlu0 %v5722_v45, %s5741_s3 }
0x2aa6   :  { %v5724_v18 = vpop.eup %5723 }
0x2aa7   :  { %4322 = vrot.lane.b32.xlu1 %v5724_v18, %s5741_s3  ;;  %4198 = vrot.lane.b32.xlu0 %v4196_v46, %s5739_s28  ;;  %v5726_v11 = vpop.eup %5725 }
0x2aa8   :  { %v4192_v1 = vadd.f32 1.0, %v5726_v11  ;;  %v5728_v51 = vpop.eup %5727 }
0x2aa9   :  { %v4311_v42 = vadd.f32 1.0, %v5728_v51 }
0x2aaa   :  { %5729 = vrcp.f32 %v4192_v1 }
0x2aab   :  { %4317 = vrot.lane.b32.xlu1 %v4315_v6, %s5739_s28  ;;  %5731 = vrcp.f32 %v4311_v42 }
0x2ab4   :  { %v5730_v53 = vpop.eup %5729 }
0x2ab5   :  { %v5732_v59 = vpop.eup %5731 }
0x2b15   :  { %v4204_v47 = vpop.permute.xlu0 %4203 }
0x2b16   :  { %v4206_v17 = vmul.f32 %v5730_v53, %v4204_v47 }
0x2b18   :  { %4208 = vrot.lane.b32.xlu0 %v4206_v17, %s5739_s28 }
0x2b19   :  { %v4323_v54 = vpop.permute.xlu1 %4322  ;;  %v4199_v13 = vpop.permute.xlu0 %4198 }
0x2b1a   :  { %v4325_v3 = vmul.f32 %v5732_v59, %v4323_v54  ;;  %v4201_v32 = vmul.f32 %v5730_v53, %v4199_v13 }
0x2b1c   :  { %4327 = vrot.lane.b32.xlu1 %v4325_v3, %s5739_s28 }
0x2b1d   :  { %v4318_v0 = vpop.permute.xlu1 %4317 }
0x2b1e   :  { %v4320_v31 = vmul.f32 %v5732_v59, %v4318_v0 }
0x2b8a   :  { %v4209_v61 = vpop.permute.xlu0 %4208 }
0x2b8b   :  { %v4211_v39 = vadd.f32 %v4209_v61, %v4201_v32 }
0x2b8d   :  { %5733 = vtanh.f32 %v4211_v39 }
0x2b8e   :  { %v4328_v34 = vpop.permute.xlu1 %4327 }
0x2b8f   :  { %v4330_v22 = vadd.f32 %v4328_v34, %v4320_v31 }
0x2b91   :  { %5735 = vtanh.f32 %v4330_v22 }
0x2b97   :  { %v5734_v24 = vpop.eup %5733 }
0x2b98   :  { %4219 = vrot.lane.b32.xlu0 %v5734_v24, %s5741_s3 }
0x2b9b   :  { %v5736_v63 = vpop.eup %5735 }
0x2b9c   :  { %4338 = vrot.lane.b32.xlu1 %v5736_v63, %s5741_s3 }
0x2c0a   :  { %v4220_v4 = vpop.permute.xlu0 %4219 }
0x2c0b   :  { %v4222_v26 = vmul.f32 %v5730_v53, %v4220_v4 }
0x2c0d   :  { %4224 = vrot.lane.b32.xlu0 %v4222_v26, %s5739_s28 }
0x2c0e   :  { %v4339_v52 = vpop.permute.xlu1 %4338 }
0x2c0f   :  { %v4341_v28 = vmul.f32 %v5732_v59, %v4339_v52 }
0x2c11   :  { %4343 = vrot.lane.b32.xlu1 %v4341_v28, %s5739_s28  ;;  %4213 = vrot.lane.b32.xlu0 %v4211_v39, %s5742_s5 }
0x2c15   :  { %4332 = vrot.lane.b32.xlu1 %v4330_v22, %s5742_s5 }
0x2c7f   :  { %v4225_v29 = vpop.permute.xlu0 %4224 }
0x2c80   :  { %4227 = vst.msk [vmem:[#allocation2] sm:$0xff] %vm64_vm1, %v4225_v29 }
0x2c83   :  { %v4344_v48 = vpop.permute.xlu1 %4343  ;;  %v4214_v56 = vpop.permute.xlu0 %4213 }
0x2c84   :  { %4346 = vst.msk [vmem:[#allocation4] sm:$0xff] %vm64_vm1, %v4344_v48  ;;  %4216 = vst.msk [vmem:[#allocation3] sm:$0xff] %vm64_vm1, %v4214_v56 }
0x2c87   :  { %v4333_v15 = vpop.permute.xlu1 %4332  ;;  %v4355_v60 = vld [vmem:[#allocation2] sm:$0xff] }
0x2c88   :  { %4335 = vst.msk [vmem:[#allocation5] sm:$0xff] %vm64_vm1, %v4333_v15  ;;  %5250 = vmatmul.mubr.msk.f32.vlgmr.msra.gmra.mrb[48].mxu0 %vm64_vm1, %v4355_v60 }
0x2c8b   :  { %v4350_v10 = vld [vmem:[#allocation4] sm:$0xff] }
0x2c8c   :  { %5261 = vmatmul.mubr.msk.f32.vlgmr.msra.gmra.mrb[48].mxu1 %vm64_vm1, %v4350_v10 }
0x2d5b   :  { %v4429_v2 = vpop.f32.mrb[48].mxu0 }
0x2d5c   :  { %v5251_v58 = vpop.f32.mrb[49].mxu0 }
0x2d5f   :  { %v4502_v33 = vpop.f32.mrb[48].mxu1 }
0x2d60   :  { %v4503_v50 = vadd.f32 %v4502_v33, %v4429_v2  ;;  %v5262_v35 = vpop.f32.mrb[49].mxu1 }
0x2d62   :  { %v4513_v37 = vadd.f32 %v4626_v55, %v4503_v50 }
0x2d64   :  { %4515 = vst.msk [vmem:[%s6692_s11] sm:$0xff] %vm4514_vm3, %v4513_v37 }

</bundles_post_ra>
